<compile_context>
chip_gen: v7x
topology: tpu7x:2x2x1
jax: 0.10.0
libtpu: 0.0.40
codegen_flags: <defaults>
</compile_context>

<pallas_src>
import numpy as np
import jax
import jax.numpy as jnp
from jax.experimental import pallas as pl
from jax.experimental.pallas import tpu as pltpu

# ----------------------------- problem sizes (small, consistent with the module) ----
B = 2              # batch
N = 256            # signal length (input_size)
SUB = 16           # T = 2**(11-7) = 16 subsampling factor
T_OUT = N // SUB   # scattering time resolution (16)
N_PSI = 12         # first-order coefficients used (x_mean/x_std are [1:13] -> 12)
N_COEFF = 1 + N_PSI
INPUT_DIM = 8      # feature slice applied at the end (<= N_COEFF)

ST0_MEAN = 140.37047
ST0_STD = 18.81198
ST0_ISTD = 1.0 / ST0_STD


# ----------------------------------------------- deterministic filter bank ----------
def make_filterbank(n, n_psi, sub):
    """Synthetic Morlet-like 1D scattering filter bank (deterministic, no files)."""
    idx = np.arange(n)
    nc = ((idx + n // 2) % n) - n // 2          # circularly centered support

    # lowpass (Gaussian), L1-normalized, width ~ subsampling factor
    phi = np.exp(-0.5 * (nc / float(sub)) ** 2)
    phi = phi / phi.sum()

    psis = []
    for k in range(n_psi):
        xi = 0.8 * np.pi * (0.8 ** k)           # decreasing center frequency
        sigma = 2.0 * (1.25 ** k)               # increasing envelope width
        g = np.exp(-0.5 * (nc / sigma) ** 2)
        psi = g * np.exp(1j * xi * nc)
        psi = psi - g * (psi.sum() / (g.sum() + 1e-12))   # zero-mean (Morlet correction)
        psi = psi / (np.abs(psi).sum() + 1e-12)
        psis.append(psi)

    # circular convolution matrices: y[m] = sum_n u[n] * h[(m - n) mod N]  =>  y = u @ M
    conv_idx = (np.arange(n)[None, :] - np.arange(n)[:, None]) % n          # M[n, m]
    phi_full = phi[conv_idx]                                                # (N, N)
    phi_ds = phi_full[:, ::sub].astype(np.float32)                          # (N, T_OUT)
    psi_r = np.concatenate([np.real(p[conv_idx]) for p in psis], axis=1).astype(np.float32)
    psi_i = np.concatenate([np.imag(p[conv_idx]) for p in psis], axis=1).astype(np.float32)
    return psi_r, psi_i, phi_ds                                             # (N,12N),(N,12N),(N,T)


# --------------------------------------------------------- the Pallas kernel --------
def _scattering_kernel(x_ref, psi_ref, phi_ref, mean_ref, istd_ref, out0_ref, out1_ref):
    x = x_ref[...]                                                    # (B, N) bf16
    phi = phi_ref[...]                                                # (N, T_OUT) bf16

    # ---- order 0: lowpass + subsample, affine normalization via scalar constants --
    s0 = jnp.dot(x, phi, preferred_element_type=jnp.float32)          # (B, T_OUT) f32
    out0_ref[...] = (s0 - ST0_MEAN) * ST0_ISTD

    # ---- order 1, stage 1: all 12 complex wavelet convolutions as ONE batched
    #      MXU matmul against the [real | imag] filter bank (bf16 in, f32 accum) ----
    xb = jnp.broadcast_to(x[None, :, :], (N_PSI, B, N))               # (12, B, N) bf16
    w = jnp.einsum('kbn,knc->kbc', xb, psi_ref[...],
                   preferred_element_type=jnp.float32)                # (12, B, 2N) f32
    wr = w[:, :, :N]                                                  # lane-aligned slices
    wi = w[:, :, N:]
    u1 = jnp.sqrt(wr * wr + wi * wi).astype(jnp.bfloat16)             # (12, B, N) modulus

    # ---- order 1, stage 2: shared lowpass + subsample as one batched matmul -------
    phi_b = jnp.broadcast_to(phi[None, :, :], (N_PSI, N, T_OUT))      # (12, N, T_OUT) bf16
    s1 = jnp.einsum('kbn,knt->kbt', u1, phi_b,
                    preferred_element_type=jnp.float32)               # (12, B, T_OUT) f32

    # ---- log then broadcast FMA against precomputed mean / reciprocal-std rows ----
    out1_ref[...] = (jnp.log(s1 + 1e-4) - mean_ref[...]) * istd_ref[...]


def scattering_transform(x_bf16, psi3, phi_ds, mean_b, istd_b, input_dim):
    """Forward pass of ScatteringTransform. Returns (out, meta)."""
    vmem = pl.BlockSpec(memory_space=pltpu.MemorySpace.VMEM)

    flops = (2 * N_PSI * B * N * (2 * N)      # stage-1 wavelet conv matmul
             + 2 * N_PSI * B * N * T_OUT      # stage-2 lowpass matmul
             + 2 * B * N * T_OUT              # order-0 lowpass matmul
             + 4 * N_PSI * B * N              # modulus elementwise
             + 4 * N_PSI * B * T_OUT          # log-normalization elementwise
             + 2 * B * T_OUT)                 # order-0 normalization
    transcendentals = N_PSI * B * N + N_PSI * B * T_OUT      # sqrt + log
    bytes_accessed = int(
        sum(int(a.size) * a.dtype.itemsize
            for a in (x_bf16, psi3, phi_ds, mean_b, istd_b))
        + (B * T_OUT + N_PSI * B * T_OUT) * 4)

    out0, out1 = pl.pallas_call(
        _scattering_kernel,
        out_shape=(jax.ShapeDtypeStruct((B, T_OUT), jnp.float32),
                   jax.ShapeDtypeStruct((N_PSI, B, T_OUT), jnp.float32)),
        in_specs=[vmem, vmem, vmem, vmem, vmem],
        out_specs=(vmem, vmem),
        compiler_params=pltpu.CompilerParams(vmem_limit_bytes=32 * 1024 * 1024),
        cost_estimate=pl.CostEstimate(
            flops=flops,
            transcendentals=transcendentals,
            bytes_accessed=bytes_accessed),
    )(x_bf16, psi3, phi_ds, mean_b, istd_b)

    # glue in XLA (free at these sizes): (13, B, T) -> (T, B, 13) -> slice coefficients
    full = jnp.concatenate([out0[None, :, :], out1], axis=0)                # (13, B, T)
    y = jnp.transpose(full, (2, 1, 0))[:, :, :input_dim]                    # (T, B, input_dim)

    # TODO(synk): Kymatio also produces order-2 coefficients (and Px), but the torch
    # forward discards them (only order 0/1 are selected), so they are not computed here.
    # TODO(synk): for throughput, stack many signals per call (M >= 128/256) so the
    # ~3 MiB filter fetch and MXU latency are amortized; B=2 here matches the module example.
    meta = {"order": np.array([0] + [1] * N_PSI, dtype=np.int64)}
    return y, meta


# ----------------------------------------------------- pure-JAX f32 reference -------
def scattering_reference(x, psi_r, psi_i, phi_ds, x_mean, x_std, input_dim):
    prec = jax.lax.Precision.HIGHEST
    s0 = jnp.dot(x, phi_ds, precision=prec)                                 # (B, T_OUT)
    s0n = (s0 - ST0_MEAN) / ST0_STD
    rows = []
    for k in range(N_PSI):
        wr = jnp.dot(x, psi_r[:, k * N:(k + 1) * N], precision=prec)
        wi = jnp.dot(x, psi_i[:, k * N:(k + 1) * N], precision=prec)
        s1 = jnp.dot(jnp.sqrt(wr * wr + wi * wi), phi_ds, precision=prec)
        rows.append((jnp.log(s1 + 1e-4) - x_mean[k]) / x_std[k])
    full = jnp.stack([s0n] + rows, axis=0)                                  # (13, B, T_OUT)
    return jnp.transpose(full, (2, 1, 0))[:, :, :input_dim]


# ------------------------------------------------------------------- main -----------
if __name__ == "__main__":
    # deterministic synthetic log_stat (the module slices entries [1:13])
    log_stat = (np.linspace(-1.0, 1.0, 14, dtype=np.float32),
                np.linspace(0.5, 2.0, 14, dtype=np.float32))
    x_mean_np = log_stat[0][1:13]                                           # (12,)
    x_std_np = log_stat[1][1:13]                                            # (12,)

    psi_r_np, psi_i_np, phi_np = make_filterbank(N, N_PSI, SUB)

    # per-filter [real | imag] circulant bank, bf16 (native MXU input, halves HBM bytes)
    psi3_np = np.stack(
        [np.concatenate([psi_r_np[:, k * N:(k + 1) * N],
                         psi_i_np[:, k * N:(k + 1) * N]], axis=1)
         for k in range(N_PSI)], axis=0)                                    # (12, 256, 512)
    psi3 = jnp.asarray(psi3_np, dtype=jnp.bfloat16)
    phi_ds = jnp.asarray(phi_np, dtype=jnp.bfloat16)                        # (256, 16)

    mean_b = jnp.asarray(
        np.repeat(x_mean_np.reshape(N_PSI, 1, 1), T_OUT, axis=2).astype(np.float32))
    istd_b = jnp.asarray(
        np.repeat((1.0 / x_std_np).reshape(N_PSI, 1, 1), T_OUT, axis=2).astype(np.float32))

    key = jax.random.PRNGKey(0)
    x_f32 = jax.random.normal(key, (B, N), dtype=jnp.float32)
    x_bf16 = x_f32.astype(jnp.bfloat16)

    out, meta = scattering_transform(x_bf16, psi3, phi_ds, mean_b, istd_b, INPUT_DIM)
    out = jax.block_until_ready(out)
    assert out.shape == (T_OUT, B, INPUT_DIM), out.shape

    ref = jax.block_until_ready(
        scattering_reference(x_f32, jnp.asarray(psi_r_np), jnp.asarray(psi_i_np),
                             jnp.asarray(phi_np), jnp.asarray(x_mean_np),
                             jnp.asarray(x_std_np), INPUT_DIM))
    # bf16 filters/signal vs f32 reference: log() amplifies small relative errors, so the
    # comparison tolerance is 2e-2 (kernel math itself is exact up to bf16 quantization).
    np.testing.assert_allclose(np.asarray(out), np.asarray(ref), rtol=2e-2, atol=2e-2)

    print("KERNEL_OK")
</pallas_src>

<mosaic_0001>
module attributes {stable_mosaic.version = 11 : i64} {
  func.func @_scattering_kernel(%arg0: memref<2x256xbf16, #tpu.memory_space<vmem>>, %arg1: memref<12x256x512xbf16, #tpu.memory_space<vmem>>, %arg2: memref<256x16xbf16, #tpu.memory_space<vmem>>, %arg3: memref<12x1x16xf32, #tpu.memory_space<vmem>>, %arg4: memref<12x1x16xf32, #tpu.memory_space<vmem>>, %arg5: memref<2x16xf32, #tpu.memory_space<vmem>>, %arg6: memref<12x2x16xf32, #tpu.memory_space<vmem>>) attributes {dimension_semantics = [], scalar_prefetch = 0 : i64, scratch_operands = 0 : i64, tpu.core_type = #tpu.core_type<tc>} {
    %c0 = arith.constant 0 : index
    %c0_0 = arith.constant 0 : index
    %0 = vector.load %arg0[%c0, %c0_0] : memref<2x256xbf16, #tpu.memory_space<vmem>>, vector<2x256xbf16>
    %c0_1 = arith.constant 0 : index
    %c0_2 = arith.constant 0 : index
    %1 = vector.load %arg2[%c0_1, %c0_2] : memref<256x16xbf16, #tpu.memory_space<vmem>>, vector<256x16xbf16>
    %cst = arith.constant dense<0.000000e+00> : vector<2x16xf32>
    %2 = tpu.matmul %0, %1, %cst {dimension_numbers = #tpu.dot_dimension_numbers<[1], [0], [0], [1], [0, 0, 1, 1], [], []>} : vector<2x256xbf16>, vector<256x16xbf16>, vector<2x16xf32> -> vector<2x16xf32>
    %cst_3 = arith.constant 140.370468 : f32
    %3 = vector.broadcast %cst_3 : f32 to vector<2x16xf32>
    %4 = arith.subf %2, %3 : vector<2x16xf32>
    %cst_4 = arith.constant 0.0531576164 : f32
    %5 = vector.broadcast %cst_4 : f32 to vector<2x16xf32>
    %6 = arith.mulf %4, %5 : vector<2x16xf32>
    %c0_5 = arith.constant 0 : index
    %c0_6 = arith.constant 0 : index
    %7 = vector.load %arg5[%c0_5, %c0_6] : memref<2x16xf32, #tpu.memory_space<vmem>>, vector<2x16xf32>
    tpu.vector_store %arg5[%c0_5, %c0_6], %6 {strides = array<i32>} : memref<2x16xf32, #tpu.memory_space<vmem>>, vector<2x16xf32>,
    %8 = vector.shape_cast %0 : vector<2x256xbf16> to vector<1x2x256xbf16>
    %9 = vector.shape_cast %8 : vector<1x2x256xbf16> to vector<1x2x256xbf16>
    %10 = vector.broadcast %9 : vector<1x2x256xbf16> to vector<12x2x256xbf16>
    %c0_7 = arith.constant 0 : index
    %c0_8 = arith.constant 0 : index
    %c0_9 = arith.constant 0 : index
    %11 = vector.load %arg1[%c0_7, %c0_8, %c0_9] : memref<12x256x512xbf16, #tpu.memory_space<vmem>>, vector<12x256x512xbf16>
    "tpu.trace_start"() <{level = 10 : i32, message = "kbn,knc->kbc"}> : () -> ()
    %cst_10 = arith.constant dense<0.000000e+00> : vector<12x2x512xf32>
    %12 = tpu.matmul %10, %11, %cst_10 {dimension_numbers = #tpu.dot_dimension_numbers<[2], [1], [1], [2], [0, 0, 0, 1, 1, 2], [0], [0]>} : vector<12x2x256xbf16>, vector<12x256x512xbf16>, vector<12x2x512xf32> -> vector<12x2x512xf32>
    "tpu.trace_stop"() : () -> ()
    %13 = vector.extract_strided_slice %12 {offsets = [0, 0, 0], sizes = [12, 2, 256], strides = [1, 1, 1]} : vector<12x2x512xf32> to vector<12x2x256xf32>
    %14 = vector.extract_strided_slice %12 {offsets = [0, 0, 256], sizes = [12, 2, 256], strides = [1, 1, 1]} : vector<12x2x512xf32> to vector<12x2x256xf32>
    %15 = arith.mulf %13, %13 : vector<12x2x256xf32>
    %16 = arith.mulf %14, %14 : vector<12x2x256xf32>
    %17 = arith.addf %15, %16 : vector<12x2x256xf32>
    %18 = math.sqrt %17 : vector<12x2x256xf32>
    %19 = arith.truncf %18 : vector<12x2x256xf32> to vector<12x2x256xbf16>
    %20 = vector.shape_cast %1 : vector<256x16xbf16> to vector<1x256x16xbf16>
    %21 = vector.shape_cast %20 : vector<1x256x16xbf16> to vector<1x256x16xbf16>
    %22 = vector.broadcast %21 : vector<1x256x16xbf16> to vector<12x256x16xbf16>
    "tpu.trace_start"() <{level = 10 : i32, message = "kbn,knt->kbt"}> : () -> ()
    %cst_11 = arith.constant dense<0.000000e+00> : vector<12x2x16xf32>
    %23 = tpu.matmul %19, %22, %cst_11 {dimension_numbers = #tpu.dot_dimension_numbers<[2], [1], [1], [2], [0, 0, 0, 1, 1, 2], [0], [0]>} : vector<12x2x256xbf16>, vector<12x256x16xbf16>, vector<12x2x16xf32> -> vector<12x2x16xf32>
    "tpu.trace_stop"() : () -> ()
    %cst_12 = arith.constant 9.99999974E-5 : f32
    %24 = vector.broadcast %cst_12 : f32 to vector<12x2x16xf32>
    %25 = arith.addf %23, %24 : vector<12x2x16xf32>
    %26 = math.log %25 : vector<12x2x16xf32>
    %c0_13 = arith.constant 0 : index
    %c0_14 = arith.constant 0 : index
    %c0_15 = arith.constant 0 : index
    %27 = vector.load %arg3[%c0_13, %c0_14, %c0_15] : memref<12x1x16xf32, #tpu.memory_space<vmem>>, vector<12x1x16xf32>
    %28 = vector.broadcast %27 : vector<12x1x16xf32> to vector<12x2x16xf32>
    %29 = arith.subf %26, %28 : vector<12x2x16xf32>
    %c0_16 = arith.constant 0 : index
    %c0_17 = arith.constant 0 : index
    %c0_18 = arith.constant 0 : index
    %30 = vector.load %arg4[%c0_16, %c0_17, %c0_18] : memref<12x1x16xf32, #tpu.memory_space<vmem>>, vector<12x1x16xf32>
    %31 = vector.broadcast %30 : vector<12x1x16xf32> to vector<12x2x16xf32>
    %32 = arith.mulf %29, %31 : vector<12x2x16xf32>
    %c0_19 = arith.constant 0 : index
    %c0_20 = arith.constant 0 : index
    %c0_21 = arith.constant 0 : index
    %33 = vector.load %arg6[%c0_19, %c0_20, %c0_21] : memref<12x2x16xf32, #tpu.memory_space<vmem>>, vector<12x2x16xf32>
    tpu.vector_store %arg6[%c0_19, %c0_20, %c0_21], %32 {strides = array<i32>} : memref<12x2x16xf32, #tpu.memory_space<vmem>>, vector<12x2x16xf32>,
    return
  }
}

</mosaic_0001>

<bundles_post_ra>
// kernel: tpu_custom_call.1
= control target key start
LH: loop header
LB: loop body
LE: loop exit
PB: predicated region body
PF: predicated region fallthrough
CT: control target
= control target key end

     0   :  { %12 = vsyncpa [#allocation3], 0  ;;  %s10130_s0 = inlined_call_operand.hbm [shape: bf16[2,256], index: 0, kind: input, shape index: {}]   ;;  %s10131_s1 = inlined_call_operand.hbm [shape: bf16[12,256,512], index: 1, kind: input, shape index: {}]   ;;  %s10132_s2 = inlined_call_operand.vmem [shape: bf16[256,16], index: 2, kind: input, shape index: {}]   ;;  %s10133_s3 = inlined_call_operand.hbm [shape: f32[12,1,16], index: 3, kind: input, shape index: {}]   ;;  %s10134_s4 = inlined_call_operand.hbm [shape: f32[12,1,16], index: 4, kind: input, shape index: {}]   ;;  %s10135_s5 = inlined_call_operand.hbm [shape: f32[2,16], index: 5, kind: output, shape index: {0}]   ;;  %s10136_s6 = inlined_call_operand.hbm [shape: f32[12,2,16], index: 6, kind: output, shape index: {1}]  }
   0x1   :  { %13 = vsyncpa [#allocation6], 0 }
   0x2   :  { %14 = vsyncpa [#allocation9], 0 }
   0x3   :  { %15 = vsyncpa [#allocation4], 0 }
   0x4   :  { %16 = vsyncpa [#allocation12], 0  ;;  %s9379_s21 = smov [#allocation5]   ;;  %s9237_s25 = scalar_lea.hbm %s10131_s1, 98304 }
   0x5   :  { %s32_s22 = sshll.u32 %s9379_s21, 4  ;;  %p9238_p0 = scmp.ne.s32.totalorder %s10131_s1, %s9237_s25  ;;  %s33_s22 = int_to_ptr.vmem [resolvable:$true] %s32_s22 }
   0x6   :  { %p9241_p1 = scmp.lt.u32.totalorder %s9237_s25, %s10131_s1 }
   0x8   :  { %p9243_p2 = pnand %p9241_p1, %p9238_p0 }
   0xa   :  { %9246 = shalt.err (!%p9243_p2)
}
   0xb   :  { %s9247_s30 = scalar_lea.vmem %s33_s22, 98304  ;;  %p9252_p4 = scmp.lt.s32.totalorder %s33_s22, %s33_s22 }
   0xc   :  { %p9248_p3 = scmp.ne.s32.totalorder %s33_s22, %s9247_s30  ;;  %p9253_p5 = scmp.lt.s32.totalorder %s9247_s30, %s9247_s30 }
   0xe   :  { %p9254_p6 = por %p9253_p5, %p9252_p4 }
  0x10   :  { %p9255_p7 = pnand %p9254_p6, %p9248_p3 }
  0x12   :  { %9258 = shalt.err (!%p9255_p7)
}
  0x13   :  { %s9380_s7 = smov 256   ;;  %s9381_s8 = smov 16  }
  0x14   :  { %38 = dma.hbm_to_vmem [thread:$0]  %s10131_s1, 98304, %s33_s22, [#allocation6], %s9380_s7, %s9380_s7, %s9381_s8  }
  0x15   :  { %s9382_s11 = smov [#allocation2]   ;;  %s9383_s13 = smov [#allocation7]  }
  0x16   :  { %s23_s12 = sshll.u32 %s9382_s11, 4  ;;  %s46_s14 = sshll.u32 %s9383_s13, 4  ;;  %s24_s12 = int_to_ptr.vmem [resolvable:$true] %s23_s12  ;;  %s47_s14 = int_to_ptr.vmem [resolvable:$true] %s46_s14 }
  0x17   :  { %s9259_s17 = scalar_lea.hbm %s10130_s0, 32 }
  0x18   :  { %p9260_p8 = scmp.ne.s32.totalorder %s10130_s0, %s9259_s17  ;;  %p9263_p9 = scmp.lt.u32.totalorder %s9259_s17, %s10130_s0 }
  0x1a   :  { %p9265_p10 = pnand %p9263_p9, %p9260_p8 }
  0x1c   :  { %9268 = shalt.err (!%p9265_p10)
}
  0x1d   :  { %s9269_s1 = scalar_lea.vmem %s24_s12, 32  ;;  %p9274_p12 = scmp.lt.s32.totalorder %s24_s12, %s24_s12 }
  0x1e   :  { %p9270_p11 = scmp.ne.s32.totalorder %s24_s12, %s9269_s1  ;;  %p9275_p13 = scmp.lt.s32.totalorder %s9269_s1, %s9269_s1 }
  0x20   :  { %p9276_p0 = por %p9275_p13, %p9274_p12 }
  0x22   :  { %p9277_p1 = pnand %p9276_p0, %p9270_p11 }
  0x24   :  { %9280 = shalt.err (!%p9277_p1)
}
  0x25   :  { %26 = dma.hbm_to_vmem [thread:$0]  %s10130_s0, 32, %s24_s12, [#allocation3]  }
  0x26   :  { %s9281_s26 = scalar_lea.hbm %s10133_s3, 192 }
  0x27   :  { %p9282_p2 = scmp.ne.s32.totalorder %s10133_s3, %s9281_s26  ;;  %p9285_p3 = scmp.lt.u32.totalorder %s9281_s26, %s10133_s3 }
  0x29   :  { %p9287_p4 = pnand %p9285_p3, %p9282_p2 }
  0x2b   :  { %9290 = shalt.err (!%p9287_p4)
}
  0x2c   :  { %s9291_s7 = scalar_lea.vmem %s47_s14, 192  ;;  %p9296_p6 = scmp.lt.s32.totalorder %s47_s14, %s47_s14 }
  0x2d   :  { %p9292_p5 = scmp.ne.s32.totalorder %s47_s14, %s9291_s7  ;;  %p9297_p7 = scmp.lt.s32.totalorder %s9291_s7, %s9291_s7 }
  0x2f   :  { %p9298_p8 = por %p9297_p7, %p9296_p6 }
  0x31   :  { %p9299_p9 = pnand %p9298_p8, %p9292_p5 }
  0x33   :  { %9302 = shalt.err (!%p9299_p9)
}
  0x34   :  { %s9384_s0 = smov 1   ;;  %s9385_s11 = smov [#allocation8]  }
  0x35   :  { %52 = dma.hbm_to_vmem [thread:$0]  %s10133_s3, 192, %s47_s14, [#allocation6], %s9381_s8, %s9381_s8, %s9384_s0  }
  0x36   :  { %s58_s12 = sshll.u32 %s9385_s11, 4  ;;  %s9303_s16 = scalar_lea.hbm %s10134_s4, 192  ;;  %s59_s12 = int_to_ptr.vmem [resolvable:$true] %s58_s12 }
  0x37   :  { %p9304_p10 = scmp.ne.s32.totalorder %s10134_s4, %s9303_s16  ;;  %p9307_p11 = scmp.lt.u32.totalorder %s9303_s16, %s10134_s4 }
  0x39   :  { %p9309_p12 = pnand %p9307_p11, %p9304_p10 }
  0x3b   :  { %9312 = shalt.err (!%p9309_p12)
}
  0x3c   :  { %s9313_s21 = scalar_lea.vmem %s59_s12, 192  ;;  %p9318_p0 = scmp.lt.s32.totalorder %s59_s12, %s59_s12 }
  0x3d   :  { %p9314_p13 = scmp.ne.s32.totalorder %s59_s12, %s9313_s21  ;;  %p9319_p1 = scmp.lt.s32.totalorder %s9313_s21, %s9313_s21 }
  0x3f   :  { %p9320_p2 = por %p9319_p1, %p9318_p0 }
  0x41   :  { %p9321_p3 = pnand %p9320_p2, %p9314_p13 }
  0x43   :  { %9324 = shalt.err (!%p9321_p3)
}
  0x44   :  { %64 = dma.hbm_to_vmem [thread:$0]  %s10134_s4, 192, %s59_s12, [#allocation9], %s9381_s8, %s9381_s8, %s9384_s0  }
  0x45   :  { %9369 = dma.done.wait [#allocation3], 32  }
  0x46   :  { %9370 = vsyncadd [#allocation3], 4294967264 }
  0x47   :  { %9371 = dma.done.wait [#allocation6], 98496  }
  0x48   :  { %9372 = vsyncadd [#allocation6], 4294868800 }
  0x49   :  { %9373 = dma.done.wait [#allocation9], 192  }
  0x4a   :  { %9374 = vsyncadd [#allocation9], 4294967104  ;;  %v7981_v0 = vld [vmem:[%s10132_s2 + $0x40] sm:$0xff]   ;;  %v7986_v4 = vld [vmem:[%s10132_s2 + $0x48] sm:$0xff]   ;;  %v123_v21 = vlaneseq  ;;  %v9386_v23 = vmov 1966171168  }
  0x4b   :  { %v7982_v1 = vld [vmem:[#allocation5 + $0x4] ss:$16 sps:$4 sm:$0xff]   ;;  %7683 = vmatprep.subr.bf16.mxu0 %v7981_v0  ;;  %v7985_v3 = vld [vmem:[#allocation5] ss:$16 sps:$4 sm:$0xff]   ;;  %v121_v24 = vunpack.c.l.s4 %v9386_v23  ;;  %v8025_v40 = vld [vmem:[#allocation5 + $0xc] ss:$16 sps:$4 sm:$0xff]  }
  0x4c   :  { %v7984_v2 = vld [vmem:[%s10132_s2] sm:$0xff]   ;;  %1364 = vmatprep.subr.bf16.mxu1 %v7982_v1  ;;  %v7989_v6 = vld [vmem:[%s10132_s2 + $0x8] sm:$0xff]   ;;  %v7991_v8 = vld [vmem:[%s10132_s2 + $0x50] sm:$0xff]   ;;  %v124_v28 = vshrl.u32 %v123_v21, 7  ;;  %vm274_vm0 = vcmask 123904  }
  0x4d   :  { %7684 = vmatpush3.bf16.msra.mxu0 %v7984_v2  ;;  %1365 = vmatpush1.bf16.msra.mxu1 %v7985_v3  ;;  %v7987_v5 = vld [vmem:[#allocation5 + $0x24] ss:$16 sps:$4 sm:$0xff]   ;;  %v7990_v7 = vld [vmem:[#allocation5 + $0x20] ss:$16 sps:$4 sm:$0xff]   ;;  %v122_v30 = vunpack.c.0.s8 %v121_v24  ;;  %v8023_v44 = vld [vmem:[#allocation5 + $0x8] ss:$16 sps:$4 sm:$0xff]  }
  0x4e   :  { %7685 = vmatprep.subr.bf16.mxu0 %v7986_v4  ;;  %1366 = vmatprep.subr.bf16.mxu1 %v7987_v5  ;;  %v7992_v9 = vld [vmem:[#allocation5 + $0x44] ss:$16 sps:$4 sm:$0xff]   ;;  %v7995_v11 = vld [vmem:[#allocation5 + $0x40] ss:$16 sps:$4 sm:$0xff]   ;;  %v8031_v46 = vld [vmem:[#allocation5 + $0x2c] ss:$16 sps:$4 sm:$0xff]  }
  0x4f   :  { %v7994_v10 = vld [vmem:[%s10132_s2 + $0x10] sm:$0xff]   ;;  %v7996_v12 = vld [vmem:[%s10132_s2 + $0x58] sm:$0xff]   ;;  %v8001_v16 = vld [vmem:[%s10132_s2 + $0x60] sm:$0xff]   ;;  %v125_v35 = vsub.s32 %v122_v30, %v124_v28 }
  0x50   :  { %v7997_v13 = vld [vmem:[#allocation5 + $0x64] ss:$16 sps:$4 sm:$0xff]   ;;  %v8000_v15 = vld [vmem:[#allocation5 + $0x60] ss:$16 sps:$4 sm:$0xff]   ;;  %v8029_v48 = vld [vmem:[#allocation5 + $0x28] ss:$16 sps:$4 sm:$0xff]  }
  0x51   :  { %7686 = vmatpush3.bf16.msra.mxu0 %v7989_v6  ;;  %1367 = vmatpush1.bf16.msra.mxu1 %v7990_v7  ;;  %v7999_v14 = vld [vmem:[%s10132_s2 + $0x18] sm:$0xff]   ;;  %v8004_v18 = vld [vmem:[%s10132_s2 + $0x20] sm:$0xff]   ;;  %v8006_v20 = vld [vmem:[%s10132_s2 + $0x68] sm:$0xff]  }
  0x52   :  { %7687 = vmatprep.subr.bf16.mxu0 %v7991_v8  ;;  %1368 = vmatprep.subr.bf16.mxu1 %v7992_v9  ;;  %v8002_v17 = vld [vmem:[#allocation5 + $0x84] ss:$16 sps:$4 sm:$0xff]   ;;  %v8005_v19 = vld [vmem:[#allocation5 + $0x80] ss:$16 sps:$4 sm:$0xff]   ;;  %v8037_v50 = vld [vmem:[#allocation5 + $0x4c] ss:$16 sps:$4 sm:$0xff]  }
  0x53   :  { %v8007_v22 = vld [vmem:[#allocation5 + $0xa4] ss:$16 sps:$4 sm:$0xff]   ;;  %v8010_v26 = vld [vmem:[#allocation5 + $0xa0] ss:$16 sps:$4 sm:$0xff]   ;;  %v8035_v52 = vld [vmem:[#allocation5 + $0x48] ss:$16 sps:$4 sm:$0xff]  }
  0x54   :  { %v8009_v25 = vld [vmem:[%s10132_s2 + $0x28] sm:$0xff]   ;;  %v8011_v27 = vld [vmem:[%s10132_s2 + $0x70] sm:$0xff]   ;;  %v8016_v33 = vld [vmem:[%s10132_s2 + $0x78] sm:$0xff]  }
  0x55   :  { %7688 = vmatpush3.bf16.msra.mxu0 %v7994_v10  ;;  %1369 = vmatpush1.bf16.msra.mxu1 %v7995_v11  ;;  %v8012_v29 = vld [vmem:[#allocation5 + $0xc4] ss:$16 sps:$4 sm:$0xff]   ;;  %v8015_v32 = vld [vmem:[#allocation5 + $0xc0] ss:$16 sps:$4 sm:$0xff]   ;;  %v8043_v54 = vld [vmem:[#allocation5 + $0x6c] ss:$16 sps:$4 sm:$0xff]  }
  0x56   :  { %7689 = vmatprep.subr.bf16.mxu0 %v7996_v12  ;;  %1370 = vmatprep.subr.bf16.mxu1 %v7997_v13  ;;  %v8014_v31 = vld [vmem:[%s10132_s2 + $0x30] sm:$0xff]   ;;  %v6873_v36 = vld.sshfl [vmem:[#allocation2] sm:$0x11 pattern:$0x75316420]  ;;  %v8019_v37 = vld [vmem:[%s10132_s2 + $0x38] sm:$0xff]  }
  0x57   :  { %v8017_v34 = vld [vmem:[#allocation5 + $0xe4] ss:$16 sps:$4 sm:$0xff]   ;;  %v119_v38 = vcombine.high %v6873_v36, %v6873_v36  ;;  %v8020_v39 = vld [vmem:[#allocation5 + $0xe0] ss:$16 sps:$4 sm:$0xff]   ;;  %v9529_v43 = vrot.slane %v6873_v36, %v125_v35  ;;  %v8041_v56 = vld [vmem:[#allocation5 + $0x68] ss:$16 sps:$4 sm:$0xff]  }
  0x58   :  { %v8021_v42 = vld [vmem:[#allocation5 + $0x104] ss:$16 sps:$4 sm:$0xff]   ;;  %v8026_v45 = vld [vmem:[#allocation5 + $0x100] ss:$16 sps:$4 sm:$0xff]   ;;  %v8049_v58 = vld [vmem:[#allocation5 + $0x8c] ss:$16 sps:$4 sm:$0xff]  }
  0x59   :  { %7690 = vmatpush3.bf16.msra.mxu0 %v7999_v14  ;;  %1371 = vmatpush1.bf16.msra.mxu1 %v8000_v15  ;;  %v9527_v41 = vrot.slane %v119_v38, %v125_v35  ;;  %v8027_v47 = vld [vmem:[#allocation5 + $0x124] ss:$16 sps:$4 sm:$0xff]   ;;  %v8032_v49 = vld [vmem:[#allocation5 + $0x120] ss:$16 sps:$4 sm:$0xff]   ;;  %v8047_v60 = vld [vmem:[#allocation5 + $0x88] ss:$16 sps:$4 sm:$0xff]  }
  0x5a   :  { %7691 = vmatprep.subr.bf16.mxu0 %v8001_v16  ;;  %1372 = vmatprep.subr.bf16.mxu1 %v8002_v17  ;;  %v8033_v51 = vld [vmem:[#allocation5 + $0x144] ss:$16 sps:$4 sm:$0xff]   ;;  %v8038_v53 = vld [vmem:[#allocation5 + $0x140] ss:$16 sps:$4 sm:$0xff]   ;;  %v8055_v62 = vld [vmem:[#allocation5 + $0xac] ss:$16 sps:$4 sm:$0xff]  }
  0x5b   :  { %264 = vmatprep.mubr.bf16.mxu0 %v9527_v41  ;;  %1396 = vmatprep.mubr.bf16.mxu1 %v9527_v41  ;;  %v8039_v55 = vld [vmem:[#allocation5 + $0x164] ss:$16 sps:$4 sm:$0xff]   ;;  %v8044_v57 = vld [vmem:[#allocation5 + $0x160] ss:$16 sps:$4 sm:$0xff]   ;;  %v8053_v0 = vld [vmem:[#allocation5 + $0xa8] ss:$16 sps:$4 sm:$0xff]  }
  0x5c   :  { %v8045_v59 = vld [vmem:[#allocation5 + $0x184] ss:$16 sps:$4 sm:$0xff]   ;;  %v8050_v61 = vld [vmem:[#allocation5 + $0x180] ss:$16 sps:$4 sm:$0xff]   ;;  %v8061_v2 = vld [vmem:[#allocation5 + $0xcc] ss:$16 sps:$4 sm:$0xff]  }
  0x5d   :  { %7692 = vmatpush3.bf16.msra.mxu0 %v8004_v18  ;;  %1373 = vmatpush1.bf16.msra.mxu1 %v8005_v19  ;;  %v8051_v63 = vld [vmem:[#allocation5 + $0x1a4] ss:$16 sps:$4 sm:$0xff]   ;;  %v8056_v1 = vld [vmem:[#allocation5 + $0x1a0] ss:$16 sps:$4 sm:$0xff]   ;;  %v8059_v4 = vld [vmem:[#allocation5 + $0xc8] ss:$16 sps:$4 sm:$0xff]  }
  0x5e   :  { %7693 = vmatprep.subr.bf16.mxu0 %v8006_v20  ;;  %1374 = vmatprep.subr.bf16.mxu1 %v8007_v22  ;;  %v8057_v3 = vld [vmem:[#allocation5 + $0x1c4] ss:$16 sps:$4 sm:$0xff]   ;;  %v8062_v5 = vld [vmem:[#allocation5 + $0x1c0] ss:$16 sps:$4 sm:$0xff]   ;;  %v8067_v6 = vld [vmem:[#allocation5 + $0xec] ss:$16 sps:$4 sm:$0xff]  }
  0x5f   :  { %v8063_v7 = vld [vmem:[#allocation5 + $0x1e4] ss:$16 sps:$4 sm:$0xff]   ;;  %v8065_v8 = vld [vmem:[#allocation5 + $0xe8] ss:$16 sps:$4 sm:$0xff]   ;;  %v8068_v9 = vld [vmem:[#allocation5 + $0x1e0] ss:$16 sps:$4 sm:$0xff]  }
  0x60   :  { %v8071_v10 = vld [vmem:[#allocation5 + $0x10c] ss:$16 sps:$4 sm:$0xff]   ;;  %v8074_v11 = vld [vmem:[#allocation5 + $0x204] ss:$16 sps:$4 sm:$0xff]   ;;  %v8069_v12 = vld [vmem:[#allocation5 + $0x108] ss:$16 sps:$4 sm:$0xff]  }
  0x61   :  { %7694 = vmatpush3.bf16.msra.mxu0 %v8009_v25  ;;  %1375 = vmatpush1.bf16.msra.mxu1 %v8010_v26  ;;  %v8072_v13 = vld [vmem:[#allocation5 + $0x200] ss:$16 sps:$4 sm:$0xff]   ;;  %v8077_v14 = vld [vmem:[#allocation5 + $0x12c] ss:$16 sps:$4 sm:$0xff]   ;;  %v8080_v15 = vld [vmem:[#allocation5 + $0x224] ss:$16 sps:$4 sm:$0xff]  }
  0x62   :  { %7695 = vmatprep.subr.bf16.mxu0 %v8011_v27  ;;  %1376 = vmatprep.subr.bf16.mxu1 %v8012_v29  ;;  %v8075_v16 = vld [vmem:[#allocation5 + $0x128] ss:$16 sps:$4 sm:$0xff]   ;;  %v8078_v17 = vld [vmem:[#allocation5 + $0x220] ss:$16 sps:$4 sm:$0xff]   ;;  %v8083_v18 = vld [vmem:[#allocation5 + $0x14c] ss:$16 sps:$4 sm:$0xff]  }
  0x63   :  { %v8086_v19 = vld [vmem:[#allocation5 + $0x244] ss:$16 sps:$4 sm:$0xff]   ;;  %v8081_v20 = vld [vmem:[#allocation5 + $0x148] ss:$16 sps:$4 sm:$0xff]   ;;  %v8084_v21 = vld [vmem:[#allocation5 + $0x240] ss:$16 sps:$4 sm:$0xff]  }
  0x64   :  { %v8089_v22 = vld [vmem:[#allocation5 + $0x16c] ss:$16 sps:$4 sm:$0xff]   ;;  %v8092_v23 = vld [vmem:[#allocation5 + $0x264] ss:$16 sps:$4 sm:$0xff]   ;;  %v8087_v24 = vld [vmem:[#allocation5 + $0x168] ss:$16 sps:$4 sm:$0xff]  }
  0x65   :  { %7696 = vmatpush3.bf16.msra.mxu0 %v8014_v31  ;;  %1377 = vmatpush1.bf16.msra.mxu1 %v8015_v32  ;;  %v8090_v25 = vld [vmem:[#allocation5 + $0x260] ss:$16 sps:$4 sm:$0xff]   ;;  %v8095_v26 = vld [vmem:[#allocation5 + $0x18c] ss:$16 sps:$4 sm:$0xff]   ;;  %v8098_v27 = vld [vmem:[#allocation5 + $0x284] ss:$16 sps:$4 sm:$0xff]  }
  0x66   :  { %7697 = vmatprep.subr.bf16.mxu0 %v8016_v33  ;;  %1378 = vmatprep.subr.bf16.mxu1 %v8017_v34  ;;  %v8093_v28 = vld [vmem:[#allocation5 + $0x188] ss:$16 sps:$4 sm:$0xff]   ;;  %v8096_v29 = vld [vmem:[#allocation5 + $0x280] ss:$16 sps:$4 sm:$0xff]   ;;  %v8101_v30 = vld [vmem:[#allocation5 + $0x1ac] ss:$16 sps:$4 sm:$0xff]  }
  0x67   :  { %v8104_v31 = vld [vmem:[#allocation5 + $0x2a4] ss:$16 sps:$4 sm:$0xff]   ;;  %v8099_v32 = vld [vmem:[#allocation5 + $0x1a8] ss:$16 sps:$4 sm:$0xff]   ;;  %v8102_v33 = vld [vmem:[#allocation5 + $0x2a0] ss:$16 sps:$4 sm:$0xff]  }
  0x68   :  { %v8107_v34 = vld [vmem:[#allocation5 + $0x1cc] ss:$16 sps:$4 sm:$0xff]   ;;  %v8110_v35 = vld [vmem:[#allocation5 + $0x2c4] ss:$16 sps:$4 sm:$0xff]   ;;  %v8105_v36 = vld [vmem:[#allocation5 + $0x1c8] ss:$16 sps:$4 sm:$0xff]  }
  0x69   :  { %7698 = vmatpush3.bf16.msra.mxu0 %v8019_v37  ;;  %1379 = vmatpush1.bf16.msra.mxu1 %v8020_v39  ;;  %v8108_v37 = vld [vmem:[#allocation5 + $0x2c0] ss:$16 sps:$4 sm:$0xff]   ;;  %v8113_v38 = vld [vmem:[#allocation5 + $0x1ec] ss:$16 sps:$4 sm:$0xff]   ;;  %v8116_v39 = vld [vmem:[#allocation5 + $0x2e4] ss:$16 sps:$4 sm:$0xff]  }
  0x6a   :  { %1405 = vmatprep.subr.bf16.mxu0 %v8025_v40  ;;  %1380 = vmatprep.subr.bf16.mxu1 %v8021_v42  ;;  %v8111_v40 = vld [vmem:[#allocation5 + $0x1e8] ss:$16 sps:$4 sm:$0xff]   ;;  %v8114_v42 = vld [vmem:[#allocation5 + $0x2e0] ss:$16 sps:$4 sm:$0xff]  }
  0x6c   :  { %265 = vmatmul.mubr.bf16.vlgmr.msra.gmra.mrb[0].mxu0 %v9529_v43 }
  0x6d   :  { %1406 = vmatpush1.bf16.msra.mxu0 %v8023_v44  ;;  %1437 = vmatprep.mubr.bf16.mxu0 %v9527_v41  ;;  %v8122_v44 = vld [vmem:[#allocation5 + $0x20c] ss:$16 sps:$4 sm:$0xff]  }
  0x6e   :  { %1381 = vmatpush1.bf16.msra.mxu1 %v8026_v45  ;;  %1407 = vmatprep.subr.bf16.mxu0 %v8031_v46  ;;  %v8119_v45 = vld [vmem:[#allocation5 + $0x304] ss:$16 sps:$4 sm:$0xff]   ;;  %v8120_v46 = vld [vmem:[#allocation5 + $0x208] ss:$16 sps:$4 sm:$0xff]  }
  0x6f   :  { %1382 = vmatprep.subr.bf16.mxu1 %v8027_v47  ;;  %v8117_v47 = vld [vmem:[#allocation5 + $0x300] ss:$16 sps:$4 sm:$0xff]  }
  0x71   :  { %1408 = vmatpush1.bf16.msra.mxu0 %v8029_v48  ;;  %v8128_v48 = vld [vmem:[#allocation5 + $0x22c] ss:$16 sps:$4 sm:$0xff]  }
  0x72   :  { %1383 = vmatpush1.bf16.msra.mxu1 %v8032_v49  ;;  %1409 = vmatprep.subr.bf16.mxu0 %v8037_v50  ;;  %v8125_v49 = vld [vmem:[#allocation5 + $0x324] ss:$16 sps:$4 sm:$0xff]   ;;  %v8126_v50 = vld [vmem:[#allocation5 + $0x228] ss:$16 sps:$4 sm:$0xff]  }
  0x73   :  { %1384 = vmatprep.subr.bf16.mxu1 %v8033_v51  ;;  %v8123_v51 = vld [vmem:[#allocation5 + $0x320] ss:$16 sps:$4 sm:$0xff]  }
  0x75   :  { %1410 = vmatpush1.bf16.msra.mxu0 %v8035_v52  ;;  %v8134_v52 = vld [vmem:[#allocation5 + $0x24c] ss:$16 sps:$4 sm:$0xff]  }
  0x76   :  { %1385 = vmatpush1.bf16.msra.mxu1 %v8038_v53  ;;  %1411 = vmatprep.subr.bf16.mxu0 %v8043_v54  ;;  %v8131_v53 = vld [vmem:[#allocation5 + $0x344] ss:$16 sps:$4 sm:$0xff]   ;;  %v8132_v54 = vld [vmem:[#allocation5 + $0x248] ss:$16 sps:$4 sm:$0xff]  }
  0x77   :  { %1386 = vmatprep.subr.bf16.mxu1 %v8039_v55  ;;  %v8129_v55 = vld [vmem:[#allocation5 + $0x340] ss:$16 sps:$4 sm:$0xff]  }
  0x79   :  { %1412 = vmatpush1.bf16.msra.mxu0 %v8041_v56  ;;  %v8140_v56 = vld [vmem:[#allocation5 + $0x26c] ss:$16 sps:$4 sm:$0xff]  }
  0x7a   :  { %1387 = vmatpush1.bf16.msra.mxu1 %v8044_v57  ;;  %1413 = vmatprep.subr.bf16.mxu0 %v8049_v58  ;;  %v8137_v57 = vld [vmem:[#allocation5 + $0x364] ss:$16 sps:$4 sm:$0xff]   ;;  %v8138_v58 = vld [vmem:[#allocation5 + $0x268] ss:$16 sps:$4 sm:$0xff]  }
  0x7b   :  { %1388 = vmatprep.subr.bf16.mxu1 %v8045_v59  ;;  %v8135_v59 = vld [vmem:[#allocation5 + $0x360] ss:$16 sps:$4 sm:$0xff]  }
  0x7d   :  { %1414 = vmatpush1.bf16.msra.mxu0 %v8047_v60  ;;  %v8146_v60 = vld [vmem:[#allocation5 + $0x28c] ss:$16 sps:$4 sm:$0xff]  }
  0x7e   :  { %1389 = vmatpush1.bf16.msra.mxu1 %v8050_v61  ;;  %1415 = vmatprep.subr.bf16.mxu0 %v8055_v62  ;;  %v8143_v61 = vld [vmem:[#allocation5 + $0x384] ss:$16 sps:$4 sm:$0xff]   ;;  %v8144_v62 = vld [vmem:[#allocation5 + $0x288] ss:$16 sps:$4 sm:$0xff]  }
  0x7f   :  { %1390 = vmatprep.subr.bf16.mxu1 %v8051_v63  ;;  %v8141_v63 = vld [vmem:[#allocation5 + $0x380] ss:$16 sps:$4 sm:$0xff]  }
  0x81   :  { %1416 = vmatpush1.bf16.msra.mxu0 %v8053_v0  ;;  %v8152_v0 = vld [vmem:[#allocation5 + $0x2ac] ss:$16 sps:$4 sm:$0xff]  }
  0x82   :  { %1391 = vmatpush1.bf16.msra.mxu1 %v8056_v1  ;;  %1417 = vmatprep.subr.bf16.mxu0 %v8061_v2  ;;  %v8149_v1 = vld [vmem:[#allocation5 + $0x3a4] ss:$16 sps:$4 sm:$0xff]   ;;  %v8150_v2 = vld [vmem:[#allocation5 + $0x2a8] ss:$16 sps:$4 sm:$0xff]  }
  0x83   :  { %1392 = vmatprep.subr.bf16.mxu1 %v8057_v3  ;;  %v8147_v3 = vld [vmem:[#allocation5 + $0x3a0] ss:$16 sps:$4 sm:$0xff]  }
  0x85   :  { %1418 = vmatpush1.bf16.msra.mxu0 %v8059_v4  ;;  %v8158_v4 = vld [vmem:[#allocation5 + $0x2cc] ss:$16 sps:$4 sm:$0xff]  }
  0x86   :  { %1393 = vmatpush1.bf16.msra.mxu1 %v8062_v5  ;;  %1419 = vmatprep.subr.bf16.mxu0 %v8067_v6  ;;  %v8155_v5 = vld [vmem:[#allocation5 + $0x3c4] ss:$16 sps:$4 sm:$0xff]   ;;  %v8156_v6 = vld [vmem:[#allocation5 + $0x2c8] ss:$16 sps:$4 sm:$0xff]  }
  0x87   :  { %1394 = vmatprep.subr.bf16.mxu1 %v8063_v7  ;;  %v8153_v7 = vld [vmem:[#allocation5 + $0x3c0] ss:$16 sps:$4 sm:$0xff]  }
  0x89   :  { %1420 = vmatpush1.bf16.msra.mxu0 %v8065_v8  ;;  %v8164_v8 = vld [vmem:[#allocation5 + $0x2ec] ss:$16 sps:$4 sm:$0xff]  }
  0x8a   :  { %1395 = vmatpush1.bf16.msra.mxu1 %v8068_v9  ;;  %1421 = vmatprep.subr.bf16.mxu0 %v8071_v10  ;;  %v8161_v9 = vld [vmem:[#allocation5 + $0x3e4] ss:$16 sps:$4 sm:$0xff]   ;;  %v8162_v10 = vld [vmem:[#allocation5 + $0x2e8] ss:$16 sps:$4 sm:$0xff]  }
  0x8b   :  { %1766 = vmatprep.subr.bf16.mxu1 %v8074_v11  ;;  %v8159_v11 = vld [vmem:[#allocation5 + $0x3e0] ss:$16 sps:$4 sm:$0xff]  }
  0x8d   :  { %1397 = vmatmul.mubr.bf16.vlgmr.msra.gmra.mrb[0].mxu1 %v9529_v43  ;;  %1422 = vmatpush1.bf16.msra.mxu0 %v8069_v12  ;;  %v8167_v12 = vld [vmem:[#allocation5 + $0x30c] ss:$16 sps:$4 sm:$0xff]  }
  0x8e   :  { %1767 = vmatpush1.bf16.msra.mxu1 %v8072_v13  ;;  %1423 = vmatprep.subr.bf16.mxu0 %v8077_v14  ;;  %v8170_v13 = vld [vmem:[#allocation5 + $0x404] ss:$16 sps:$4 sm:$0xff]   ;;  %v8165_v14 = vld [vmem:[#allocation5 + $0x308] ss:$16 sps:$4 sm:$0xff]  }
  0x8f   :  { %1768 = vmatprep.subr.bf16.mxu1 %v8080_v15  ;;  %1798 = vmatprep.mubr.bf16.mxu1 %v9527_v41  ;;  %v8168_v15 = vld [vmem:[#allocation5 + $0x400] ss:$16 sps:$4 sm:$0xff]  }
  0x91   :  { %1424 = vmatpush1.bf16.msra.mxu0 %v8075_v16  ;;  %v8173_v16 = vld [vmem:[#allocation5 + $0x32c] ss:$16 sps:$4 sm:$0xff]  }
  0x92   :  { %1769 = vmatpush1.bf16.msra.mxu1 %v8078_v17  ;;  %1425 = vmatprep.subr.bf16.mxu0 %v8083_v18  ;;  %v8176_v17 = vld [vmem:[#allocation5 + $0x424] ss:$16 sps:$4 sm:$0xff]   ;;  %v8171_v18 = vld [vmem:[#allocation5 + $0x328] ss:$16 sps:$4 sm:$0xff]  }
  0x93   :  { %1770 = vmatprep.subr.bf16.mxu1 %v8086_v19  ;;  %v8174_v19 = vld [vmem:[#allocation5 + $0x420] ss:$16 sps:$4 sm:$0xff]  }
  0x95   :  { %1426 = vmatpush1.bf16.msra.mxu0 %v8081_v20  ;;  %v8179_v20 = vld [vmem:[#allocation5 + $0x34c] ss:$16 sps:$4 sm:$0xff]  }
  0x96   :  { %1771 = vmatpush1.bf16.msra.mxu1 %v8084_v21  ;;  %1427 = vmatprep.subr.bf16.mxu0 %v8089_v22  ;;  %v8182_v21 = vld [vmem:[#allocation5 + $0x444] ss:$16 sps:$4 sm:$0xff]   ;;  %v8177_v22 = vld [vmem:[#allocation5 + $0x348] ss:$16 sps:$4 sm:$0xff]  }
  0x97   :  { %1772 = vmatprep.subr.bf16.mxu1 %v8092_v23  ;;  %v8180_v23 = vld [vmem:[#allocation5 + $0x440] ss:$16 sps:$4 sm:$0xff]  }
  0x99   :  { %1428 = vmatpush1.bf16.msra.mxu0 %v8087_v24  ;;  %v8185_v24 = vld [vmem:[#allocation5 + $0x36c] ss:$16 sps:$4 sm:$0xff]  }
  0x9a   :  { %1773 = vmatpush1.bf16.msra.mxu1 %v8090_v25  ;;  %1429 = vmatprep.subr.bf16.mxu0 %v8095_v26  ;;  %v8188_v25 = vld [vmem:[#allocation5 + $0x464] ss:$16 sps:$4 sm:$0xff]   ;;  %v8183_v26 = vld [vmem:[#allocation5 + $0x368] ss:$16 sps:$4 sm:$0xff]  }
  0x9b   :  { %1774 = vmatprep.subr.bf16.mxu1 %v8098_v27  ;;  %v8186_v27 = vld [vmem:[#allocation5 + $0x460] ss:$16 sps:$4 sm:$0xff]  }
  0x9d   :  { %1430 = vmatpush1.bf16.msra.mxu0 %v8093_v28  ;;  %v8191_v28 = vld [vmem:[#allocation5 + $0x38c] ss:$16 sps:$4 sm:$0xff]  }
  0x9e   :  { %1775 = vmatpush1.bf16.msra.mxu1 %v8096_v29  ;;  %1431 = vmatprep.subr.bf16.mxu0 %v8101_v30  ;;  %v8194_v29 = vld [vmem:[#allocation5 + $0x484] ss:$16 sps:$4 sm:$0xff]   ;;  %v8189_v30 = vld [vmem:[#allocation5 + $0x388] ss:$16 sps:$4 sm:$0xff]  }
  0x9f   :  { %1776 = vmatprep.subr.bf16.mxu1 %v8104_v31  ;;  %v8192_v31 = vld [vmem:[#allocation5 + $0x480] ss:$16 sps:$4 sm:$0xff]  }
  0xa1   :  { %1432 = vmatpush1.bf16.msra.mxu0 %v8099_v32  ;;  %v8197_v32 = vld [vmem:[#allocation5 + $0x3ac] ss:$16 sps:$4 sm:$0xff]  }
  0xa2   :  { %1777 = vmatpush1.bf16.msra.mxu1 %v8102_v33  ;;  %1433 = vmatprep.subr.bf16.mxu0 %v8107_v34  ;;  %v8200_v33 = vld [vmem:[#allocation5 + $0x4a4] ss:$16 sps:$4 sm:$0xff]   ;;  %v8195_v34 = vld [vmem:[#allocation5 + $0x3a8] ss:$16 sps:$4 sm:$0xff]  }
  0xa3   :  { %1778 = vmatprep.subr.bf16.mxu1 %v8110_v35  ;;  %v8198_v35 = vld [vmem:[#allocation5 + $0x4a0] ss:$16 sps:$4 sm:$0xff]  }
  0xa5   :  { %1434 = vmatpush1.bf16.msra.mxu0 %v8105_v36  ;;  %v8203_v36 = vld [vmem:[#allocation5 + $0x3cc] ss:$16 sps:$4 sm:$0xff]  }
  0xa6   :  { %1779 = vmatpush1.bf16.msra.mxu1 %v8108_v37  ;;  %1435 = vmatprep.subr.bf16.mxu0 %v8113_v38  ;;  %v8206_v37 = vld [vmem:[#allocation5 + $0x4c4] ss:$16 sps:$4 sm:$0xff]   ;;  %v8201_v38 = vld [vmem:[#allocation5 + $0x3c8] ss:$16 sps:$4 sm:$0xff]  }
  0xa7   :  { %1780 = vmatprep.subr.bf16.mxu1 %v8116_v39  ;;  %v8204_v39 = vld [vmem:[#allocation5 + $0x4c0] ss:$16 sps:$4 sm:$0xff]  }
  0xa9   :  { %1436 = vmatpush1.bf16.msra.mxu0 %v8111_v40  ;;  %v8209_v40 = vld [vmem:[#allocation5 + $0x3ec] ss:$16 sps:$4 sm:$0xff]  }
  0xaa   :  { %1781 = vmatpush1.bf16.msra.mxu1 %v8114_v42  ;;  %1807 = vmatprep.subr.bf16.mxu0 %v8122_v44  ;;  %v8212_v42 = vld [vmem:[#allocation5 + $0x4e4] ss:$16 sps:$4 sm:$0xff]   ;;  %v8207_v44 = vld [vmem:[#allocation5 + $0x3e8] ss:$16 sps:$4 sm:$0xff]  }
  0xab   :  { %1782 = vmatprep.subr.bf16.mxu1 %v8119_v45  ;;  %v8210_v45 = vld [vmem:[#allocation5 + $0x4e0] ss:$16 sps:$4 sm:$0xff]  }
  0xac   :  { %1438 = vmatmul.mubr.bf16.vlgmr.msra.gmra.mrb[4].mxu0 %v9529_v43 }
  0xad   :  { %1808 = vmatpush1.bf16.msra.mxu0 %v8120_v46  ;;  %1839 = vmatprep.mubr.bf16.mxu0 %v9527_v41  ;;  %v8218_v46 = vld [vmem:[#allocation5 + $0x40c] ss:$16 sps:$4 sm:$0xff]  }
  0xae   :  { %1783 = vmatpush1.bf16.msra.mxu1 %v8117_v47  ;;  %1809 = vmatprep.subr.bf16.mxu0 %v8128_v48  ;;  %v8215_v47 = vld [vmem:[#allocation5 + $0x504] ss:$16 sps:$4 sm:$0xff]   ;;  %v8216_v48 = vld [vmem:[#allocation5 + $0x408] ss:$16 sps:$4 sm:$0xff]  }
  0xaf   :  { %1784 = vmatprep.subr.bf16.mxu1 %v8125_v49  ;;  %v8213_v49 = vld [vmem:[#allocation5 + $0x500] ss:$16 sps:$4 sm:$0xff]  }
  0xb1   :  { %1810 = vmatpush1.bf16.msra.mxu0 %v8126_v50  ;;  %v8224_v50 = vld [vmem:[#allocation5 + $0x42c] ss:$16 sps:$4 sm:$0xff]  }
  0xb2   :  { %1785 = vmatpush1.bf16.msra.mxu1 %v8123_v51  ;;  %1811 = vmatprep.subr.bf16.mxu0 %v8134_v52  ;;  %v8221_v51 = vld [vmem:[#allocation5 + $0x524] ss:$16 sps:$4 sm:$0xff]   ;;  %v8222_v52 = vld [vmem:[#allocation5 + $0x428] ss:$16 sps:$4 sm:$0xff]  }
  0xb3   :  { %1786 = vmatprep.subr.bf16.mxu1 %v8131_v53  ;;  %v8219_v53 = vld [vmem:[#allocation5 + $0x520] ss:$16 sps:$4 sm:$0xff]  }
  0xb5   :  { %1812 = vmatpush1.bf16.msra.mxu0 %v8132_v54  ;;  %v8230_v54 = vld [vmem:[#allocation5 + $0x44c] ss:$16 sps:$4 sm:$0xff]  }
  0xb6   :  { %1787 = vmatpush1.bf16.msra.mxu1 %v8129_v55  ;;  %1813 = vmatprep.subr.bf16.mxu0 %v8140_v56  ;;  %v8227_v55 = vld [vmem:[#allocation5 + $0x544] ss:$16 sps:$4 sm:$0xff]   ;;  %v8228_v56 = vld [vmem:[#allocation5 + $0x448] ss:$16 sps:$4 sm:$0xff]  }
  0xb7   :  { %1788 = vmatprep.subr.bf16.mxu1 %v8137_v57  ;;  %v8225_v57 = vld [vmem:[#allocation5 + $0x540] ss:$16 sps:$4 sm:$0xff]  }
  0xb9   :  { %1814 = vmatpush1.bf16.msra.mxu0 %v8138_v58  ;;  %v8236_v58 = vld [vmem:[#allocation5 + $0x46c] ss:$16 sps:$4 sm:$0xff]  }
  0xba   :  { %1789 = vmatpush1.bf16.msra.mxu1 %v8135_v59  ;;  %1815 = vmatprep.subr.bf16.mxu0 %v8146_v60  ;;  %v8233_v59 = vld [vmem:[#allocation5 + $0x564] ss:$16 sps:$4 sm:$0xff]   ;;  %v8234_v60 = vld [vmem:[#allocation5 + $0x468] ss:$16 sps:$4 sm:$0xff]  }
  0xbb   :  { %1790 = vmatprep.subr.bf16.mxu1 %v8143_v61  ;;  %v8231_v61 = vld [vmem:[#allocation5 + $0x560] ss:$16 sps:$4 sm:$0xff]  }
  0xbd   :  { %1816 = vmatpush1.bf16.msra.mxu0 %v8144_v62  ;;  %v8242_v62 = vld [vmem:[#allocation5 + $0x48c] ss:$16 sps:$4 sm:$0xff]  }
  0xbe   :  { %1791 = vmatpush1.bf16.msra.mxu1 %v8141_v63  ;;  %1817 = vmatprep.subr.bf16.mxu0 %v8152_v0  ;;  %v8239_v63 = vld [vmem:[#allocation5 + $0x584] ss:$16 sps:$4 sm:$0xff]   ;;  %v8240_v0 = vld [vmem:[#allocation5 + $0x488] ss:$16 sps:$4 sm:$0xff]  }
  0xbf   :  { %1792 = vmatprep.subr.bf16.mxu1 %v8149_v1  ;;  %v8237_v1 = vld [vmem:[#allocation5 + $0x580] ss:$16 sps:$4 sm:$0xff]  }
  0xc1   :  { %1818 = vmatpush1.bf16.msra.mxu0 %v8150_v2  ;;  %v8248_v2 = vld [vmem:[#allocation5 + $0x4ac] ss:$16 sps:$4 sm:$0xff]  }
  0xc2   :  { %1793 = vmatpush1.bf16.msra.mxu1 %v8147_v3  ;;  %1819 = vmatprep.subr.bf16.mxu0 %v8158_v4  ;;  %v8245_v3 = vld [vmem:[#allocation5 + $0x5a4] ss:$16 sps:$4 sm:$0xff]   ;;  %v8246_v4 = vld [vmem:[#allocation5 + $0x4a8] ss:$16 sps:$4 sm:$0xff]  }
  0xc3   :  { %1794 = vmatprep.subr.bf16.mxu1 %v8155_v5  ;;  %v8243_v5 = vld [vmem:[#allocation5 + $0x5a0] ss:$16 sps:$4 sm:$0xff]  }
  0xc5   :  { %1820 = vmatpush1.bf16.msra.mxu0 %v8156_v6  ;;  %v8254_v6 = vld [vmem:[#allocation5 + $0x4cc] ss:$16 sps:$4 sm:$0xff]  }
  0xc6   :  { %1795 = vmatpush1.bf16.msra.mxu1 %v8153_v7  ;;  %1821 = vmatprep.subr.bf16.mxu0 %v8164_v8  ;;  %v8251_v7 = vld [vmem:[#allocation5 + $0x5c4] ss:$16 sps:$4 sm:$0xff]   ;;  %v8252_v8 = vld [vmem:[#allocation5 + $0x4c8] ss:$16 sps:$4 sm:$0xff]  }
  0xc7   :  { %1796 = vmatprep.subr.bf16.mxu1 %v8161_v9  ;;  %v8249_v9 = vld [vmem:[#allocation5 + $0x5c0] ss:$16 sps:$4 sm:$0xff]  }
  0xc9   :  { %1822 = vmatpush1.bf16.msra.mxu0 %v8162_v10  ;;  %v8260_v10 = vld [vmem:[#allocation5 + $0x4ec] ss:$16 sps:$4 sm:$0xff]  }
  0xca   :  { %1797 = vmatpush1.bf16.msra.mxu1 %v8159_v11  ;;  %1823 = vmatprep.subr.bf16.mxu0 %v8167_v12  ;;  %v8257_v11 = vld [vmem:[#allocation5 + $0x5e4] ss:$16 sps:$4 sm:$0xff]   ;;  %v8258_v12 = vld [vmem:[#allocation5 + $0x4e8] ss:$16 sps:$4 sm:$0xff]  }
  0xcb   :  { %2168 = vmatprep.subr.bf16.mxu1 %v8170_v13  ;;  %v8255_v13 = vld [vmem:[#allocation5 + $0x5e0] ss:$16 sps:$4 sm:$0xff]  }
  0xcd   :  { %1799 = vmatmul.mubr.bf16.vlgmr.msra.gmra.mrb[4].mxu1 %v9529_v43  ;;  %1824 = vmatpush1.bf16.msra.mxu0 %v8165_v14  ;;  %v8263_v14 = vld [vmem:[#allocation5 + $0x50c] ss:$16 sps:$4 sm:$0xff]  }
  0xce   :  { %2169 = vmatpush1.bf16.msra.mxu1 %v8168_v15  ;;  %1825 = vmatprep.subr.bf16.mxu0 %v8173_v16  ;;  %v8266_v15 = vld [vmem:[#allocation5 + $0x604] ss:$16 sps:$4 sm:$0xff]   ;;  %v8261_v16 = vld [vmem:[#allocation5 + $0x508] ss:$16 sps:$4 sm:$0xff]  }
  0xcf   :  { %2170 = vmatprep.subr.bf16.mxu1 %v8176_v17  ;;  %2200 = vmatprep.mubr.bf16.mxu1 %v9527_v41  ;;  %v8264_v17 = vld [vmem:[#allocation5 + $0x600] ss:$16 sps:$4 sm:$0xff]  }
  0xd1   :  { %1826 = vmatpush1.bf16.msra.mxu0 %v8171_v18  ;;  %v8269_v18 = vld [vmem:[#allocation5 + $0x52c] ss:$16 sps:$4 sm:$0xff]  }
  0xd2   :  { %2171 = vmatpush1.bf16.msra.mxu1 %v8174_v19  ;;  %1827 = vmatprep.subr.bf16.mxu0 %v8179_v20  ;;  %v8272_v19 = vld [vmem:[#allocation5 + $0x624] ss:$16 sps:$4 sm:$0xff]   ;;  %v8267_v20 = vld [vmem:[#allocation5 + $0x528] ss:$16 sps:$4 sm:$0xff]  }
  0xd3   :  { %2172 = vmatprep.subr.bf16.mxu1 %v8182_v21  ;;  %v8270_v21 = vld [vmem:[#allocation5 + $0x620] ss:$16 sps:$4 sm:$0xff]  }
  0xd5   :  { %1828 = vmatpush1.bf16.msra.mxu0 %v8177_v22  ;;  %v8275_v22 = vld [vmem:[#allocation5 + $0x54c] ss:$16 sps:$4 sm:$0xff]  }
  0xd6   :  { %2173 = vmatpush1.bf16.msra.mxu1 %v8180_v23  ;;  %1829 = vmatprep.subr.bf16.mxu0 %v8185_v24  ;;  %v8278_v23 = vld [vmem:[#allocation5 + $0x644] ss:$16 sps:$4 sm:$0xff]   ;;  %v8273_v24 = vld [vmem:[#allocation5 + $0x548] ss:$16 sps:$4 sm:$0xff]  }
  0xd7   :  { %2174 = vmatprep.subr.bf16.mxu1 %v8188_v25  ;;  %v8276_v25 = vld [vmem:[#allocation5 + $0x640] ss:$16 sps:$4 sm:$0xff]  }
  0xd9   :  { %1830 = vmatpush1.bf16.msra.mxu0 %v8183_v26  ;;  %v8281_v26 = vld [vmem:[#allocation5 + $0x56c] ss:$16 sps:$4 sm:$0xff]  }
  0xda   :  { %2175 = vmatpush1.bf16.msra.mxu1 %v8186_v27  ;;  %1831 = vmatprep.subr.bf16.mxu0 %v8191_v28  ;;  %v8284_v27 = vld [vmem:[#allocation5 + $0x664] ss:$16 sps:$4 sm:$0xff]   ;;  %v8279_v28 = vld [vmem:[#allocation5 + $0x568] ss:$16 sps:$4 sm:$0xff]  }
  0xdb   :  { %2176 = vmatprep.subr.bf16.mxu1 %v8194_v29  ;;  %v8282_v29 = vld [vmem:[#allocation5 + $0x660] ss:$16 sps:$4 sm:$0xff]  }
  0xdd   :  { %1832 = vmatpush1.bf16.msra.mxu0 %v8189_v30  ;;  %v8287_v30 = vld [vmem:[#allocation5 + $0x58c] ss:$16 sps:$4 sm:$0xff]  }
  0xde   :  { %2177 = vmatpush1.bf16.msra.mxu1 %v8192_v31  ;;  %1833 = vmatprep.subr.bf16.mxu0 %v8197_v32  ;;  %v8290_v31 = vld [vmem:[#allocation5 + $0x684] ss:$16 sps:$4 sm:$0xff]   ;;  %v8285_v32 = vld [vmem:[#allocation5 + $0x588] ss:$16 sps:$4 sm:$0xff]  }
  0xdf   :  { %2178 = vmatprep.subr.bf16.mxu1 %v8200_v33  ;;  %v8288_v33 = vld [vmem:[#allocation5 + $0x680] ss:$16 sps:$4 sm:$0xff]  }
  0xe1   :  { %1834 = vmatpush1.bf16.msra.mxu0 %v8195_v34  ;;  %v8293_v34 = vld [vmem:[#allocation5 + $0x5ac] ss:$16 sps:$4 sm:$0xff]  }
  0xe2   :  { %2179 = vmatpush1.bf16.msra.mxu1 %v8198_v35  ;;  %1835 = vmatprep.subr.bf16.mxu0 %v8203_v36  ;;  %v8296_v35 = vld [vmem:[#allocation5 + $0x6a4] ss:$16 sps:$4 sm:$0xff]   ;;  %v8291_v36 = vld [vmem:[#allocation5 + $0x5a8] ss:$16 sps:$4 sm:$0xff]  }
  0xe3   :  { %2180 = vmatprep.subr.bf16.mxu1 %v8206_v37  ;;  %v8294_v37 = vld [vmem:[#allocation5 + $0x6a0] ss:$16 sps:$4 sm:$0xff]  }
  0xe5   :  { %1836 = vmatpush1.bf16.msra.mxu0 %v8201_v38  ;;  %v8299_v38 = vld [vmem:[#allocation5 + $0x5cc] ss:$16 sps:$4 sm:$0xff]  }
  0xe6   :  { %2181 = vmatpush1.bf16.msra.mxu1 %v8204_v39  ;;  %1837 = vmatprep.subr.bf16.mxu0 %v8209_v40  ;;  %v8302_v39 = vld [vmem:[#allocation5 + $0x6c4] ss:$16 sps:$4 sm:$0xff]   ;;  %v8297_v40 = vld [vmem:[#allocation5 + $0x5c8] ss:$16 sps:$4 sm:$0xff]  }
  0xe7   :  { %2182 = vmatprep.subr.bf16.mxu1 %v8212_v42  ;;  %v8300_v42 = vld [vmem:[#allocation5 + $0x6c0] ss:$16 sps:$4 sm:$0xff]  }
  0xe9   :  { %1838 = vmatpush1.bf16.msra.mxu0 %v8207_v44  ;;  %v8305_v44 = vld [vmem:[#allocation5 + $0x5ec] ss:$16 sps:$4 sm:$0xff]  }
  0xea   :  { %2183 = vmatpush1.bf16.msra.mxu1 %v8210_v45  ;;  %2209 = vmatprep.subr.bf16.mxu0 %v8218_v46  ;;  %v8308_v45 = vld [vmem:[#allocation5 + $0x6e4] ss:$16 sps:$4 sm:$0xff]   ;;  %v8303_v46 = vld [vmem:[#allocation5 + $0x5e8] ss:$16 sps:$4 sm:$0xff]  }
  0xeb   :  { %2184 = vmatprep.subr.bf16.mxu1 %v8215_v47  ;;  %v8306_v47 = vld [vmem:[#allocation5 + $0x6e0] ss:$16 sps:$4 sm:$0xff]  }
  0xec   :  { %1840 = vmatmul.mubr.bf16.vlgmr.msra.gmra.mrb[8].mxu0 %v9529_v43 }
  0xed   :  { %2210 = vmatpush1.bf16.msra.mxu0 %v8216_v48  ;;  %2241 = vmatprep.mubr.bf16.mxu0 %v9527_v41  ;;  %v8314_v48 = vld [vmem:[#allocation5 + $0x60c] ss:$16 sps:$4 sm:$0xff]  }
  0xee   :  { %2185 = vmatpush1.bf16.msra.mxu1 %v8213_v49  ;;  %2211 = vmatprep.subr.bf16.mxu0 %v8224_v50  ;;  %v8311_v49 = vld [vmem:[#allocation5 + $0x704] ss:$16 sps:$4 sm:$0xff]   ;;  %v8312_v50 = vld [vmem:[#allocation5 + $0x608] ss:$16 sps:$4 sm:$0xff]  }
  0xef   :  { %2186 = vmatprep.subr.bf16.mxu1 %v8221_v51  ;;  %v8309_v51 = vld [vmem:[#allocation5 + $0x700] ss:$16 sps:$4 sm:$0xff]  }
  0xf1   :  { %2212 = vmatpush1.bf16.msra.mxu0 %v8222_v52  ;;  %v8320_v52 = vld [vmem:[#allocation5 + $0x62c] ss:$16 sps:$4 sm:$0xff]  }
  0xf2   :  { %2187 = vmatpush1.bf16.msra.mxu1 %v8219_v53  ;;  %2213 = vmatprep.subr.bf16.mxu0 %v8230_v54  ;;  %v8317_v53 = vld [vmem:[#allocation5 + $0x724] ss:$16 sps:$4 sm:$0xff]   ;;  %v8318_v54 = vld [vmem:[#allocation5 + $0x628] ss:$16 sps:$4 sm:$0xff]  }
  0xf3   :  { %2188 = vmatprep.subr.bf16.mxu1 %v8227_v55  ;;  %v8315_v55 = vld [vmem:[#allocation5 + $0x720] ss:$16 sps:$4 sm:$0xff]  }
  0xf5   :  { %2214 = vmatpush1.bf16.msra.mxu0 %v8228_v56  ;;  %v8326_v56 = vld [vmem:[#allocation5 + $0x64c] ss:$16 sps:$4 sm:$0xff]  }
  0xf6   :  { %2189 = vmatpush1.bf16.msra.mxu1 %v8225_v57  ;;  %2215 = vmatprep.subr.bf16.mxu0 %v8236_v58  ;;  %v8323_v57 = vld [vmem:[#allocation5 + $0x744] ss:$16 sps:$4 sm:$0xff]   ;;  %v8324_v58 = vld [vmem:[#allocation5 + $0x648] ss:$16 sps:$4 sm:$0xff]  }
  0xf7   :  { %2190 = vmatprep.subr.bf16.mxu1 %v8233_v59  ;;  %v8321_v59 = vld [vmem:[#allocation5 + $0x740] ss:$16 sps:$4 sm:$0xff]  }
  0xf9   :  { %2216 = vmatpush1.bf16.msra.mxu0 %v8234_v60  ;;  %v8332_v60 = vld [vmem:[#allocation5 + $0x66c] ss:$16 sps:$4 sm:$0xff]  }
  0xfa   :  { %2191 = vmatpush1.bf16.msra.mxu1 %v8231_v61  ;;  %2217 = vmatprep.subr.bf16.mxu0 %v8242_v62  ;;  %v8329_v61 = vld [vmem:[#allocation5 + $0x764] ss:$16 sps:$4 sm:$0xff]   ;;  %v8330_v62 = vld [vmem:[#allocation5 + $0x668] ss:$16 sps:$4 sm:$0xff]  }
  0xfb   :  { %2192 = vmatprep.subr.bf16.mxu1 %v8239_v63  ;;  %v8327_v63 = vld [vmem:[#allocation5 + $0x760] ss:$16 sps:$4 sm:$0xff]  }
  0xfd   :  { %2218 = vmatpush1.bf16.msra.mxu0 %v8240_v0  ;;  %v8338_v0 = vld [vmem:[#allocation5 + $0x68c] ss:$16 sps:$4 sm:$0xff]  }
  0xfe   :  { %2193 = vmatpush1.bf16.msra.mxu1 %v8237_v1  ;;  %2219 = vmatprep.subr.bf16.mxu0 %v8248_v2  ;;  %v8335_v1 = vld [vmem:[#allocation5 + $0x784] ss:$16 sps:$4 sm:$0xff]   ;;  %v8336_v2 = vld [vmem:[#allocation5 + $0x688] ss:$16 sps:$4 sm:$0xff]  }
  0xff   :  { %2194 = vmatprep.subr.bf16.mxu1 %v8245_v3  ;;  %v8333_v3 = vld [vmem:[#allocation5 + $0x780] ss:$16 sps:$4 sm:$0xff]  }
 0x101   :  { %2220 = vmatpush1.bf16.msra.mxu0 %v8246_v4  ;;  %v8344_v4 = vld [vmem:[#allocation5 + $0x6ac] ss:$16 sps:$4 sm:$0xff]  }
 0x102   :  { %2195 = vmatpush1.bf16.msra.mxu1 %v8243_v5  ;;  %2221 = vmatprep.subr.bf16.mxu0 %v8254_v6  ;;  %v8341_v5 = vld [vmem:[#allocation5 + $0x7a4] ss:$16 sps:$4 sm:$0xff]   ;;  %v8342_v6 = vld [vmem:[#allocation5 + $0x6a8] ss:$16 sps:$4 sm:$0xff]  }
 0x103   :  { %2196 = vmatprep.subr.bf16.mxu1 %v8251_v7  ;;  %v8339_v7 = vld [vmem:[#allocation5 + $0x7a0] ss:$16 sps:$4 sm:$0xff]  }
 0x105   :  { %2222 = vmatpush1.bf16.msra.mxu0 %v8252_v8  ;;  %v8350_v8 = vld [vmem:[#allocation5 + $0x6cc] ss:$16 sps:$4 sm:$0xff]  }
 0x106   :  { %2197 = vmatpush1.bf16.msra.mxu1 %v8249_v9  ;;  %2223 = vmatprep.subr.bf16.mxu0 %v8260_v10  ;;  %v8347_v10 = vld [vmem:[#allocation5 + $0x7c4] ss:$16 sps:$4 sm:$0xff]  }
 0x107   :  { %2198 = vmatprep.subr.bf16.mxu1 %v8257_v11 }
 0x109   :  { %2224 = vmatpush1.bf16.msra.mxu0 %v8258_v12 }
 0x10a   :  { %2199 = vmatpush1.bf16.msra.mxu1 %v8255_v13  ;;  %2225 = vmatprep.subr.bf16.mxu0 %v8263_v14  ;;  %v8348_v14 = vld [vmem:[#allocation5 + $0x6c8] ss:$16 sps:$4 sm:$0xff]  }
 0x10b   :  { %2570 = vmatprep.subr.bf16.mxu1 %v8266_v15 }
 0x10d   :  { %2201 = vmatmul.mubr.bf16.vlgmr.msra.gmra.mrb[8].mxu1 %v9529_v43  ;;  %2226 = vmatpush1.bf16.msra.mxu0 %v8261_v16  ;;  %v8345_v16 = vld [vmem:[#allocation5 + $0x7c0] ss:$16 sps:$4 sm:$0xff]  }
 0x10e   :  { %2571 = vmatpush1.bf16.msra.mxu1 %v8264_v17  ;;  %2227 = vmatprep.subr.bf16.mxu0 %v8269_v18  ;;  %v8356_v17 = vld [vmem:[#allocation5 + $0x6ec] ss:$16 sps:$4 sm:$0xff]  }
 0x10f   :  { %2572 = vmatprep.subr.bf16.mxu1 %v8272_v19  ;;  %2602 = vmatprep.mubr.bf16.mxu1 %v9527_v41  ;;  %v8353_v19 = vld [vmem:[#allocation5 + $0x7e4] ss:$16 sps:$4 sm:$0xff]  }
 0x111   :  { %2228 = vmatpush1.bf16.msra.mxu0 %v8267_v20 }
 0x112   :  { %2573 = vmatpush1.bf16.msra.mxu1 %v8270_v21  ;;  %2229 = vmatprep.subr.bf16.mxu0 %v8275_v22  ;;  %v8354_v21 = vld [vmem:[#allocation5 + $0x6e8] ss:$16 sps:$4 sm:$0xff]   ;;  %v8351_v22 = vld [vmem:[#allocation5 + $0x7e0] ss:$16 sps:$4 sm:$0xff]  }
 0x113   :  { %2574 = vmatprep.subr.bf16.mxu1 %v8278_v23  ;;  %v8359_v23 = vld [vmem:[#allocation5 + $0x70c] ss:$16 sps:$4 sm:$0xff]  }
 0x115   :  { %2230 = vmatpush1.bf16.msra.mxu0 %v8273_v24  ;;  %v8362_v24 = vld [vmem:[#allocation5 + $0x804] ss:$16 sps:$4 sm:$0xff]  }
 0x116   :  { %2575 = vmatpush1.bf16.msra.mxu1 %v8276_v25  ;;  %2231 = vmatprep.subr.bf16.mxu0 %v8281_v26  ;;  %v8357_v25 = vld [vmem:[#allocation5 + $0x708] ss:$16 sps:$4 sm:$0xff]   ;;  %v8360_v26 = vld [vmem:[#allocation5 + $0x800] ss:$16 sps:$4 sm:$0xff]  }
 0x117   :  { %2576 = vmatprep.subr.bf16.mxu1 %v8284_v27  ;;  %v8365_v27 = vld [vmem:[#allocation5 + $0x72c] ss:$16 sps:$4 sm:$0xff]  }
 0x119   :  { %2232 = vmatpush1.bf16.msra.mxu0 %v8279_v28  ;;  %v8368_v28 = vld [vmem:[#allocation5 + $0x824] ss:$16 sps:$4 sm:$0xff]  }
 0x11a   :  { %2577 = vmatpush1.bf16.msra.mxu1 %v8282_v29  ;;  %2233 = vmatprep.subr.bf16.mxu0 %v8287_v30  ;;  %v8363_v29 = vld [vmem:[#allocation5 + $0x728] ss:$16 sps:$4 sm:$0xff]   ;;  %v8366_v30 = vld [vmem:[#allocation5 + $0x820] ss:$16 sps:$4 sm:$0xff]  }
 0x11b   :  { %2578 = vmatprep.subr.bf16.mxu1 %v8290_v31  ;;  %v8371_v31 = vld [vmem:[#allocation5 + $0x74c] ss:$16 sps:$4 sm:$0xff]  }
 0x11d   :  { %2234 = vmatpush1.bf16.msra.mxu0 %v8285_v32  ;;  %v8374_v32 = vld [vmem:[#allocation5 + $0x844] ss:$16 sps:$4 sm:$0xff]  }
 0x11e   :  { %2579 = vmatpush1.bf16.msra.mxu1 %v8288_v33  ;;  %2235 = vmatprep.subr.bf16.mxu0 %v8293_v34  ;;  %v8369_v33 = vld [vmem:[#allocation5 + $0x748] ss:$16 sps:$4 sm:$0xff]   ;;  %v8372_v34 = vld [vmem:[#allocation5 + $0x840] ss:$16 sps:$4 sm:$0xff]  }
 0x11f   :  { %2580 = vmatprep.subr.bf16.mxu1 %v8296_v35  ;;  %v8377_v35 = vld [vmem:[#allocation5 + $0x76c] ss:$16 sps:$4 sm:$0xff]  }
 0x121   :  { %2236 = vmatpush1.bf16.msra.mxu0 %v8291_v36  ;;  %v8380_v36 = vld [vmem:[#allocation5 + $0x864] ss:$16 sps:$4 sm:$0xff]  }
 0x122   :  { %2581 = vmatpush1.bf16.msra.mxu1 %v8294_v37  ;;  %2237 = vmatprep.subr.bf16.mxu0 %v8299_v38  ;;  %v8375_v37 = vld [vmem:[#allocation5 + $0x768] ss:$16 sps:$4 sm:$0xff]   ;;  %v8378_v38 = vld [vmem:[#allocation5 + $0x860] ss:$16 sps:$4 sm:$0xff]  }
 0x123   :  { %2582 = vmatprep.subr.bf16.mxu1 %v8302_v39  ;;  %v8383_v39 = vld [vmem:[#allocation5 + $0x78c] ss:$16 sps:$4 sm:$0xff]  }
 0x125   :  { %2238 = vmatpush1.bf16.msra.mxu0 %v8297_v40  ;;  %v8386_v40 = vld [vmem:[#allocation5 + $0x884] ss:$16 sps:$4 sm:$0xff]  }
 0x126   :  { %2583 = vmatpush1.bf16.msra.mxu1 %v8300_v42  ;;  %2239 = vmatprep.subr.bf16.mxu0 %v8305_v44  ;;  %v8381_v42 = vld [vmem:[#allocation5 + $0x788] ss:$16 sps:$4 sm:$0xff]   ;;  %v8384_v44 = vld [vmem:[#allocation5 + $0x880] ss:$16 sps:$4 sm:$0xff]  }
 0x127   :  { %2584 = vmatprep.subr.bf16.mxu1 %v8308_v45  ;;  %v8389_v45 = vld [vmem:[#allocation5 + $0x7ac] ss:$16 sps:$4 sm:$0xff]  }
 0x129   :  { %2240 = vmatpush1.bf16.msra.mxu0 %v8303_v46  ;;  %v8387_v46 = vld [vmem:[#allocation5 + $0x7a8] ss:$16 sps:$4 sm:$0xff]  }
 0x12a   :  { %2585 = vmatpush1.bf16.msra.mxu1 %v8306_v47  ;;  %2611 = vmatprep.subr.bf16.mxu0 %v8314_v48  ;;  %v8392_v47 = vld [vmem:[#allocation5 + $0x8a4] ss:$16 sps:$4 sm:$0xff]   ;;  %v8390_v48 = vld [vmem:[#allocation5 + $0x8a0] ss:$16 sps:$4 sm:$0xff]  }
 0x12b   :  { %2586 = vmatprep.subr.bf16.mxu1 %v8311_v49  ;;  %v8395_v49 = vld [vmem:[#allocation5 + $0x7cc] ss:$16 sps:$4 sm:$0xff]  }
 0x12c   :  { %2242 = vmatmul.mubr.bf16.vlgmr.msra.gmra.mrb[12].mxu0 %v9529_v43 }
 0x12d   :  { %2612 = vmatpush1.bf16.msra.mxu0 %v8312_v50  ;;  %2643 = vmatprep.mubr.bf16.mxu0 %v9527_v41  ;;  %v8393_v50 = vld [vmem:[#allocation5 + $0x7c8] ss:$16 sps:$4 sm:$0xff]  }
 0x12e   :  { %2587 = vmatpush1.bf16.msra.mxu1 %v8309_v51  ;;  %2613 = vmatprep.subr.bf16.mxu0 %v8320_v52  ;;  %v8398_v51 = vld [vmem:[#allocation5 + $0x8c4] ss:$16 sps:$4 sm:$0xff]  }
 0x12f   :  { %2588 = vmatprep.subr.bf16.mxu1 %v8317_v53 }
 0x131   :  { %2614 = vmatpush1.bf16.msra.mxu0 %v8318_v54  ;;  %v8396_v54 = vld [vmem:[#allocation5 + $0x8c0] ss:$16 sps:$4 sm:$0xff]  }
 0x132   :  { %2589 = vmatpush1.bf16.msra.mxu1 %v8315_v55  ;;  %2615 = vmatprep.subr.bf16.mxu0 %v8326_v56  ;;  %v8401_v55 = vld [vmem:[#allocation5 + $0x7ec] ss:$16 sps:$4 sm:$0xff]  }
 0x133   :  { %2590 = vmatprep.subr.bf16.mxu1 %v8323_v57  ;;  %v8399_v57 = vld [vmem:[#allocation5 + $0x7e8] ss:$16 sps:$4 sm:$0xff]  }
 0x135   :  { %2616 = vmatpush1.bf16.msra.mxu0 %v8324_v58  ;;  %v8404_v58 = vld [vmem:[#allocation5 + $0x8e4] ss:$16 sps:$4 sm:$0xff]  }
 0x136   :  { %2591 = vmatpush1.bf16.msra.mxu1 %v8321_v59  ;;  %2617 = vmatprep.subr.bf16.mxu0 %v8332_v60  ;;  %v8402_v60 = vld [vmem:[#allocation5 + $0x8e0] ss:$16 sps:$4 sm:$0xff]  }
 0x137   :  { %2592 = vmatprep.subr.bf16.mxu1 %v8329_v61  ;;  %v8407_v61 = vld [vmem:[#allocation5 + $0x904] ss:$16 sps:$4 sm:$0xff]  }
 0x139   :  { %2618 = vmatpush1.bf16.msra.mxu0 %v8330_v62  ;;  %v8410_v62 = vld [vmem:[#allocation5 + $0x80c] ss:$16 sps:$4 sm:$0xff]  }
 0x13a   :  { %2593 = vmatpush1.bf16.msra.mxu1 %v8327_v63  ;;  %2619 = vmatprep.subr.bf16.mxu0 %v8338_v0  ;;  %v8408_v63 = vld [vmem:[#allocation5 + $0x808] ss:$16 sps:$4 sm:$0xff]   ;;  %v8405_v0 = vld [vmem:[#allocation5 + $0x900] ss:$16 sps:$4 sm:$0xff]  }
 0x13b   :  { %2594 = vmatprep.subr.bf16.mxu1 %v8335_v1  ;;  %v8416_v1 = vld [vmem:[#allocation5 + $0x82c] ss:$16 sps:$4 sm:$0xff]  }
 0x13d   :  { %2620 = vmatpush1.bf16.msra.mxu0 %v8336_v2  ;;  %v8413_v2 = vld [vmem:[#allocation5 + $0x924] ss:$16 sps:$4 sm:$0xff]  }
 0x13e   :  { %2595 = vmatpush1.bf16.msra.mxu1 %v8333_v3  ;;  %2621 = vmatprep.subr.bf16.mxu0 %v8344_v4  ;;  %v8414_v3 = vld [vmem:[#allocation5 + $0x828] ss:$16 sps:$4 sm:$0xff]   ;;  %v8411_v4 = vld [vmem:[#allocation5 + $0x920] ss:$16 sps:$4 sm:$0xff]  }
 0x13f   :  { %v7699_v9 = vpop.f32.mrb[0].mxu0  ;;  %2596 = vmatprep.subr.bf16.mxu1 %v8341_v5  ;;  %v8422_v5 = vld [vmem:[#allocation5 + $0x84c] ss:$16 sps:$4 sm:$0xff]  }
 0x140   :  { %v7700_v11 = vpop.f32.mrb[1].mxu0 }
 0x141   :  { %v7701_v12 = vadd.f32 %v7700_v11, %v7699_v9  ;;  %v7702_v13 = vpop.f32.mrb[2].mxu0  ;;  %2622 = vmatpush1.bf16.msra.mxu0 %v8342_v6  ;;  %v8419_v6 = vld [vmem:[#allocation5 + $0x944] ss:$16 sps:$4 sm:$0xff]   ;;  %v8428_v9 = vld [vmem:[#allocation5 + $0x86c] ss:$16 sps:$4 sm:$0xff]  }
 0x142   :  { %2597 = vmatpush1.bf16.msra.mxu1 %v8339_v7  ;;  %v7703_v15 = vpop.f32.mrb[3].mxu0  ;;  %2623 = vmatprep.subr.bf16.mxu0 %v8350_v8  ;;  %v8420_v7 = vld [vmem:[#allocation5 + $0x848] ss:$16 sps:$4 sm:$0xff]   ;;  %v8417_v8 = vld [vmem:[#allocation5 + $0x940] ss:$16 sps:$4 sm:$0xff]  }
 0x143   :  { %v6890_v18 = vadd.f32 -140.37047, %v7701_v12  ;;  %2598 = vmatprep.subr.bf16.mxu1 %v8347_v10  ;;  %v8425_v10 = vld [vmem:[#allocation5 + $0x964] ss:$16 sps:$4 sm:$0xff]   ;;  %v8426_v11 = vld [vmem:[#allocation5 + $0x868] ss:$16 sps:$4 sm:$0xff]  }
 0x144   :  { %v8423_v12 = vld [vmem:[#allocation5 + $0x960] ss:$16 sps:$4 sm:$0xff]   ;;  %v8434_v13 = vld [vmem:[#allocation5 + $0x88c] ss:$16 sps:$4 sm:$0xff]   ;;  %v8432_v15 = vld [vmem:[#allocation5 + $0x888] ss:$16 sps:$4 sm:$0xff]  }
 0x145   :  { %v273_v20 = vmul.f32 0.053157616, %v6890_v18  ;;  %2624 = vmatpush1.bf16.msra.mxu0 %v8348_v14  ;;  %v8431_v14 = vld [vmem:[#allocation5 + $0x984] ss:$16 sps:$4 sm:$0xff]  }
 0x146   :  { %2599 = vmatpush1.bf16.msra.mxu1 %v8345_v16  ;;  %2625 = vmatprep.subr.bf16.mxu0 %v8356_v17  ;;  %v8429_v16 = vld [vmem:[#allocation5 + $0x980] ss:$16 sps:$4 sm:$0xff]   ;;  %v8440_v17 = vld [vmem:[#allocation5 + $0x8ac] ss:$16 sps:$4 sm:$0xff]   ;;  %v8437_v18 = vld [vmem:[#allocation5 + $0x9a4] ss:$16 sps:$4 sm:$0xff]  }
 0x147   :  { %2600 = vmatprep.subr.bf16.mxu1 %v8353_v19  ;;  %275 = vst.msk [vmem:[#allocation10] sm:$0x3] %vm274_vm0, %v273_v20  ;;  %v8438_v19 = vld [vmem:[#allocation5 + $0x8a8] ss:$16 sps:$4 sm:$0xff]   ;;  %v8435_v20 = vld [vmem:[#allocation5 + $0x9a0] ss:$16 sps:$4 sm:$0xff]  }
 0x149   :  { %2626 = vmatpush1.bf16.msra.mxu0 %v8354_v21  ;;  %v8446_v21 = vld [vmem:[#allocation5 + $0x8cc] ss:$16 sps:$4 sm:$0xff]  }
 0x14a   :  { %2601 = vmatpush1.bf16.msra.mxu1 %v8351_v22  ;;  %2627 = vmatprep.subr.bf16.mxu0 %v8359_v23 }
 0x14b   :  { %2972 = vmatprep.subr.bf16.mxu1 %v8362_v24 }
 0x14d   :  { %2603 = vmatmul.mubr.bf16.vlgmr.msra.gmra.mrb[12].mxu1 %v9529_v43  ;;  %2628 = vmatpush1.bf16.msra.mxu0 %v8357_v25  ;;  %v8443_v25 = vld [vmem:[#allocation5 + $0x9c4] ss:$16 sps:$4 sm:$0xff]  }
 0x14e   :  { %2973 = vmatpush1.bf16.msra.mxu1 %v8360_v26  ;;  %2629 = vmatprep.subr.bf16.mxu0 %v8365_v27 }
 0x14f   :  { %2974 = vmatprep.subr.bf16.mxu1 %v8368_v28  ;;  %3004 = vmatprep.mubr.bf16.mxu1 %v9527_v41  ;;  %v8441_v28 = vld [vmem:[#allocation5 + $0x9c0] ss:$16 sps:$4 sm:$0xff]  }
 0x151   :  { %2630 = vmatpush1.bf16.msra.mxu0 %v8363_v29  ;;  %v8444_v29 = vld [vmem:[#allocation5 + $0x8c8] ss:$16 sps:$4 sm:$0xff]  }
 0x152   :  { %2975 = vmatpush1.bf16.msra.mxu1 %v8366_v30  ;;  %2631 = vmatprep.subr.bf16.mxu0 %v8371_v31  ;;  %v8452_v30 = vld [vmem:[#allocation5 + $0x8ec] ss:$16 sps:$4 sm:$0xff]  }
 0x153   :  { %2976 = vmatprep.subr.bf16.mxu1 %v8374_v32 }
 0x155   :  { %2632 = vmatpush1.bf16.msra.mxu0 %v8369_v33 }
 0x156   :  { %2977 = vmatpush1.bf16.msra.mxu1 %v8372_v34  ;;  %2633 = vmatprep.subr.bf16.mxu0 %v8377_v35 }
 0x157   :  { %2978 = vmatprep.subr.bf16.mxu1 %v8380_v36  ;;  %v8449_v36 = vld [vmem:[#allocation5 + $0x9e4] ss:$16 sps:$4 sm:$0xff]  }
 0x159   :  { %2634 = vmatpush1.bf16.msra.mxu0 %v8375_v37  ;;  %v8450_v37 = vld [vmem:[#allocation5 + $0x8e8] ss:$16 sps:$4 sm:$0xff]  }
 0x15a   :  { %2979 = vmatpush1.bf16.msra.mxu1 %v8378_v38  ;;  %2635 = vmatprep.subr.bf16.mxu0 %v8383_v39  ;;  %v8447_v38 = vld [vmem:[#allocation5 + $0x9e0] ss:$16 sps:$4 sm:$0xff]   ;;  %v8455_v39 = vld [vmem:[#allocation5 + $0x90c] ss:$16 sps:$4 sm:$0xff]  }
 0x15b   :  { %2980 = vmatprep.subr.bf16.mxu1 %v8386_v40  ;;  %v8453_v40 = vld [vmem:[#allocation5 + $0x908] ss:$16 sps:$4 sm:$0xff]  }
 0x15d   :  { %2636 = vmatpush1.bf16.msra.mxu0 %v8381_v42  ;;  %v8458_v42 = vld [vmem:[#allocation5 + $0xa04] ss:$16 sps:$4 sm:$0xff]  }
 0x15e   :  { %2981 = vmatpush1.bf16.msra.mxu1 %v8384_v44  ;;  %2637 = vmatprep.subr.bf16.mxu0 %v8389_v45  ;;  %v8456_v44 = vld [vmem:[#allocation5 + $0xa00] ss:$16 sps:$4 sm:$0xff]   ;;  %v8461_v45 = vld [vmem:[#allocation5 + $0x92c] ss:$16 sps:$4 sm:$0xff]  }
 0x15f   :  { %2982 = vmatprep.subr.bf16.mxu1 %v8392_v47  ;;  %v8464_v47 = vld [vmem:[#allocation5 + $0xa24] ss:$16 sps:$4 sm:$0xff]  }
 0x160   :  { %v9550_v52 = vpop.f32.mrb[0].mxu1 }
 0x161   :  { %2638 = vmatpush1.bf16.msra.mxu0 %v8387_v46  ;;  %v9552_v53 = vpop.f32.mrb[1].mxu1  ;;  %v5868_v22 = vmul.f32 %v9550_v52, %v9550_v52  ;;  %v8459_v46 = vld [vmem:[#allocation5 + $0x928] ss:$16 sps:$4 sm:$0xff]   ;;  %v8468_v52 = vld [vmem:[#allocation5 + $0xa40] ss:$16 sps:$4 sm:$0xff]  }
 0x162   :  { %2983 = vmatpush1.bf16.msra.mxu1 %v8390_v48  ;;  %2639 = vmatprep.subr.bf16.mxu0 %v8395_v49  ;;  %v1402_v56 = vpop.f32.mrb[2].mxu1  ;;  %v5869_v23 = vmul.f32 %v9552_v53, %v9552_v53  ;;  %v8462_v48 = vld [vmem:[#allocation5 + $0xa20] ss:$16 sps:$4 sm:$0xff]   ;;  %v8467_v49 = vld [vmem:[#allocation5 + $0x94c] ss:$16 sps:$4 sm:$0xff]  }
 0x163   :  { %2984 = vmatprep.subr.bf16.mxu1 %v8398_v51  ;;  %v1403_v59 = vpop.f32.mrb[3].mxu1  ;;  %v8470_v51 = vld [vmem:[#allocation5 + $0xa44] ss:$16 sps:$4 sm:$0xff]   ;;  %v8473_v53 = vld [vmem:[#allocation5 + $0x96c] ss:$16 sps:$4 sm:$0xff]  }
 0x164   :  { %v8474_v56 = vld [vmem:[#allocation5 + $0xa60] ss:$16 sps:$4 sm:$0xff]   ;;  %v8482_v59 = vld [vmem:[#allocation5 + $0xa84] ss:$16 sps:$4 sm:$0xff]  }
 0x165   :  { %2640 = vmatpush1.bf16.msra.mxu0 %v8393_v50  ;;  %v8465_v50 = vld [vmem:[#allocation5 + $0x948] ss:$16 sps:$4 sm:$0xff]  }
 0x166   :  { %2985 = vmatpush1.bf16.msra.mxu1 %v8396_v54  ;;  %2641 = vmatprep.subr.bf16.mxu0 %v8401_v55  ;;  %v8471_v54 = vld [vmem:[#allocation5 + $0x968] ss:$16 sps:$4 sm:$0xff]   ;;  %v8476_v55 = vld [vmem:[#allocation5 + $0xa64] ss:$16 sps:$4 sm:$0xff]  }
 0x167   :  { %2986 = vmatprep.subr.bf16.mxu1 %v8404_v58  ;;  %v8477_v58 = vld [vmem:[#allocation5 + $0x988] ss:$16 sps:$4 sm:$0xff]  }
 0x169   :  { %2642 = vmatpush1.bf16.msra.mxu0 %v8399_v57  ;;  %v8479_v57 = vld [vmem:[#allocation5 + $0x98c] ss:$16 sps:$4 sm:$0xff]  }
 0x16a   :  { %2987 = vmatpush1.bf16.msra.mxu1 %v8402_v60  ;;  %3013 = vmatprep.subr.bf16.mxu0 %v8410_v62  ;;  %v8480_v60 = vld [vmem:[#allocation5 + $0xa80] ss:$16 sps:$4 sm:$0xff]   ;;  %v8483_v62 = vld [vmem:[#allocation5 + $0x9a8] ss:$16 sps:$4 sm:$0xff]  }
 0x16b   :  { %2988 = vmatprep.subr.bf16.mxu1 %v8407_v61  ;;  %v8485_v61 = vld [vmem:[#allocation5 + $0x9ac] ss:$16 sps:$4 sm:$0xff]  }
 0x16c   :  { %2644 = vmatmul.mubr.bf16.vlgmr.msra.gmra.mrb[16].mxu0 %v9529_v43 }
 0x16d   :  { %3014 = vmatpush1.bf16.msra.mxu0 %v8408_v63  ;;  %3045 = vmatprep.mubr.bf16.mxu0 %v9527_v41  ;;  %v8488_v63 = vld [vmem:[#allocation5 + $0xaa4] ss:$16 sps:$4 sm:$0xff]  }
 0x16e   :  { %2989 = vmatpush1.bf16.msra.mxu1 %v8405_v0  ;;  %3015 = vmatprep.subr.bf16.mxu0 %v8416_v1  ;;  %v8486_v0 = vld [vmem:[#allocation5 + $0xaa0] ss:$16 sps:$4 sm:$0xff]   ;;  %v8491_v1 = vld [vmem:[#allocation5 + $0x9cc] ss:$16 sps:$4 sm:$0xff]  }
 0x16f   :  { %2990 = vmatprep.subr.bf16.mxu1 %v8413_v2  ;;  %v8489_v2 = vld [vmem:[#allocation5 + $0x9c8] ss:$16 sps:$4 sm:$0xff]  }
 0x171   :  { %3016 = vmatpush1.bf16.msra.mxu0 %v8414_v3  ;;  %v8494_v3 = vld [vmem:[#allocation5 + $0xac4] ss:$16 sps:$4 sm:$0xff]  }
 0x172   :  { %2991 = vmatpush1.bf16.msra.mxu1 %v8411_v4  ;;  %3017 = vmatprep.subr.bf16.mxu0 %v8422_v5 }
 0x173   :  { %2992 = vmatprep.subr.bf16.mxu1 %v8419_v6  ;;  %v8492_v6 = vld [vmem:[#allocation5 + $0xac0] ss:$16 sps:$4 sm:$0xff]  }
 0x175   :  { %3018 = vmatpush1.bf16.msra.mxu0 %v8420_v7  ;;  %v8497_v7 = vld [vmem:[#allocation5 + $0x9ec] ss:$16 sps:$4 sm:$0xff]  }
 0x176   :  { %2993 = vmatpush1.bf16.msra.mxu1 %v8417_v8  ;;  %3019 = vmatprep.subr.bf16.mxu0 %v8428_v9  ;;  %v8495_v9 = vld [vmem:[#allocation5 + $0x9e8] ss:$16 sps:$4 sm:$0xff]  }
 0x177   :  { %2994 = vmatprep.subr.bf16.mxu1 %v8425_v10  ;;  %v8500_v10 = vld [vmem:[#allocation5 + $0xae4] ss:$16 sps:$4 sm:$0xff]  }
 0x179   :  { %3020 = vmatpush1.bf16.msra.mxu0 %v8426_v11 }
 0x17a   :  { %2995 = vmatpush1.bf16.msra.mxu1 %v8423_v12  ;;  %3021 = vmatprep.subr.bf16.mxu0 %v8434_v13  ;;  %v8498_v12 = vld [vmem:[#allocation5 + $0xae0] ss:$16 sps:$4 sm:$0xff]   ;;  %v8503_v13 = vld [vmem:[#allocation5 + $0xb04] ss:$16 sps:$4 sm:$0xff]  }
 0x17b   :  { %2996 = vmatprep.subr.bf16.mxu1 %v8431_v14  ;;  %v8506_v14 = vld [vmem:[#allocation5 + $0xa0c] ss:$16 sps:$4 sm:$0xff]  }
 0x17d   :  { %3022 = vmatpush1.bf16.msra.mxu0 %v8432_v15  ;;  %v8504_v15 = vld [vmem:[#allocation5 + $0xa08] ss:$16 sps:$4 sm:$0xff]  }
 0x17e   :  { %2997 = vmatpush1.bf16.msra.mxu1 %v8429_v16  ;;  %3023 = vmatprep.subr.bf16.mxu0 %v8440_v17  ;;  %v8501_v16 = vld [vmem:[#allocation5 + $0xb00] ss:$16 sps:$4 sm:$0xff]   ;;  %v8512_v17 = vld [vmem:[#allocation5 + $0xa2c] ss:$16 sps:$4 sm:$0xff]  }
 0x17f   :  { %v1439_v24 = vpop.f32.mrb[4].mxu0  ;;  %2998 = vmatprep.subr.bf16.mxu1 %v8437_v18  ;;  %v8509_v18 = vld [vmem:[#allocation5 + $0xb24] ss:$16 sps:$4 sm:$0xff]  }
 0x180   :  { %v5892_v26 = vmul.f32 %v1439_v24, %v1439_v24  ;;  %v1441_v27 = vpop.f32.mrb[5].mxu0  ;;  %v8513_v24 = vld [vmem:[#allocation5 + $0xb40] ss:$16 sps:$4 sm:$0xff]  }
 0x181   :  { %v5893_v31 = vmul.f32 %v1441_v27, %v1441_v27  ;;  %v1443_v32 = vpop.f32.mrb[6].mxu0  ;;  %3024 = vmatpush1.bf16.msra.mxu0 %v8438_v19  ;;  %v8510_v19 = vld [vmem:[#allocation5 + $0xa28] ss:$16 sps:$4 sm:$0xff]  }
 0x182   :  { %v9560_v33 = vadd.f32 %v5892_v26, %v5868_v22  ;;  %2999 = vmatpush1.bf16.msra.mxu1 %v8435_v20  ;;  %v1444_v34 = vpop.f32.mrb[7].mxu0  ;;  %3025 = vmatprep.subr.bf16.mxu0 %v8446_v21  ;;  %v8507_v20 = vld [vmem:[#allocation5 + $0xb20] ss:$16 sps:$4 sm:$0xff]   ;;  %v8518_v21 = vld [vmem:[#allocation5 + $0xa4c] ss:$16 sps:$4 sm:$0xff]  }
 0x183   :  { %v9562_v35 = vadd.f32 %v5893_v31, %v5869_v23  ;;  %3000 = vmatprep.subr.bf16.mxu1 %v8443_v25  ;;  %v8515_v22 = vld [vmem:[#allocation5 + $0xb44] ss:$16 sps:$4 sm:$0xff]   ;;  %v8516_v23 = vld [vmem:[#allocation5 + $0xa48] ss:$16 sps:$4 sm:$0xff]   ;;  %v8524_v25 = vld [vmem:[#allocation5 + $0xa6c] ss:$16 sps:$4 sm:$0xff]  }
 0x184   :  { %v8521_v26 = vld [vmem:[#allocation5 + $0xb64] ss:$16 sps:$4 sm:$0xff]   ;;  %v8522_v27 = vld [vmem:[#allocation5 + $0xa68] ss:$16 sps:$4 sm:$0xff]   ;;  %v8525_v32 = vld [vmem:[#allocation5 + $0xb80] ss:$16 sps:$4 sm:$0xff]  }
 0x185   :  { %3026 = vmatpush1.bf16.msra.mxu0 %v8444_v29  ;;  %v8530_v29 = vld [vmem:[#allocation5 + $0xa8c] ss:$16 sps:$4 sm:$0xff]   ;;  %v8528_v31 = vld [vmem:[#allocation5 + $0xa88] ss:$16 sps:$4 sm:$0xff]   ;;  %9149 = vrsqrt.f32 %v9562_v35  ;;  %vm5949_vm1 = vcmp.eq.f32.partialorder %v9562_v35, inf  ;;  %vm5951_vm2 = vcmp.eq.f32.partialorder %v9562_v35, 0.0 }
 0x186   :  { %3001 = vmatpush1.bf16.msra.mxu1 %v8441_v28  ;;  %3027 = vmatprep.subr.bf16.mxu0 %v8452_v30  ;;  %v8519_v28 = vld [vmem:[#allocation5 + $0xb60] ss:$16 sps:$4 sm:$0xff]   ;;  %v8527_v30 = vld [vmem:[#allocation5 + $0xb84] ss:$16 sps:$4 sm:$0xff]   ;;  %v8536_v34 = vld [vmem:[#allocation5 + $0xaac] ss:$16 sps:$4 sm:$0xff]   ;;  %9151 = vrsqrt.f32 %v9560_v33 }
 0x187   :  { %3002 = vmatprep.subr.bf16.mxu1 %v8449_v36  ;;  %v8533_v36 = vld [vmem:[#allocation5 + $0xba4] ss:$16 sps:$4 sm:$0xff]   ;;  %vm5942_vm3 = vcmp.eq.f32.partialorder %v9560_v33, inf  ;;  %vm5944_vm6 = vcmp.eq.f32.partialorder %v9560_v33, 0.0 }
 0x189   :  { %3028 = vmatpush1.bf16.msra.mxu0 %v8450_v37  ;;  %v8534_v37 = vld [vmem:[#allocation5 + $0xaa8] ss:$16 sps:$4 sm:$0xff]  }
 0x18a   :  { %3003 = vmatpush1.bf16.msra.mxu1 %v8447_v38  ;;  %3029 = vmatprep.subr.bf16.mxu0 %v8455_v39  ;;  %v8531_v38 = vld [vmem:[#allocation5 + $0xba0] ss:$16 sps:$4 sm:$0xff]   ;;  %v8542_v39 = vld [vmem:[#allocation5 + $0xacc] ss:$16 sps:$4 sm:$0xff]  }
 0x18b   :  { %3374 = vmatprep.subr.bf16.mxu1 %v8458_v42 }
 0x18d   :  { %3005 = vmatmul.mubr.bf16.vlgmr.msra.gmra.mrb[16].mxu1 %v9529_v43  ;;  %3030 = vmatpush1.bf16.msra.mxu0 %v8453_v40 }
 0x18e   :  { %3375 = vmatpush1.bf16.msra.mxu1 %v8456_v44  ;;  %3031 = vmatprep.subr.bf16.mxu0 %v8461_v45  ;;  %v8539_v45 = vld [vmem:[#allocation5 + $0xbc4] ss:$16 sps:$4 sm:$0xff]  }
 0x18f   :  { %3376 = vmatprep.subr.bf16.mxu1 %v8464_v47  ;;  %3406 = vmatprep.mubr.bf16.mxu1 %v9527_v41 }
 0x191   :  { %3032 = vmatpush1.bf16.msra.mxu0 %v8459_v46 }
 0x192   :  { %3377 = vmatpush1.bf16.msra.mxu1 %v8462_v48  ;;  %3033 = vmatprep.subr.bf16.mxu0 %v8467_v49  ;;  %v8537_v48 = vld [vmem:[#allocation5 + $0xbc0] ss:$16 sps:$4 sm:$0xff]   ;;  %v8540_v49 = vld [vmem:[#allocation5 + $0xac8] ss:$16 sps:$4 sm:$0xff]  }
 0x193   :  { %3378 = vmatprep.subr.bf16.mxu1 %v8470_v51 }
 0x195   :  { %3034 = vmatpush1.bf16.msra.mxu0 %v8465_v50  ;;  %v8548_v50 = vld [vmem:[#allocation5 + $0xaec] ss:$16 sps:$4 sm:$0xff]  }
 0x196   :  { %3379 = vmatpush1.bf16.msra.mxu1 %v8468_v52  ;;  %3035 = vmatprep.subr.bf16.mxu0 %v8473_v53 }
 0x197   :  { %3380 = vmatprep.subr.bf16.mxu1 %v8476_v55 }
 0x199   :  { %3036 = vmatpush1.bf16.msra.mxu0 %v8471_v54 }
 0x19a   :  { %3381 = vmatpush1.bf16.msra.mxu1 %v8474_v56  ;;  %3037 = vmatprep.subr.bf16.mxu0 %v8479_v57  ;;  %v8545_v56 = vld [vmem:[#allocation5 + $0xbe4] ss:$16 sps:$4 sm:$0xff]   ;;  %v8546_v57 = vld [vmem:[#allocation5 + $0xae8] ss:$16 sps:$4 sm:$0xff]  }
 0x19b   :  { %3382 = vmatprep.subr.bf16.mxu1 %v8482_v59  ;;  %v8551_v59 = vld [vmem:[#allocation5 + $0xb0c] ss:$16 sps:$4 sm:$0xff]  }
 0x19d   :  { %3038 = vmatpush1.bf16.msra.mxu0 %v8477_v58  ;;  %v8543_v58 = vld [vmem:[#allocation5 + $0xbe0] ss:$16 sps:$4 sm:$0xff]  }
 0x19e   :  { %3383 = vmatpush1.bf16.msra.mxu1 %v8480_v60  ;;  %3039 = vmatprep.subr.bf16.mxu0 %v8485_v61  ;;  %v8549_v60 = vld [vmem:[#allocation5 + $0xb08] ss:$16 sps:$4 sm:$0xff]   ;;  %v8554_v61 = vld [vmem:[#allocation5 + $0xc04] ss:$16 sps:$4 sm:$0xff]  }
 0x19f   :  { %3384 = vmatprep.subr.bf16.mxu1 %v8488_v63  ;;  %v8557_v63 = vld [vmem:[#allocation5 + $0xb2c] ss:$16 sps:$4 sm:$0xff]  }
 0x1a0   :  { %v9566_v4 = vpop.f32.mrb[4].mxu1 }
 0x1a1   :  { %3040 = vmatpush1.bf16.msra.mxu0 %v8483_v62  ;;  %v9568_v5 = vpop.f32.mrb[5].mxu1  ;;  %v5870_v40 = vmul.f32 %v9566_v4, %v9566_v4  ;;  %v8552_v62 = vld [vmem:[#allocation5 + $0xc00] ss:$16 sps:$4 sm:$0xff]   ;;  %v8561_v4 = vld [vmem:[#allocation5 + $0xb48] ss:$16 sps:$4 sm:$0xff]  }
 0x1a2   :  { %3385 = vmatpush1.bf16.msra.mxu1 %v8486_v0  ;;  %3041 = vmatprep.subr.bf16.mxu0 %v8491_v1  ;;  %v1804_v8 = vpop.f32.mrb[6].mxu1  ;;  %v5871_v42 = vmul.f32 %v9568_v5, %v9568_v5  ;;  %v8555_v0 = vld [vmem:[#allocation5 + $0xb28] ss:$16 sps:$4 sm:$0xff]   ;;  %v8560_v1 = vld [vmem:[#allocation5 + $0xc24] ss:$16 sps:$4 sm:$0xff]  }
 0x1a3   :  { %3386 = vmatprep.subr.bf16.mxu1 %v8494_v3  ;;  %v1805_v11 = vpop.f32.mrb[7].mxu1  ;;  %v8563_v3 = vld [vmem:[#allocation5 + $0xb4c] ss:$16 sps:$4 sm:$0xff]   ;;  %v8566_v5 = vld [vmem:[#allocation5 + $0xc44] ss:$16 sps:$4 sm:$0xff]  }
 0x1a4   :  { %v8567_v8 = vld [vmem:[#allocation5 + $0xb68] ss:$16 sps:$4 sm:$0xff]   ;;  %v8575_v11 = vld [vmem:[#allocation5 + $0xb8c] ss:$16 sps:$4 sm:$0xff]  }
 0x1a5   :  { %3042 = vmatpush1.bf16.msra.mxu0 %v8489_v2  ;;  %v8558_v2 = vld [vmem:[#allocation5 + $0xc20] ss:$16 sps:$4 sm:$0xff]  }
 0x1a6   :  { %3387 = vmatpush1.bf16.msra.mxu1 %v8492_v6  ;;  %3043 = vmatprep.subr.bf16.mxu0 %v8497_v7  ;;  %v8564_v6 = vld [vmem:[#allocation5 + $0xc40] ss:$16 sps:$4 sm:$0xff]   ;;  %v8569_v7 = vld [vmem:[#allocation5 + $0xb6c] ss:$16 sps:$4 sm:$0xff]  }
 0x1a7   :  { %3388 = vmatprep.subr.bf16.mxu1 %v8500_v10  ;;  %v8570_v10 = vld [vmem:[#allocation5 + $0xc60] ss:$16 sps:$4 sm:$0xff]  }
 0x1a9   :  { %3044 = vmatpush1.bf16.msra.mxu0 %v8495_v9  ;;  %v8572_v9 = vld [vmem:[#allocation5 + $0xc64] ss:$16 sps:$4 sm:$0xff]  }
 0x1aa   :  { %3389 = vmatpush1.bf16.msra.mxu1 %v8498_v12  ;;  %3415 = vmatprep.subr.bf16.mxu0 %v8506_v14  ;;  %v8573_v12 = vld [vmem:[#allocation5 + $0xb88] ss:$16 sps:$4 sm:$0xff]   ;;  %v8576_v14 = vld [vmem:[#allocation5 + $0xc80] ss:$16 sps:$4 sm:$0xff]  }
 0x1ab   :  { %3390 = vmatprep.subr.bf16.mxu1 %v8503_v13  ;;  %v8578_v13 = vld [vmem:[#allocation5 + $0xc84] ss:$16 sps:$4 sm:$0xff]  }
 0x1ac   :  { %3046 = vmatmul.mubr.bf16.vlgmr.msra.gmra.mrb[20].mxu0 %v9529_v43 }
 0x1ad   :  { %3416 = vmatpush1.bf16.msra.mxu0 %v8504_v15  ;;  %3447 = vmatprep.mubr.bf16.mxu0 %v9527_v41  ;;  %v8581_v15 = vld [vmem:[#allocation5 + $0xbac] ss:$16 sps:$4 sm:$0xff]  }
 0x1ae   :  { %3391 = vmatpush1.bf16.msra.mxu1 %v8501_v16  ;;  %3417 = vmatprep.subr.bf16.mxu0 %v8512_v17  ;;  %v8579_v16 = vld [vmem:[#allocation5 + $0xba8] ss:$16 sps:$4 sm:$0xff]   ;;  %v8584_v17 = vld [vmem:[#allocation5 + $0xca4] ss:$16 sps:$4 sm:$0xff]  }
 0x1af   :  { %3392 = vmatprep.subr.bf16.mxu1 %v8509_v18  ;;  %v8582_v18 = vld [vmem:[#allocation5 + $0xca0] ss:$16 sps:$4 sm:$0xff]  }
 0x1b1   :  { %3418 = vmatpush1.bf16.msra.mxu0 %v8510_v19  ;;  %v8587_v19 = vld [vmem:[#allocation5 + $0xbcc] ss:$16 sps:$4 sm:$0xff]  }
 0x1b2   :  { %3393 = vmatpush1.bf16.msra.mxu1 %v8507_v20  ;;  %3419 = vmatprep.subr.bf16.mxu0 %v8518_v21  ;;  %v8585_v20 = vld [vmem:[#allocation5 + $0xbc8] ss:$16 sps:$4 sm:$0xff]   ;;  %v8590_v21 = vld [vmem:[#allocation5 + $0xcc4] ss:$16 sps:$4 sm:$0xff]  }
 0x1b3   :  { %3394 = vmatprep.subr.bf16.mxu1 %v8515_v22 }
 0x1b5   :  { %3420 = vmatpush1.bf16.msra.mxu0 %v8516_v23 }
 0x1b6   :  { %3395 = vmatpush1.bf16.msra.mxu1 %v8513_v24  ;;  %3421 = vmatprep.subr.bf16.mxu0 %v8524_v25  ;;  %v8588_v24 = vld [vmem:[#allocation5 + $0xcc0] ss:$16 sps:$4 sm:$0xff]   ;;  %v8593_v25 = vld [vmem:[#allocation5 + $0xbec] ss:$16 sps:$4 sm:$0xff]  }
 0x1b7   :  { %3396 = vmatprep.subr.bf16.mxu1 %v8521_v26 }
 0x1b9   :  { %3422 = vmatpush1.bf16.msra.mxu0 %v8522_v27  ;;  %v8591_v27 = vld [vmem:[#allocation5 + $0xbe8] ss:$16 sps:$4 sm:$0xff]  }
 0x1ba   :  { %3397 = vmatpush1.bf16.msra.mxu1 %v8519_v28  ;;  %3423 = vmatprep.subr.bf16.mxu0 %v8530_v29  ;;  %v8596_v28 = vld [vmem:[#allocation5 + $0xce4] ss:$16 sps:$4 sm:$0xff]  }
 0x1bb   :  { %3398 = vmatprep.subr.bf16.mxu1 %v8527_v30  ;;  %v8594_v30 = vld [vmem:[#allocation5 + $0xce0] ss:$16 sps:$4 sm:$0xff]  }
 0x1bd   :  { %3424 = vmatpush1.bf16.msra.mxu0 %v8528_v31  ;;  %v8599_v31 = vld [vmem:[#allocation5 + $0xd04] ss:$16 sps:$4 sm:$0xff]  }
 0x1be   :  { %3399 = vmatpush1.bf16.msra.mxu1 %v8525_v32  ;;  %3425 = vmatprep.subr.bf16.mxu0 %v8536_v34  ;;  %v8602_v32 = vld [vmem:[#allocation5 + $0xc0c] ss:$16 sps:$4 sm:$0xff]   ;;  %v8600_v34 = vld [vmem:[#allocation5 + $0xc08] ss:$16 sps:$4 sm:$0xff]  }
 0x1bf   :  { %v1841_v44 = vpop.f32.mrb[8].mxu0  ;;  %3400 = vmatprep.subr.bf16.mxu1 %v8533_v36  ;;  %v8597_v36 = vld [vmem:[#allocation5 + $0xd00] ss:$16 sps:$4 sm:$0xff]  }
 0x1c0   :  { %v5894_v46 = vmul.f32 %v1841_v44, %v1841_v44  ;;  %v1843_v47 = vpop.f32.mrb[9].mxu0  ;;  %v8611_v44 = vld [vmem:[#allocation5 + $0xd44] ss:$16 sps:$4 sm:$0xff]  }
 0x1c1   :  { %v5895_v51 = vmul.f32 %v1843_v47, %v1843_v47  ;;  %v1845_v52 = vpop.f32.mrb[10].mxu0  ;;  %3426 = vmatpush1.bf16.msra.mxu0 %v8534_v37  ;;  %v8608_v37 = vld [vmem:[#allocation5 + $0xc2c] ss:$16 sps:$4 sm:$0xff]  }
 0x1c2   :  { %v9576_v53 = vadd.f32 %v5894_v46, %v5870_v40  ;;  %3401 = vmatpush1.bf16.msra.mxu1 %v8531_v38  ;;  %v1846_v54 = vpop.f32.mrb[11].mxu0  ;;  %3427 = vmatprep.subr.bf16.mxu0 %v8542_v39  ;;  %v8605_v38 = vld [vmem:[#allocation5 + $0xd24] ss:$16 sps:$4 sm:$0xff]   ;;  %v8606_v39 = vld [vmem:[#allocation5 + $0xc28] ss:$16 sps:$4 sm:$0xff]  }
 0x1c3   :  { %v9578_v55 = vadd.f32 %v5895_v51, %v5871_v42  ;;  %3402 = vmatprep.subr.bf16.mxu1 %v8539_v45  ;;  %v8603_v40 = vld [vmem:[#allocation5 + $0xd20] ss:$16 sps:$4 sm:$0xff]   ;;  %v8614_v42 = vld [vmem:[#allocation5 + $0xc4c] ss:$16 sps:$4 sm:$0xff]   ;;  %v8612_v45 = vld [vmem:[#allocation5 + $0xc48] ss:$16 sps:$4 sm:$0xff]  }
 0x1c4   :  { %v8609_v46 = vld [vmem:[#allocation5 + $0xd40] ss:$16 sps:$4 sm:$0xff]   ;;  %v8620_v47 = vld [vmem:[#allocation5 + $0xc6c] ss:$16 sps:$4 sm:$0xff]   ;;  %v8623_v52 = vld [vmem:[#allocation5 + $0xd84] ss:$16 sps:$4 sm:$0xff]  }
 0x1c5   :  { %3428 = vmatpush1.bf16.msra.mxu0 %v8540_v49  ;;  %v8618_v49 = vld [vmem:[#allocation5 + $0xc68] ss:$16 sps:$4 sm:$0xff]   ;;  %v8626_v51 = vld [vmem:[#allocation5 + $0xc8c] ss:$16 sps:$4 sm:$0xff]   ;;  %9153 = vrsqrt.f32 %v9578_v55  ;;  %vm5963_vm4 = vcmp.eq.f32.partialorder %v9578_v55, inf  ;;  %vm5965_vm7 = vcmp.eq.f32.partialorder %v9578_v55, 0.0 }
 0x1c6   :  { %3403 = vmatpush1.bf16.msra.mxu1 %v8537_v48  ;;  %3429 = vmatprep.subr.bf16.mxu0 %v8548_v50  ;;  %v8617_v48 = vld [vmem:[#allocation5 + $0xd64] ss:$16 sps:$4 sm:$0xff]   ;;  %v8615_v50 = vld [vmem:[#allocation5 + $0xd60] ss:$16 sps:$4 sm:$0xff]   ;;  %v8624_v54 = vld [vmem:[#allocation5 + $0xc88] ss:$16 sps:$4 sm:$0xff]  }
 0x1c7   :  { %3404 = vmatprep.subr.bf16.mxu1 %v8545_v56  ;;  %v8621_v56 = vld [vmem:[#allocation5 + $0xd80] ss:$16 sps:$4 sm:$0xff]   ;;  %vm5956_vm9 = vcmp.eq.f32.partialorder %v9576_v53, inf  ;;  %vm5958_vm12 = vcmp.eq.f32.partialorder %v9576_v53, 0.0 }
 0x1c9   :  { %3430 = vmatpush1.bf16.msra.mxu0 %v8546_v57  ;;  %v8632_v57 = vld [vmem:[#allocation5 + $0xcac] ss:$16 sps:$4 sm:$0xff]  }
 0x1ca   :  { %3405 = vmatpush1.bf16.msra.mxu1 %v8543_v58  ;;  %3431 = vmatprep.subr.bf16.mxu0 %v8551_v59  ;;  %v8629_v58 = vld [vmem:[#allocation5 + $0xda4] ss:$16 sps:$4 sm:$0xff]   ;;  %v8630_v59 = vld [vmem:[#allocation5 + $0xca8] ss:$16 sps:$4 sm:$0xff]  }
 0x1cb   :  { %3776 = vmatprep.subr.bf16.mxu1 %v8554_v61  ;;  %v8638_v61 = vld [vmem:[#allocation5 + $0xccc] ss:$16 sps:$4 sm:$0xff]  }
 0x1cd   :  { %3407 = vmatmul.mubr.bf16.vlgmr.msra.gmra.mrb[20].mxu1 %v9529_v43  ;;  %3432 = vmatpush1.bf16.msra.mxu0 %v8549_v60  ;;  %v8627_v60 = vld [vmem:[#allocation5 + $0xda0] ss:$16 sps:$4 sm:$0xff]  }
 0x1ce   :  { %3777 = vmatpush1.bf16.msra.mxu1 %v8552_v62  ;;  %3433 = vmatprep.subr.bf16.mxu0 %v8557_v63 }
 0x1cf   :  { %3778 = vmatprep.subr.bf16.mxu1 %v8560_v1  ;;  %3808 = vmatprep.mubr.bf16.mxu1 %v9527_v41  ;;  %v8635_v1 = vld [vmem:[#allocation5 + $0xdc4] ss:$16 sps:$4 sm:$0xff]  }
 0x1d1   :  { %3434 = vmatpush1.bf16.msra.mxu0 %v8555_v0 }
 0x1d2   :  { %3779 = vmatpush1.bf16.msra.mxu1 %v8558_v2  ;;  %3435 = vmatprep.subr.bf16.mxu0 %v8563_v3 }
 0x1d3   :  { %3780 = vmatprep.subr.bf16.mxu1 %v8566_v5  ;;  %v8636_v5 = vld [vmem:[#allocation5 + $0xcc8] ss:$16 sps:$4 sm:$0xff]  }
 0x1d5   :  { %3436 = vmatpush1.bf16.msra.mxu0 %v8561_v4  ;;  %v8633_v4 = vld [vmem:[#allocation5 + $0xdc0] ss:$16 sps:$4 sm:$0xff]  }
 0x1d6   :  { %3781 = vmatpush1.bf16.msra.mxu1 %v8564_v6  ;;  %3437 = vmatprep.subr.bf16.mxu0 %v8569_v7  ;;  %v8644_v6 = vld [vmem:[#allocation5 + $0xcec] ss:$16 sps:$4 sm:$0xff]  }
 0x1d7   :  { %3782 = vmatprep.subr.bf16.mxu1 %v8572_v9 }
 0x1d9   :  { %3438 = vmatpush1.bf16.msra.mxu0 %v8567_v8 }
 0x1da   :  { %3783 = vmatpush1.bf16.msra.mxu1 %v8570_v10  ;;  %3439 = vmatprep.subr.bf16.mxu0 %v8575_v11 }
 0x1db   :  { %3784 = vmatprep.subr.bf16.mxu1 %v8578_v13  ;;  %v8642_v13 = vld [vmem:[#allocation5 + $0xce8] ss:$16 sps:$4 sm:$0xff]  }
 0x1dd   :  { %3440 = vmatpush1.bf16.msra.mxu0 %v8573_v12  ;;  %v8641_v12 = vld [vmem:[#allocation5 + $0xde4] ss:$16 sps:$4 sm:$0xff]  }
 0x1de   :  { %3785 = vmatpush1.bf16.msra.mxu1 %v8576_v14  ;;  %3441 = vmatprep.subr.bf16.mxu0 %v8581_v15  ;;  %v8639_v14 = vld [vmem:[#allocation5 + $0xde0] ss:$16 sps:$4 sm:$0xff]   ;;  %v8647_v15 = vld [vmem:[#allocation5 + $0xd0c] ss:$16 sps:$4 sm:$0xff]  }
 0x1df   :  { %3786 = vmatprep.subr.bf16.mxu1 %v8584_v17  ;;  %v8650_v17 = vld [vmem:[#allocation5 + $0xe04] ss:$16 sps:$4 sm:$0xff]  }
 0x1e0   :  { %v9582_v22 = vpop.f32.mrb[8].mxu1 }
 0x1e1   :  { %3442 = vmatpush1.bf16.msra.mxu0 %v8579_v16  ;;  %v9584_v23 = vpop.f32.mrb[9].mxu1  ;;  %v5872_v62 = vmul.f32 %v9582_v22, %v9582_v22  ;;  %v8645_v16 = vld [vmem:[#allocation5 + $0xd08] ss:$16 sps:$4 sm:$0xff]   ;;  %v8654_v22 = vld [vmem:[#allocation5 + $0xe20] ss:$16 sps:$4 sm:$0xff]  }
 0x1e2   :  { %3787 = vmatpush1.bf16.msra.mxu1 %v8582_v18  ;;  %3443 = vmatprep.subr.bf16.mxu0 %v8587_v19  ;;  %v2206_v26 = vpop.f32.mrb[10].mxu1  ;;  %v5873_v63 = vmul.f32 %v9584_v23, %v9584_v23  ;;  %v8648_v18 = vld [vmem:[#allocation5 + $0xe00] ss:$16 sps:$4 sm:$0xff]   ;;  %v8653_v19 = vld [vmem:[#allocation5 + $0xd2c] ss:$16 sps:$4 sm:$0xff]  }
 0x1e3   :  { %3788 = vmatprep.subr.bf16.mxu1 %v8590_v21  ;;  %v2207_v29 = vpop.f32.mrb[11].mxu1  ;;  %v8656_v21 = vld [vmem:[#allocation5 + $0xe24] ss:$16 sps:$4 sm:$0xff]   ;;  %v8659_v23 = vld [vmem:[#allocation5 + $0xd4c] ss:$16 sps:$4 sm:$0xff]  }
 0x1e4   :  { %v8660_v26 = vld [vmem:[#allocation5 + $0xe40] ss:$16 sps:$4 sm:$0xff]   ;;  %v8668_v29 = vld [vmem:[#allocation5 + $0xe64] ss:$16 sps:$4 sm:$0xff]  }
 0x1e5   :  { %3444 = vmatpush1.bf16.msra.mxu0 %v8585_v20  ;;  %v8651_v20 = vld [vmem:[#allocation5 + $0xd28] ss:$16 sps:$4 sm:$0xff]  }
 0x1e6   :  { %3789 = vmatpush1.bf16.msra.mxu1 %v8588_v24  ;;  %3445 = vmatprep.subr.bf16.mxu0 %v8593_v25  ;;  %v8657_v24 = vld [vmem:[#allocation5 + $0xd48] ss:$16 sps:$4 sm:$0xff]   ;;  %v8662_v25 = vld [vmem:[#allocation5 + $0xe44] ss:$16 sps:$4 sm:$0xff]  }
 0x1e7   :  { %3790 = vmatprep.subr.bf16.mxu1 %v8596_v28  ;;  %v8663_v28 = vld [vmem:[#allocation5 + $0xd68] ss:$16 sps:$4 sm:$0xff]  }
 0x1e9   :  { %3446 = vmatpush1.bf16.msra.mxu0 %v8591_v27  ;;  %v8665_v27 = vld [vmem:[#allocation5 + $0xd6c] ss:$16 sps:$4 sm:$0xff]  }
 0x1ea   :  { %3791 = vmatpush1.bf16.msra.mxu1 %v8594_v30  ;;  %3817 = vmatprep.subr.bf16.mxu0 %v8602_v32  ;;  %v8666_v30 = vld [vmem:[#allocation5 + $0xe60] ss:$16 sps:$4 sm:$0xff]   ;;  %v8674_v32 = vld [vmem:[#allocation5 + $0xe84] ss:$16 sps:$4 sm:$0xff]  }
 0x1eb   :  { %3792 = vmatprep.subr.bf16.mxu1 %v8599_v31  ;;  %v8671_v31 = vld [vmem:[#allocation5 + $0xd8c] ss:$16 sps:$4 sm:$0xff]  }
 0x1ec   :  { %3448 = vmatmul.mubr.bf16.vlgmr.msra.gmra.mrb[24].mxu0 %v9529_v43 }
 0x1ed   :  { %3818 = vmatpush1.bf16.msra.mxu0 %v8600_v34  ;;  %3849 = vmatprep.mubr.bf16.mxu0 %v9527_v41  ;;  %v8669_v34 = vld [vmem:[#allocation5 + $0xd88] ss:$16 sps:$4 sm:$0xff]  }
 0x1ee   :  { %3793 = vmatpush1.bf16.msra.mxu1 %v8597_v36  ;;  %3819 = vmatprep.subr.bf16.mxu0 %v8608_v37  ;;  %v8672_v36 = vld [vmem:[#allocation5 + $0xe80] ss:$16 sps:$4 sm:$0xff]   ;;  %v8677_v37 = vld [vmem:[#allocation5 + $0xdac] ss:$16 sps:$4 sm:$0xff]  }
 0x1ef   :  { %3794 = vmatprep.subr.bf16.mxu1 %v8605_v38  ;;  %v8680_v38 = vld [vmem:[#allocation5 + $0xea4] ss:$16 sps:$4 sm:$0xff]  }
 0x1f1   :  { %3820 = vmatpush1.bf16.msra.mxu0 %v8606_v39  ;;  %v8675_v39 = vld [vmem:[#allocation5 + $0xda8] ss:$16 sps:$4 sm:$0xff]  }
 0x1f2   :  { %3795 = vmatpush1.bf16.msra.mxu1 %v8603_v40  ;;  %3821 = vmatprep.subr.bf16.mxu0 %v8614_v42  ;;  %v8678_v40 = vld [vmem:[#allocation5 + $0xea0] ss:$16 sps:$4 sm:$0xff]   ;;  %v8683_v42 = vld [vmem:[#allocation5 + $0xdcc] ss:$16 sps:$4 sm:$0xff]  }
 0x1f3   :  { %3796 = vmatprep.subr.bf16.mxu1 %v8611_v44  ;;  %v8686_v44 = vld [vmem:[#allocation5 + $0xec4] ss:$16 sps:$4 sm:$0xff]  }
 0x1f5   :  { %3822 = vmatpush1.bf16.msra.mxu0 %v8612_v45 }
 0x1f6   :  { %3797 = vmatpush1.bf16.msra.mxu1 %v8609_v46  ;;  %3823 = vmatprep.subr.bf16.mxu0 %v8620_v47  ;;  %v8681_v46 = vld [vmem:[#allocation5 + $0xdc8] ss:$16 sps:$4 sm:$0xff]  }
 0x1f7   :  { %3798 = vmatprep.subr.bf16.mxu1 %v8617_v48  ;;  %v8684_v48 = vld [vmem:[#allocation5 + $0xec0] ss:$16 sps:$4 sm:$0xff]  }
 0x1f9   :  { %3824 = vmatpush1.bf16.msra.mxu0 %v8618_v49  ;;  %v8689_v49 = vld [vmem:[#allocation5 + $0xdec] ss:$16 sps:$4 sm:$0xff]  }
 0x1fa   :  { %3799 = vmatpush1.bf16.msra.mxu1 %v8615_v50  ;;  %3825 = vmatprep.subr.bf16.mxu0 %v8626_v51  ;;  %v8692_v51 = vld [vmem:[#allocation5 + $0xee4] ss:$16 sps:$4 sm:$0xff]  }
 0x1fb   :  { %3800 = vmatprep.subr.bf16.mxu1 %v8623_v52 }
 0x1fd   :  { %3826 = vmatpush1.bf16.msra.mxu0 %v8624_v54  ;;  %v8687_v54 = vld [vmem:[#allocation5 + $0xde8] ss:$16 sps:$4 sm:$0xff]  }
 0x1fe   :  { %3801 = vmatpush1.bf16.msra.mxu1 %v8621_v56  ;;  %3827 = vmatprep.subr.bf16.mxu0 %v8632_v57  ;;  %v8690_v56 = vld [vmem:[#allocation5 + $0xee0] ss:$16 sps:$4 sm:$0xff]   ;;  %v8698_v57 = vld [vmem:[#allocation5 + $0xe0c] ss:$16 sps:$4 sm:$0xff]  }
 0x1ff   :  { %v2243_v0 = vpop.f32.mrb[12].mxu0  ;;  %3802 = vmatprep.subr.bf16.mxu1 %v8629_v58  ;;  %v8695_v58 = vld [vmem:[#allocation5 + $0xf04] ss:$16 sps:$4 sm:$0xff]  }
 0x200   :  { %v5896_v2 = vmul.f32 %v2243_v0, %v2243_v0  ;;  %v2245_v3 = vpop.f32.mrb[13].mxu0  ;;  %v8699_v0 = vld [vmem:[#allocation5 + $0xf20] ss:$16 sps:$4 sm:$0xff]  }
 0x201   :  { %v5897_v7 = vmul.f32 %v2245_v3, %v2245_v3  ;;  %v2247_v8 = vpop.f32.mrb[14].mxu0  ;;  %3828 = vmatpush1.bf16.msra.mxu0 %v8630_v59  ;;  %v8696_v59 = vld [vmem:[#allocation5 + $0xe08] ss:$16 sps:$4 sm:$0xff]  }
 0x202   :  { %v9592_v9 = vadd.f32 %v5896_v2, %v5872_v62  ;;  %3803 = vmatpush1.bf16.msra.mxu1 %v8627_v60  ;;  %v2248_v10 = vpop.f32.mrb[15].mxu0  ;;  %3829 = vmatprep.subr.bf16.mxu0 %v8638_v61  ;;  %v8693_v60 = vld [vmem:[#allocation5 + $0xf00] ss:$16 sps:$4 sm:$0xff]   ;;  %v8704_v61 = vld [vmem:[#allocation5 + $0xe2c] ss:$16 sps:$4 sm:$0xff]  }
 0x203   :  { %v9594_v11 = vadd.f32 %v5897_v7, %v5873_v63  ;;  %3804 = vmatprep.subr.bf16.mxu1 %v8635_v1  ;;  %v8701_v62 = vld [vmem:[#allocation5 + $0xf24] ss:$16 sps:$4 sm:$0xff]   ;;  %v8702_v63 = vld [vmem:[#allocation5 + $0xe28] ss:$16 sps:$4 sm:$0xff]   ;;  %v8710_v1 = vld [vmem:[#allocation5 + $0xe4c] ss:$16 sps:$4 sm:$0xff]  }
 0x204   :  { %v8707_v2 = vld [vmem:[#allocation5 + $0xf44] ss:$16 sps:$4 sm:$0xff]   ;;  %v8708_v3 = vld [vmem:[#allocation5 + $0xe48] ss:$16 sps:$4 sm:$0xff]   ;;  %v8711_v8 = vld [vmem:[#allocation5 + $0xf60] ss:$16 sps:$4 sm:$0xff]  }
 0x205   :  { %3830 = vmatpush1.bf16.msra.mxu0 %v8636_v5  ;;  %v8716_v5 = vld [vmem:[#allocation5 + $0xe6c] ss:$16 sps:$4 sm:$0xff]   ;;  %v8714_v7 = vld [vmem:[#allocation5 + $0xe68] ss:$16 sps:$4 sm:$0xff]   ;;  %9155 = vrsqrt.f32 %v9594_v11  ;;  %vm5977_vm5 = vcmp.eq.f32.partialorder %v9594_v11, inf  ;;  %vm5979_vm8 = vcmp.eq.f32.partialorder %v9594_v11, 0.0 }
 0x206   :  { %3805 = vmatpush1.bf16.msra.mxu1 %v8633_v4  ;;  %3831 = vmatprep.subr.bf16.mxu0 %v8644_v6  ;;  %v8705_v4 = vld [vmem:[#allocation5 + $0xf40] ss:$16 sps:$4 sm:$0xff]   ;;  %v8713_v6 = vld [vmem:[#allocation5 + $0xf64] ss:$16 sps:$4 sm:$0xff]   ;;  %v8722_v10 = vld [vmem:[#allocation5 + $0xe8c] ss:$16 sps:$4 sm:$0xff]   ;;  %9157 = vrsqrt.f32 %v9576_v53 }
 0x207   :  { %3806 = vmatprep.subr.bf16.mxu1 %v8641_v12  ;;  %v8719_v12 = vld [vmem:[#allocation5 + $0xf84] ss:$16 sps:$4 sm:$0xff]   ;;  %9159 = vrsqrt.f32 %v9592_v9  ;;  %vm5970_vm10 = vcmp.eq.f32.partialorder %v9592_v9, inf  ;;  %vm5972_vm14 = vcmp.eq.f32.partialorder %v9592_v9, 0.0 }
 0x209   :  { %3832 = vmatpush1.bf16.msra.mxu0 %v8642_v13  ;;  %v8720_v13 = vld [vmem:[#allocation5 + $0xe88] ss:$16 sps:$4 sm:$0xff]  }
 0x20a   :  { %3807 = vmatpush1.bf16.msra.mxu1 %v8639_v14  ;;  %3833 = vmatprep.subr.bf16.mxu0 %v8647_v15  ;;  %v8717_v14 = vld [vmem:[#allocation5 + $0xf80] ss:$16 sps:$4 sm:$0xff]   ;;  %v8728_v15 = vld [vmem:[#allocation5 + $0xeac] ss:$16 sps:$4 sm:$0xff]  }
 0x20b   :  { %4178 = vmatprep.subr.bf16.mxu1 %v8650_v17  ;;  %v8726_v17 = vld [vmem:[#allocation5 + $0xea8] ss:$16 sps:$4 sm:$0xff]  }
 0x20d   :  { %3809 = vmatmul.mubr.bf16.vlgmr.msra.gmra.mrb[24].mxu1 %v9529_v43  ;;  %3834 = vmatpush1.bf16.msra.mxu0 %v8645_v16  ;;  %v8725_v16 = vld [vmem:[#allocation5 + $0xfa4] ss:$16 sps:$4 sm:$0xff]  }
 0x20e   :  { %4179 = vmatpush1.bf16.msra.mxu1 %v8648_v18  ;;  %3835 = vmatprep.subr.bf16.mxu0 %v8653_v19  ;;  %v8723_v19 = vld [vmem:[#allocation5 + $0xfa0] ss:$16 sps:$4 sm:$0xff]  }
 0x20f   :  { %4180 = vmatprep.subr.bf16.mxu1 %v8656_v21  ;;  %4210 = vmatprep.mubr.bf16.mxu1 %v9527_v41 }
 0x211   :  { %3836 = vmatpush1.bf16.msra.mxu0 %v8651_v20  ;;  %v8734_v20 = vld [vmem:[#allocation5 + $0xecc] ss:$16 sps:$4 sm:$0xff]  }
 0x212   :  { %4181 = vmatpush1.bf16.msra.mxu1 %v8654_v22  ;;  %3837 = vmatprep.subr.bf16.mxu0 %v8659_v23  ;;  %v8731_v23 = vld [vmem:[#allocation5 + $0xfc4] ss:$16 sps:$4 sm:$0xff]  }
 0x213   :  { %4182 = vmatprep.subr.bf16.mxu1 %v8662_v25 }
 0x215   :  { %3838 = vmatpush1.bf16.msra.mxu0 %v8657_v24 }
 0x216   :  { %4183 = vmatpush1.bf16.msra.mxu1 %v8660_v26  ;;  %3839 = vmatprep.subr.bf16.mxu0 %v8665_v27 }
 0x217   :  { %4184 = vmatprep.subr.bf16.mxu1 %v8668_v29 }
 0x219   :  { %3840 = vmatpush1.bf16.msra.mxu0 %v8663_v28  ;;  %v8732_v28 = vld [vmem:[#allocation5 + $0xec8] ss:$16 sps:$4 sm:$0xff]  }
 0x21a   :  { %4185 = vmatpush1.bf16.msra.mxu1 %v8666_v30  ;;  %3841 = vmatprep.subr.bf16.mxu0 %v8671_v31  ;;  %v8729_v31 = vld [vmem:[#allocation5 + $0xfc0] ss:$16 sps:$4 sm:$0xff]  }
 0x21b   :  { %4186 = vmatprep.subr.bf16.mxu1 %v8674_v32  ;;  %v8740_v32 = vld [vmem:[#allocation5 + $0xeec] ss:$16 sps:$4 sm:$0xff]  }
 0x21d   :  { %3842 = vmatpush1.bf16.msra.mxu0 %v8669_v34 }
 0x21e   :  { %4187 = vmatpush1.bf16.msra.mxu1 %v8672_v36  ;;  %3843 = vmatprep.subr.bf16.mxu0 %v8677_v37  ;;  %v8737_v36 = vld [vmem:[#allocation5 + $0xfe4] ss:$16 sps:$4 sm:$0xff]   ;;  %v8738_v37 = vld [vmem:[#allocation5 + $0xee8] ss:$16 sps:$4 sm:$0xff]  }
 0x21f   :  { %4188 = vmatprep.subr.bf16.mxu1 %v8680_v38  ;;  %v8735_v38 = vld [vmem:[#allocation5 + $0xfe0] ss:$16 sps:$4 sm:$0xff]  }
 0x220   :  { %v9598_v45 = vpop.f32.mrb[12].mxu1 }
 0x221   :  { %3844 = vmatpush1.bf16.msra.mxu0 %v8675_v39  ;;  %v9600_v47 = vpop.f32.mrb[13].mxu1  ;;  %v5874_v18 = vmul.f32 %v9598_v45, %v9598_v45  ;;  %v8743_v39 = vld [vmem:[#allocation5 + $0xf0c] ss:$16 sps:$4 sm:$0xff]  }
 0x222   :  { %4189 = vmatpush1.bf16.msra.mxu1 %v8678_v40  ;;  %3845 = vmatprep.subr.bf16.mxu0 %v8683_v42  ;;  %v2608_v50 = vpop.f32.mrb[14].mxu1  ;;  %v5875_v21 = vmul.f32 %v9600_v47, %v9600_v47  ;;  %v8746_v40 = vld [vmem:[#allocation5 + $0x1004] ss:$16 sps:$4 sm:$0xff]   ;;  %v8741_v42 = vld [vmem:[#allocation5 + $0xf08] ss:$16 sps:$4 sm:$0xff]  }
 0x223   :  { %4190 = vmatprep.subr.bf16.mxu1 %v8686_v44  ;;  %v2609_v52 = vpop.f32.mrb[15].mxu1  ;;  %v8744_v44 = vld [vmem:[#allocation5 + $0x1000] ss:$16 sps:$4 sm:$0xff]   ;;  %v8749_v45 = vld [vmem:[#allocation5 + $0xf2c] ss:$16 sps:$4 sm:$0xff]  }
 0x224   :  { %v8747_v47 = vld [vmem:[#allocation5 + $0xf28] ss:$16 sps:$4 sm:$0xff]   ;;  %v8758_v50 = vld [vmem:[#allocation5 + $0x1044] ss:$16 sps:$4 sm:$0xff]   ;;  %v8756_v52 = vld [vmem:[#allocation5 + $0x1040] ss:$16 sps:$4 sm:$0xff]  }
 0x225   :  { %3846 = vmatpush1.bf16.msra.mxu0 %v8681_v46  ;;  %v8752_v46 = vld [vmem:[#allocation5 + $0x1024] ss:$16 sps:$4 sm:$0xff]  }
 0x226   :  { %4191 = vmatpush1.bf16.msra.mxu1 %v8684_v48  ;;  %3847 = vmatprep.subr.bf16.mxu0 %v8689_v49  ;;  %v8750_v48 = vld [vmem:[#allocation5 + $0x1020] ss:$16 sps:$4 sm:$0xff]   ;;  %v8755_v49 = vld [vmem:[#allocation5 + $0xf4c] ss:$16 sps:$4 sm:$0xff]  }
 0x227   :  { %4192 = vmatprep.subr.bf16.mxu1 %v8692_v51  ;;  %v8753_v51 = vld [vmem:[#allocation5 + $0xf48] ss:$16 sps:$4 sm:$0xff]  }
 0x229   :  { %3848 = vmatpush1.bf16.msra.mxu0 %v8687_v54  ;;  %v8761_v54 = vld [vmem:[#allocation5 + $0xf6c] ss:$16 sps:$4 sm:$0xff]  }
 0x22a   :  { %4193 = vmatpush1.bf16.msra.mxu1 %v8690_v56  ;;  %4219 = vmatprep.subr.bf16.mxu0 %v8698_v57  ;;  %v8764_v56 = vld [vmem:[#allocation5 + $0x1064] ss:$16 sps:$4 sm:$0xff]   ;;  %v8759_v57 = vld [vmem:[#allocation5 + $0xf68] ss:$16 sps:$4 sm:$0xff]  }
 0x22b   :  { %4194 = vmatprep.subr.bf16.mxu1 %v8695_v58  ;;  %v8762_v58 = vld [vmem:[#allocation5 + $0x1060] ss:$16 sps:$4 sm:$0xff]  }
 0x22c   :  { %3850 = vmatmul.mubr.bf16.vlgmr.msra.gmra.mrb[28].mxu0 %v9529_v43 }
 0x22d   :  { %4220 = vmatpush1.bf16.msra.mxu0 %v8696_v59  ;;  %4251 = vmatprep.mubr.bf16.mxu0 %v9527_v41  ;;  %v8767_v59 = vld [vmem:[#allocation5 + $0xf8c] ss:$16 sps:$4 sm:$0xff]  }
 0x22e   :  { %4195 = vmatpush1.bf16.msra.mxu1 %v8693_v60  ;;  %4221 = vmatprep.subr.bf16.mxu0 %v8704_v61  ;;  %v8770_v60 = vld [vmem:[#allocation5 + $0x1084] ss:$16 sps:$4 sm:$0xff]   ;;  %v8765_v61 = vld [vmem:[#allocation5 + $0xf88] ss:$16 sps:$4 sm:$0xff]  }
 0x22f   :  { %4196 = vmatprep.subr.bf16.mxu1 %v8701_v62  ;;  %v8768_v62 = vld [vmem:[#allocation5 + $0x1080] ss:$16 sps:$4 sm:$0xff]  }
 0x231   :  { %4222 = vmatpush1.bf16.msra.mxu0 %v8702_v63  ;;  %v8773_v63 = vld [vmem:[#allocation5 + $0xfac] ss:$16 sps:$4 sm:$0xff]  }
 0x232   :  { %4197 = vmatpush1.bf16.msra.mxu1 %v8699_v0  ;;  %4223 = vmatprep.subr.bf16.mxu0 %v8710_v1  ;;  %v8776_v0 = vld [vmem:[#allocation5 + $0x10a4] ss:$16 sps:$4 sm:$0xff]   ;;  %v8771_v1 = vld [vmem:[#allocation5 + $0xfa8] ss:$16 sps:$4 sm:$0xff]  }
 0x233   :  { %4198 = vmatprep.subr.bf16.mxu1 %v8707_v2  ;;  %v8774_v2 = vld [vmem:[#allocation5 + $0x10a0] ss:$16 sps:$4 sm:$0xff]  }
 0x235   :  { %4224 = vmatpush1.bf16.msra.mxu0 %v8708_v3  ;;  %v8779_v3 = vld [vmem:[#allocation5 + $0xfcc] ss:$16 sps:$4 sm:$0xff]  }
 0x236   :  { %4199 = vmatpush1.bf16.msra.mxu1 %v8705_v4  ;;  %4225 = vmatprep.subr.bf16.mxu0 %v8716_v5  ;;  %v8782_v4 = vld [vmem:[#allocation5 + $0x10c4] ss:$16 sps:$4 sm:$0xff]  }
 0x237   :  { %4200 = vmatprep.subr.bf16.mxu1 %v8713_v6  ;;  %v8777_v6 = vld [vmem:[#allocation5 + $0xfc8] ss:$16 sps:$4 sm:$0xff]  }
 0x239   :  { %4226 = vmatpush1.bf16.msra.mxu0 %v8714_v7 }
 0x23a   :  { %4201 = vmatpush1.bf16.msra.mxu1 %v8711_v8  ;;  %4227 = vmatprep.subr.bf16.mxu0 %v8722_v10  ;;  %v8780_v8 = vld [vmem:[#allocation5 + $0x10c0] ss:$16 sps:$4 sm:$0xff]   ;;  %v8785_v10 = vld [vmem:[#allocation5 + $0xfec] ss:$16 sps:$4 sm:$0xff]  }
 0x23b   :  { %4202 = vmatprep.subr.bf16.mxu1 %v8719_v12 }
 0x23d   :  { %4228 = vmatpush1.bf16.msra.mxu0 %v8720_v13  ;;  %v8788_v13 = vld [vmem:[#allocation5 + $0x10e4] ss:$16 sps:$4 sm:$0xff]  }
 0x23e   :  { %4203 = vmatpush1.bf16.msra.mxu1 %v8717_v14  ;;  %4229 = vmatprep.subr.bf16.mxu0 %v8728_v15  ;;  %v8783_v15 = vld [vmem:[#allocation5 + $0xfe8] ss:$16 sps:$4 sm:$0xff]  }
 0x23f   :  { %v2645_v22 = vpop.f32.mrb[16].mxu0  ;;  %4204 = vmatprep.subr.bf16.mxu1 %v8725_v16  ;;  %v8786_v16 = vld [vmem:[#allocation5 + $0x10e0] ss:$16 sps:$4 sm:$0xff]  }
 0x240   :  { %v5898_v24 = vmul.f32 %v2645_v22, %v2645_v22  ;;  %v2647_v25 = vpop.f32.mrb[17].mxu0  ;;  %v8797_v22 = vld [vmem:[#allocation5 + $0x1124] ss:$16 sps:$4 sm:$0xff]  }
 0x241   :  { %v5899_v26 = vmul.f32 %v2647_v25, %v2647_v25  ;;  %v2649_v27 = vpop.f32.mrb[18].mxu0  ;;  %4230 = vmatpush1.bf16.msra.mxu0 %v8726_v17  ;;  %v8794_v17 = vld [vmem:[#allocation5 + $0x100c] ss:$16 sps:$4 sm:$0xff]  }
 0x242   :  { %v9608_v29 = vadd.f32 %v5898_v24, %v5874_v18  ;;  %4205 = vmatpush1.bf16.msra.mxu1 %v8723_v19  ;;  %v2650_v30 = vpop.f32.mrb[19].mxu0  ;;  %4231 = vmatprep.subr.bf16.mxu0 %v8734_v20  ;;  %v8791_v18 = vld [vmem:[#allocation5 + $0x1104] ss:$16 sps:$4 sm:$0xff]   ;;  %v8792_v19 = vld [vmem:[#allocation5 + $0x1008] ss:$16 sps:$4 sm:$0xff]  }
 0x243   :  { %v9610_v34 = vadd.f32 %v5899_v26, %v5875_v21  ;;  %4206 = vmatprep.subr.bf16.mxu1 %v8731_v23  ;;  %v8789_v20 = vld [vmem:[#allocation5 + $0x1100] ss:$16 sps:$4 sm:$0xff]   ;;  %v8800_v21 = vld [vmem:[#allocation5 + $0x102c] ss:$16 sps:$4 sm:$0xff]   ;;  %v8798_v23 = vld [vmem:[#allocation5 + $0x1028] ss:$16 sps:$4 sm:$0xff]  }
 0x244   :  { %v8795_v24 = vld [vmem:[#allocation5 + $0x1120] ss:$16 sps:$4 sm:$0xff]   ;;  %v8806_v25 = vld [vmem:[#allocation5 + $0x104c] ss:$16 sps:$4 sm:$0xff]   ;;  %v8803_v26 = vld [vmem:[#allocation5 + $0x1144] ss:$16 sps:$4 sm:$0xff]  }
 0x245   :  { %4232 = vmatpush1.bf16.msra.mxu0 %v8732_v28  ;;  %v8804_v27 = vld [vmem:[#allocation5 + $0x1048] ss:$16 sps:$4 sm:$0xff]   ;;  %v8801_v28 = vld [vmem:[#allocation5 + $0x1140] ss:$16 sps:$4 sm:$0xff]   ;;  %v8812_v30 = vld [vmem:[#allocation5 + $0x106c] ss:$16 sps:$4 sm:$0xff]   ;;  %9161 = vrsqrt.f32 %v9610_v34 }
 0x246   :  { %4207 = vmatpush1.bf16.msra.mxu1 %v8729_v31  ;;  %4233 = vmatprep.subr.bf16.mxu0 %v8740_v32  ;;  %v8809_v31 = vld [vmem:[#allocation5 + $0x1164] ss:$16 sps:$4 sm:$0xff]   ;;  %v8810_v32 = vld [vmem:[#allocation5 + $0x1068] ss:$16 sps:$4 sm:$0xff]   ;;  %vm5991_vm11 = vcmp.eq.f32.partialorder %v9610_v34, inf  ;;  %vm5993_vm15 = vcmp.eq.f32.partialorder %v9610_v34, 0.0 }
 0x247   :  { %4208 = vmatprep.subr.bf16.mxu1 %v8737_v36  ;;  %v8807_v36 = vld [vmem:[#allocation5 + $0x1160] ss:$16 sps:$4 sm:$0xff]  }
 0x249   :  { %4234 = vmatpush1.bf16.msra.mxu0 %v8738_v37  ;;  %v8818_v37 = vld [vmem:[#allocation5 + $0x108c] ss:$16 sps:$4 sm:$0xff]  }
 0x24a   :  { %4209 = vmatpush1.bf16.msra.mxu1 %v8735_v38  ;;  %4235 = vmatprep.subr.bf16.mxu0 %v8743_v39  ;;  %v8815_v38 = vld [vmem:[#allocation5 + $0x1184] ss:$16 sps:$4 sm:$0xff]   ;;  %v8816_v39 = vld [vmem:[#allocation5 + $0x1088] ss:$16 sps:$4 sm:$0xff]  }
 0x24b   :  { %4580 = vmatprep.subr.bf16.mxu1 %v8746_v40  ;;  %v8813_v40 = vld [vmem:[#allocation5 + $0x1180] ss:$16 sps:$4 sm:$0xff]  }
 0x24d   :  { %4211 = vmatmul.mubr.bf16.vlgmr.msra.gmra.mrb[28].mxu1 %v9529_v43  ;;  %4236 = vmatpush1.bf16.msra.mxu0 %v8741_v42  ;;  %v8824_v42 = vld [vmem:[#allocation5 + $0x10ac] ss:$16 sps:$4 sm:$0xff]  }
 0x24e   :  { %4581 = vmatpush1.bf16.msra.mxu1 %v8744_v44  ;;  %4237 = vmatprep.subr.bf16.mxu0 %v8749_v45  ;;  %v8821_v44 = vld [vmem:[#allocation5 + $0x11a4] ss:$16 sps:$4 sm:$0xff]   ;;  %v8822_v45 = vld [vmem:[#allocation5 + $0x10a8] ss:$16 sps:$4 sm:$0xff]  }
 0x24f   :  { %4582 = vmatprep.subr.bf16.mxu1 %v8752_v46  ;;  %4612 = vmatprep.mubr.bf16.mxu1 %v9527_v41 }
 0x251   :  { %4238 = vmatpush1.bf16.msra.mxu0 %v8747_v47  ;;  %v8819_v47 = vld [vmem:[#allocation5 + $0x11a0] ss:$16 sps:$4 sm:$0xff]  }
 0x252   :  { %4583 = vmatpush1.bf16.msra.mxu1 %v8750_v48  ;;  %4239 = vmatprep.subr.bf16.mxu0 %v8755_v49  ;;  %v8830_v48 = vld [vmem:[#allocation5 + $0x10cc] ss:$16 sps:$4 sm:$0xff]  }
 0x253   :  { %4584 = vmatprep.subr.bf16.mxu1 %v8758_v50 }
 0x255   :  { %4240 = vmatpush1.bf16.msra.mxu0 %v8753_v51  ;;  %v8827_v51 = vld [vmem:[#allocation5 + $0x11c4] ss:$16 sps:$4 sm:$0xff]  }
 0x256   :  { %4585 = vmatpush1.bf16.msra.mxu1 %v8756_v52  ;;  %4241 = vmatprep.subr.bf16.mxu0 %v8761_v54 }
 0x257   :  { %4586 = vmatprep.subr.bf16.mxu1 %v8764_v56 }
 0x259   :  { %4242 = vmatpush1.bf16.msra.mxu0 %v8759_v57 }
 0x25a   :  { %4587 = vmatpush1.bf16.msra.mxu1 %v8762_v58  ;;  %4243 = vmatprep.subr.bf16.mxu0 %v8767_v59  ;;  %v8828_v58 = vld [vmem:[#allocation5 + $0x10c8] ss:$16 sps:$4 sm:$0xff]  }
 0x25b   :  { %4588 = vmatprep.subr.bf16.mxu1 %v8770_v60 }
 0x25d   :  { %4244 = vmatpush1.bf16.msra.mxu0 %v8765_v61  ;;  %v8825_v61 = vld [vmem:[#allocation5 + $0x11c0] ss:$16 sps:$4 sm:$0xff]  }
 0x25e   :  { %4589 = vmatpush1.bf16.msra.mxu1 %v8768_v62  ;;  %4245 = vmatprep.subr.bf16.mxu0 %v8773_v63  ;;  %v8836_v62 = vld [vmem:[#allocation5 + $0x10ec] ss:$16 sps:$4 sm:$0xff]  }
 0x25f   :  { %4590 = vmatprep.subr.bf16.mxu1 %v8776_v0  ;;  %v8833_v0 = vld [vmem:[#allocation5 + $0x11e4] ss:$16 sps:$4 sm:$0xff]  }
 0x260   :  { %v9614_v5 = vpop.f32.mrb[16].mxu1 }
 0x261   :  { %4246 = vmatpush1.bf16.msra.mxu0 %v8771_v1  ;;  %v9616_v7 = vpop.f32.mrb[17].mxu1  ;;  %v5876_v46 = vmul.f32 %v9614_v5, %v9614_v5  ;;  %v8834_v1 = vld [vmem:[#allocation5 + $0x10e8] ss:$16 sps:$4 sm:$0xff]  }
 0x262   :  { %4591 = vmatpush1.bf16.msra.mxu1 %v8774_v2  ;;  %4247 = vmatprep.subr.bf16.mxu0 %v8779_v3  ;;  %v3010_v12 = vpop.f32.mrb[18].mxu1  ;;  %v5877_v49 = vmul.f32 %v9616_v7, %v9616_v7  ;;  %v8831_v2 = vld [vmem:[#allocation5 + $0x11e0] ss:$16 sps:$4 sm:$0xff]   ;;  %v8839_v3 = vld [vmem:[#allocation5 + $0x110c] ss:$16 sps:$4 sm:$0xff]  }
 0x263   :  { %4592 = vmatprep.subr.bf16.mxu1 %v8782_v4  ;;  %v3011_v14 = vpop.f32.mrb[19].mxu1  ;;  %v8842_v4 = vld [vmem:[#allocation5 + $0x1204] ss:$16 sps:$4 sm:$0xff]   ;;  %v8837_v5 = vld [vmem:[#allocation5 + $0x1108] ss:$16 sps:$4 sm:$0xff]  }
 0x264   :  { %v8845_v7 = vld [vmem:[#allocation5 + $0x112c] ss:$16 sps:$4 sm:$0xff]   ;;  %v8846_v12 = vld [vmem:[#allocation5 + $0x1220] ss:$16 sps:$4 sm:$0xff]   ;;  %v8854_v14 = vld [vmem:[#allocation5 + $0x1244] ss:$16 sps:$4 sm:$0xff]  }
 0x265   :  { %4248 = vmatpush1.bf16.msra.mxu0 %v8777_v6  ;;  %v8840_v6 = vld [vmem:[#allocation5 + $0x1200] ss:$16 sps:$4 sm:$0xff]  }
 0x266   :  { %4593 = vmatpush1.bf16.msra.mxu1 %v8780_v8  ;;  %4249 = vmatprep.subr.bf16.mxu0 %v8785_v10  ;;  %v8848_v8 = vld [vmem:[#allocation5 + $0x1224] ss:$16 sps:$4 sm:$0xff]   ;;  %v8843_v10 = vld [vmem:[#allocation5 + $0x1128] ss:$16 sps:$4 sm:$0xff]  }
 0x267   :  { %4594 = vmatprep.subr.bf16.mxu1 %v8788_v13  ;;  %v8851_v13 = vld [vmem:[#allocation5 + $0x114c] ss:$16 sps:$4 sm:$0xff]  }
 0x269   :  { %4250 = vmatpush1.bf16.msra.mxu0 %v8783_v15  ;;  %v8849_v15 = vld [vmem:[#allocation5 + $0x1148] ss:$16 sps:$4 sm:$0xff]  }
 0x26a   :  { %4595 = vmatpush1.bf16.msra.mxu1 %v8786_v16  ;;  %4621 = vmatprep.subr.bf16.mxu0 %v8794_v17  ;;  %v8852_v16 = vld [vmem:[#allocation5 + $0x1240] ss:$16 sps:$4 sm:$0xff]   ;;  %v8857_v17 = vld [vmem:[#allocation5 + $0x116c] ss:$16 sps:$4 sm:$0xff]  }
 0x26b   :  { %4596 = vmatprep.subr.bf16.mxu1 %v8791_v18  ;;  %v8860_v18 = vld [vmem:[#allocation5 + $0x1264] ss:$16 sps:$4 sm:$0xff]  }
 0x26c   :  { %4252 = vmatmul.mubr.bf16.vlgmr.msra.gmra.mrb[32].mxu0 %v9529_v43 }
 0x26d   :  { %4622 = vmatpush1.bf16.msra.mxu0 %v8792_v19  ;;  %4653 = vmatprep.mubr.bf16.mxu0 %v9527_v41  ;;  %v8855_v19 = vld [vmem:[#allocation5 + $0x1168] ss:$16 sps:$4 sm:$0xff]  }
 0x26e   :  { %4597 = vmatpush1.bf16.msra.mxu1 %v8789_v20  ;;  %4623 = vmatprep.subr.bf16.mxu0 %v8800_v21  ;;  %v8858_v20 = vld [vmem:[#allocation5 + $0x1260] ss:$16 sps:$4 sm:$0xff]   ;;  %v8863_v21 = vld [vmem:[#allocation5 + $0x118c] ss:$16 sps:$4 sm:$0xff]  }
 0x26f   :  { %4598 = vmatprep.subr.bf16.mxu1 %v8797_v22  ;;  %v8866_v22 = vld [vmem:[#allocation5 + $0x1284] ss:$16 sps:$4 sm:$0xff]  }
 0x271   :  { %4624 = vmatpush1.bf16.msra.mxu0 %v8798_v23  ;;  %v8861_v23 = vld [vmem:[#allocation5 + $0x1188] ss:$16 sps:$4 sm:$0xff]  }
 0x272   :  { %4599 = vmatpush1.bf16.msra.mxu1 %v8795_v24  ;;  %4625 = vmatprep.subr.bf16.mxu0 %v8806_v25  ;;  %v8864_v24 = vld [vmem:[#allocation5 + $0x1280] ss:$16 sps:$4 sm:$0xff]   ;;  %v8869_v25 = vld [vmem:[#allocation5 + $0x11ac] ss:$16 sps:$4 sm:$0xff]  }
 0x273   :  { %4600 = vmatprep.subr.bf16.mxu1 %v8803_v26  ;;  %v8872_v26 = vld [vmem:[#allocation5 + $0x12a4] ss:$16 sps:$4 sm:$0xff]  }
 0x275   :  { %4626 = vmatpush1.bf16.msra.mxu0 %v8804_v27  ;;  %v8867_v27 = vld [vmem:[#allocation5 + $0x11a8] ss:$16 sps:$4 sm:$0xff]  }
 0x276   :  { %4601 = vmatpush1.bf16.msra.mxu1 %v8801_v28  ;;  %4627 = vmatprep.subr.bf16.mxu0 %v8812_v30  ;;  %v8870_v28 = vld [vmem:[#allocation5 + $0x12a0] ss:$16 sps:$4 sm:$0xff]   ;;  %v8875_v30 = vld [vmem:[#allocation5 + $0x11cc] ss:$16 sps:$4 sm:$0xff]  }
 0x277   :  { %4602 = vmatprep.subr.bf16.mxu1 %v8809_v31  ;;  %v8878_v31 = vld [vmem:[#allocation5 + $0x12c4] ss:$16 sps:$4 sm:$0xff]  }
 0x279   :  { %4628 = vmatpush1.bf16.msra.mxu0 %v8810_v32 }
 0x27a   :  { %4603 = vmatpush1.bf16.msra.mxu1 %v8807_v36  ;;  %4629 = vmatprep.subr.bf16.mxu0 %v8818_v37  ;;  %v8873_v36 = vld [vmem:[#allocation5 + $0x11c8] ss:$16 sps:$4 sm:$0xff]  }
 0x27b   :  { %4604 = vmatprep.subr.bf16.mxu1 %v8815_v38  ;;  %v8876_v38 = vld [vmem:[#allocation5 + $0x12c0] ss:$16 sps:$4 sm:$0xff]  }
 0x27d   :  { %4630 = vmatpush1.bf16.msra.mxu0 %v8816_v39  ;;  %v8881_v39 = vld [vmem:[#allocation5 + $0x11ec] ss:$16 sps:$4 sm:$0xff]  }
 0x27e   :  { %4605 = vmatpush1.bf16.msra.mxu1 %v8813_v40  ;;  %4631 = vmatprep.subr.bf16.mxu0 %v8824_v42  ;;  %v8884_v42 = vld [vmem:[#allocation5 + $0x12e4] ss:$16 sps:$4 sm:$0xff]  }
 0x27f   :  { %v3047_v50 = vpop.f32.mrb[20].mxu0  ;;  %4606 = vmatprep.subr.bf16.mxu1 %v8821_v44 }
 0x280   :  { %v5900_v52 = vmul.f32 %v3047_v50, %v3047_v50  ;;  %v3049_v54 = vpop.f32.mrb[21].mxu0  ;;  %v8885_v50 = vld [vmem:[#allocation5 + $0x1300] ss:$16 sps:$4 sm:$0xff]  }
 0x281   :  { %v5901_v56 = vmul.f32 %v3049_v54, %v3049_v54  ;;  %v3051_v57 = vpop.f32.mrb[22].mxu0  ;;  %4632 = vmatpush1.bf16.msra.mxu0 %v8822_v45  ;;  %v8879_v45 = vld [vmem:[#allocation5 + $0x11e8] ss:$16 sps:$4 sm:$0xff]  }
 0x282   :  { %v9624_v59 = vadd.f32 %v5900_v52, %v5876_v46  ;;  %4607 = vmatpush1.bf16.msra.mxu1 %v8819_v47  ;;  %v3052_v60 = vpop.f32.mrb[23].mxu0  ;;  %4633 = vmatprep.subr.bf16.mxu0 %v8830_v48  ;;  %v8882_v46 = vld [vmem:[#allocation5 + $0x12e0] ss:$16 sps:$4 sm:$0xff]   ;;  %v8890_v47 = vld [vmem:[#allocation5 + $0x120c] ss:$16 sps:$4 sm:$0xff]  }
 0x283   :  { %v9626_v63 = vadd.f32 %v5901_v56, %v5877_v49  ;;  %4608 = vmatprep.subr.bf16.mxu1 %v8827_v51  ;;  %v8887_v48 = vld [vmem:[#allocation5 + $0x1304] ss:$16 sps:$4 sm:$0xff]   ;;  %v8888_v49 = vld [vmem:[#allocation5 + $0x1208] ss:$16 sps:$4 sm:$0xff]   ;;  %v8896_v51 = vld [vmem:[#allocation5 + $0x122c] ss:$16 sps:$4 sm:$0xff]  }
 0x284   :  { %v8893_v52 = vld [vmem:[#allocation5 + $0x1324] ss:$16 sps:$4 sm:$0xff]   ;;  %v8894_v54 = vld [vmem:[#allocation5 + $0x1228] ss:$16 sps:$4 sm:$0xff]   ;;  %v8891_v56 = vld [vmem:[#allocation5 + $0x1320] ss:$16 sps:$4 sm:$0xff]  }
 0x285   :  { %4634 = vmatpush1.bf16.msra.mxu0 %v8828_v58  ;;  %v8902_v57 = vld [vmem:[#allocation5 + $0x124c] ss:$16 sps:$4 sm:$0xff]   ;;  %v8899_v58 = vld [vmem:[#allocation5 + $0x1344] ss:$16 sps:$4 sm:$0xff]   ;;  %v8900_v60 = vld [vmem:[#allocation5 + $0x1248] ss:$16 sps:$4 sm:$0xff]   ;;  %9163 = vrsqrt.f32 %v9626_v63 }
 0x286   :  { %4609 = vmatpush1.bf16.msra.mxu1 %v8825_v61  ;;  %4635 = vmatprep.subr.bf16.mxu0 %v8836_v62  ;;  %v8897_v61 = vld [vmem:[#allocation5 + $0x1340] ss:$16 sps:$4 sm:$0xff]   ;;  %v8908_v62 = vld [vmem:[#allocation5 + $0x126c] ss:$16 sps:$4 sm:$0xff]   ;;  %vm6005_vm13 = vcmp.eq.f32.partialorder %v9626_v63, inf  ;;  %9165 = vrsqrt.f32 %v9608_v29 }
 0x287   :  { %4610 = vmatprep.subr.bf16.mxu1 %v8833_v0  ;;  %v8905_v0 = vld [vmem:[#allocation5 + $0x1364] ss:$16 sps:$4 sm:$0xff]   ;;  %9167 = vrsqrt.f32 %v9624_v59 }
 0x289   :  { %4636 = vmatpush1.bf16.msra.mxu0 %v8834_v1  ;;  %v8906_v1 = vld [vmem:[#allocation5 + $0x1268] ss:$16 sps:$4 sm:$0xff]  }
 0x28a   :  { %4611 = vmatpush1.bf16.msra.mxu1 %v8831_v2  ;;  %4637 = vmatprep.subr.bf16.mxu0 %v8839_v3  ;;  %v8903_v2 = vld [vmem:[#allocation5 + $0x1360] ss:$16 sps:$4 sm:$0xff]   ;;  %v8914_v3 = vld [vmem:[#allocation5 + $0x128c] ss:$16 sps:$4 sm:$0xff]  }
 0x28b   :  { %4982 = vmatprep.subr.bf16.mxu1 %v8842_v4  ;;  %v8911_v4 = vld [vmem:[#allocation5 + $0x1384] ss:$16 sps:$4 sm:$0xff]  }
 0x28d   :  { %4613 = vmatmul.mubr.bf16.vlgmr.msra.gmra.mrb[32].mxu1 %v9529_v43  ;;  %4638 = vmatpush1.bf16.msra.mxu0 %v8837_v5  ;;  %v8912_v5 = vld [vmem:[#allocation5 + $0x1288] ss:$16 sps:$4 sm:$0xff]  }
 0x28e   :  { %4983 = vmatpush1.bf16.msra.mxu1 %v8840_v6  ;;  %4639 = vmatprep.subr.bf16.mxu0 %v8845_v7  ;;  %v8909_v6 = vld [vmem:[#allocation5 + $0x1380] ss:$16 sps:$4 sm:$0xff]   ;;  %v8920_v7 = vld [vmem:[#allocation5 + $0x12ac] ss:$16 sps:$4 sm:$0xff]  }
 0x28f   :  { %4984 = vmatprep.subr.bf16.mxu1 %v8848_v8  ;;  %5014 = vmatprep.mubr.bf16.mxu1 %v9527_v41  ;;  %v8917_v8 = vld [vmem:[#allocation5 + $0x13a4] ss:$16 sps:$4 sm:$0xff]  }
 0x291   :  { %4640 = vmatpush1.bf16.msra.mxu0 %v8843_v10  ;;  %v8918_v10 = vld [vmem:[#allocation5 + $0x12a8] ss:$16 sps:$4 sm:$0xff]  }
 0x292   :  { %4985 = vmatpush1.bf16.msra.mxu1 %v8846_v12  ;;  %4641 = vmatprep.subr.bf16.mxu0 %v8851_v13  ;;  %v8915_v13 = vld [vmem:[#allocation5 + $0x13a0] ss:$16 sps:$4 sm:$0xff]  }
 0x293   :  { %4986 = vmatprep.subr.bf16.mxu1 %v8854_v14  ;;  %v8926_v14 = vld [vmem:[#allocation5 + $0x12cc] ss:$16 sps:$4 sm:$0xff]  }
 0x295   :  { %4642 = vmatpush1.bf16.msra.mxu0 %v8849_v15 }
 0x296   :  { %4987 = vmatpush1.bf16.msra.mxu1 %v8852_v16  ;;  %4643 = vmatprep.subr.bf16.mxu0 %v8857_v17  ;;  %v8923_v17 = vld [vmem:[#allocation5 + $0x13c4] ss:$16 sps:$4 sm:$0xff]  }
 0x297   :  { %4988 = vmatprep.subr.bf16.mxu1 %v8860_v18 }
 0x299   :  { %4644 = vmatpush1.bf16.msra.mxu0 %v8855_v19 }
 0x29a   :  { %4989 = vmatpush1.bf16.msra.mxu1 %v8858_v20  ;;  %4645 = vmatprep.subr.bf16.mxu0 %v8863_v21 }
 0x29b   :  { %4990 = vmatprep.subr.bf16.mxu1 %v8866_v22  ;;  %v8924_v22 = vld [vmem:[#allocation5 + $0x12c8] ss:$16 sps:$4 sm:$0xff]  }
 0x29d   :  { %4646 = vmatpush1.bf16.msra.mxu0 %v8861_v23 }
 0x29e   :  { %4991 = vmatpush1.bf16.msra.mxu1 %v8864_v24  ;;  %4647 = vmatprep.subr.bf16.mxu0 %v8869_v25  ;;  %v8921_v25 = vld [vmem:[#allocation5 + $0x13c0] ss:$16 sps:$4 sm:$0xff]  }
 0x29f   :  { %4992 = vmatprep.subr.bf16.mxu1 %v8872_v26  ;;  %v8932_v26 = vld [vmem:[#allocation5 + $0x12ec] ss:$16 sps:$4 sm:$0xff]  }
 0x2a0   :  { %v9630_v32 = vpop.f32.mrb[20].mxu1 }
 0x2a1   :  { %4648 = vmatpush1.bf16.msra.mxu0 %v8867_v27  ;;  %v9632_v37 = vpop.f32.mrb[21].mxu1  ;;  %v5878_v12 = vmul.f32 %v9630_v32, %v9630_v32  ;;  %v8935_v32 = vld [vmem:[#allocation5 + $0x130c] ss:$16 sps:$4 sm:$0xff]  }
 0x2a2   :  { %4993 = vmatpush1.bf16.msra.mxu1 %v8870_v28  ;;  %4649 = vmatprep.subr.bf16.mxu0 %v8875_v30  ;;  %v3412_v40 = vpop.f32.mrb[22].mxu1  ;;  %v5879_v15 = vmul.f32 %v9632_v37, %v9632_v37  ;;  %v8929_v28 = vld [vmem:[#allocation5 + $0x13e4] ss:$16 sps:$4 sm:$0xff]   ;;  %v8930_v30 = vld [vmem:[#allocation5 + $0x12e8] ss:$16 sps:$4 sm:$0xff]  }
 0x2a3   :  { %4994 = vmatprep.subr.bf16.mxu1 %v8878_v31  ;;  %v3413_v44 = vpop.f32.mrb[23].mxu1  ;;  %v8927_v31 = vld [vmem:[#allocation5 + $0x13e0] ss:$16 sps:$4 sm:$0xff]   ;;  %v8933_v37 = vld [vmem:[#allocation5 + $0x1308] ss:$16 sps:$4 sm:$0xff]  }
 0x2a4   :  { %v8944_v40 = vld [vmem:[#allocation5 + $0x1424] ss:$16 sps:$4 sm:$0xff]   ;;  %v8942_v44 = vld [vmem:[#allocation5 + $0x1420] ss:$16 sps:$4 sm:$0xff]  }
 0x2a5   :  { %4650 = vmatpush1.bf16.msra.mxu0 %v8873_v36  ;;  %v8938_v36 = vld [vmem:[#allocation5 + $0x1404] ss:$16 sps:$4 sm:$0xff]  }
 0x2a6   :  { %4995 = vmatpush1.bf16.msra.mxu1 %v8876_v38  ;;  %4651 = vmatprep.subr.bf16.mxu0 %v8881_v39  ;;  %v8936_v38 = vld [vmem:[#allocation5 + $0x1400] ss:$16 sps:$4 sm:$0xff]   ;;  %v8941_v39 = vld [vmem:[#allocation5 + $0x132c] ss:$16 sps:$4 sm:$0xff]  }
 0x2a7   :  { %4996 = vmatprep.subr.bf16.mxu1 %v8884_v42  ;;  %v8939_v42 = vld [vmem:[#allocation5 + $0x1328] ss:$16 sps:$4 sm:$0xff]  }
 0x2a9   :  { %4652 = vmatpush1.bf16.msra.mxu0 %v8879_v45  ;;  %v8947_v45 = vld [vmem:[#allocation5 + $0x134c] ss:$16 sps:$4 sm:$0xff]  }
 0x2aa   :  { %4997 = vmatpush1.bf16.msra.mxu1 %v8882_v46  ;;  %5023 = vmatprep.subr.bf16.mxu0 %v8890_v47  ;;  %v8950_v46 = vld [vmem:[#allocation5 + $0x1444] ss:$16 sps:$4 sm:$0xff]   ;;  %v8945_v47 = vld [vmem:[#allocation5 + $0x1348] ss:$16 sps:$4 sm:$0xff]  }
 0x2ab   :  { %4998 = vmatprep.subr.bf16.mxu1 %v8887_v48  ;;  %v8948_v48 = vld [vmem:[#allocation5 + $0x1440] ss:$16 sps:$4 sm:$0xff]  }
 0x2ac   :  { %4654 = vmatmul.mubr.bf16.vlgmr.msra.gmra.mrb[36].mxu0 %v9529_v43 }
 0x2ad   :  { %5024 = vmatpush1.bf16.msra.mxu0 %v8888_v49  ;;  %5055 = vmatprep.mubr.bf16.mxu0 %v9527_v41  ;;  %v8953_v49 = vld [vmem:[#allocation5 + $0x136c] ss:$16 sps:$4 sm:$0xff]  }
 0x2ae   :  { %4999 = vmatpush1.bf16.msra.mxu1 %v8885_v50  ;;  %5025 = vmatprep.subr.bf16.mxu0 %v8896_v51  ;;  %v8956_v50 = vld [vmem:[#allocation5 + $0x1464] ss:$16 sps:$4 sm:$0xff]   ;;  %v8951_v51 = vld [vmem:[#allocation5 + $0x1368] ss:$16 sps:$4 sm:$0xff]  }
 0x2af   :  { %5000 = vmatprep.subr.bf16.mxu1 %v8893_v52  ;;  %v8954_v52 = vld [vmem:[#allocation5 + $0x1460] ss:$16 sps:$4 sm:$0xff]  }
 0x2b1   :  { %5026 = vmatpush1.bf16.msra.mxu0 %v8894_v54  ;;  %v8959_v54 = vld [vmem:[#allocation5 + $0x138c] ss:$16 sps:$4 sm:$0xff]  }
 0x2b2   :  { %5001 = vmatpush1.bf16.msra.mxu1 %v8891_v56  ;;  %5027 = vmatprep.subr.bf16.mxu0 %v8902_v57  ;;  %v8962_v56 = vld [vmem:[#allocation5 + $0x1484] ss:$16 sps:$4 sm:$0xff]   ;;  %v8957_v57 = vld [vmem:[#allocation5 + $0x1388] ss:$16 sps:$4 sm:$0xff]  }
 0x2b3   :  { %5002 = vmatprep.subr.bf16.mxu1 %v8899_v58  ;;  %v8960_v58 = vld [vmem:[#allocation5 + $0x1480] ss:$16 sps:$4 sm:$0xff]  }
 0x2b5   :  { %5028 = vmatpush1.bf16.msra.mxu0 %v8900_v60  ;;  %v8965_v60 = vld [vmem:[#allocation5 + $0x13ac] ss:$16 sps:$4 sm:$0xff]  }
 0x2b6   :  { %5003 = vmatpush1.bf16.msra.mxu1 %v8897_v61  ;;  %5029 = vmatprep.subr.bf16.mxu0 %v8908_v62  ;;  %v8968_v61 = vld [vmem:[#allocation5 + $0x14a4] ss:$16 sps:$4 sm:$0xff]   ;;  %v8963_v62 = vld [vmem:[#allocation5 + $0x13a8] ss:$16 sps:$4 sm:$0xff]  }
 0x2b7   :  { %5004 = vmatprep.subr.bf16.mxu1 %v8905_v0  ;;  %v8966_v0 = vld [vmem:[#allocation5 + $0x14a0] ss:$16 sps:$4 sm:$0xff]  }
 0x2b9   :  { %5030 = vmatpush1.bf16.msra.mxu0 %v8906_v1  ;;  %v8971_v1 = vld [vmem:[#allocation5 + $0x13cc] ss:$16 sps:$4 sm:$0xff]  }
 0x2ba   :  { %5005 = vmatpush1.bf16.msra.mxu1 %v8903_v2  ;;  %5031 = vmatprep.subr.bf16.mxu0 %v8914_v3  ;;  %v8974_v2 = vld [vmem:[#allocation5 + $0x14c4] ss:$16 sps:$4 sm:$0xff]  }
 0x2bb   :  { %5006 = vmatprep.subr.bf16.mxu1 %v8911_v4  ;;  %v8969_v4 = vld [vmem:[#allocation5 + $0x13c8] ss:$16 sps:$4 sm:$0xff]  }
 0x2bd   :  { %5032 = vmatpush1.bf16.msra.mxu0 %v8912_v5 }
 0x2be   :  { %5007 = vmatpush1.bf16.msra.mxu1 %v8909_v6  ;;  %5033 = vmatprep.subr.bf16.mxu0 %v8920_v7  ;;  %v8972_v6 = vld [vmem:[#allocation5 + $0x14c0] ss:$16 sps:$4 sm:$0xff]   ;;  %v8977_v7 = vld [vmem:[#allocation5 + $0x13ec] ss:$16 sps:$4 sm:$0xff]  }
 0x2bf   :  { %v3449_v16 = vpop.f32.mrb[24].mxu0  ;;  %5008 = vmatprep.subr.bf16.mxu1 %v8917_v8 }
 0x2c0   :  { %v5902_v18 = vmul.f32 %v3449_v16, %v3449_v16  ;;  %v3451_v19 = vpop.f32.mrb[25].mxu0  ;;  %v8983_v16 = vld [vmem:[#allocation5 + $0x1504] ss:$16 sps:$4 sm:$0xff]  }
 0x2c1   :  { %v5903_v20 = vmul.f32 %v3451_v19, %v3451_v19  ;;  %v3453_v21 = vpop.f32.mrb[26].mxu0  ;;  %5034 = vmatpush1.bf16.msra.mxu0 %v8918_v10  ;;  %v8980_v10 = vld [vmem:[#allocation5 + $0x14e4] ss:$16 sps:$4 sm:$0xff]   ;;  %v8992_v19 = vld [vmem:[#allocation5 + $0x142c] ss:$16 sps:$4 sm:$0xff]  }
 0x2c2   :  { %v9640_v23 = vadd.f32 %v5902_v18, %v5878_v12  ;;  %5009 = vmatpush1.bf16.msra.mxu1 %v8915_v13  ;;  %v3454_v24 = vpop.f32.mrb[27].mxu0  ;;  %5035 = vmatprep.subr.bf16.mxu0 %v8926_v14  ;;  %v8975_v13 = vld [vmem:[#allocation5 + $0x13e8] ss:$16 sps:$4 sm:$0xff]   ;;  %v8978_v14 = vld [vmem:[#allocation5 + $0x14e0] ss:$16 sps:$4 sm:$0xff]  }
 0x2c3   :  { %v9642_v27 = vadd.f32 %v5903_v20, %v5879_v15  ;;  %5010 = vmatprep.subr.bf16.mxu1 %v8923_v17  ;;  %v8986_v15 = vld [vmem:[#allocation5 + $0x140c] ss:$16 sps:$4 sm:$0xff]   ;;  %v8984_v17 = vld [vmem:[#allocation5 + $0x1408] ss:$16 sps:$4 sm:$0xff]   ;;  %v8981_v18 = vld [vmem:[#allocation5 + $0x1500] ss:$16 sps:$4 sm:$0xff]  }
 0x2c4   :  { %v8989_v20 = vld [vmem:[#allocation5 + $0x1524] ss:$16 sps:$4 sm:$0xff]   ;;  %v8990_v21 = vld [vmem:[#allocation5 + $0x1428] ss:$16 sps:$4 sm:$0xff]   ;;  %v8998_v24 = vld [vmem:[#allocation5 + $0x144c] ss:$16 sps:$4 sm:$0xff]  }
 0x2c5   :  { %5036 = vmatpush1.bf16.msra.mxu0 %v8924_v22  ;;  %v8987_v22 = vld [vmem:[#allocation5 + $0x1520] ss:$16 sps:$4 sm:$0xff]   ;;  %9169 = vrsqrt.f32 %v9642_v27 }
 0x2c6   :  { %5011 = vmatpush1.bf16.msra.mxu1 %v8921_v25  ;;  %5037 = vmatprep.subr.bf16.mxu0 %v8932_v26  ;;  %v8995_v25 = vld [vmem:[#allocation5 + $0x1544] ss:$16 sps:$4 sm:$0xff]   ;;  %v8996_v26 = vld [vmem:[#allocation5 + $0x1448] ss:$16 sps:$4 sm:$0xff]  }
 0x2c7   :  { %5012 = vmatprep.subr.bf16.mxu1 %v8929_v28  ;;  %v8993_v28 = vld [vmem:[#allocation5 + $0x1540] ss:$16 sps:$4 sm:$0xff]  }
 0x2c9   :  { %5038 = vmatpush1.bf16.msra.mxu0 %v8930_v30  ;;  %v9004_v30 = vld [vmem:[#allocation5 + $0x146c] ss:$16 sps:$4 sm:$0xff]  }
 0x2ca   :  { %5013 = vmatpush1.bf16.msra.mxu1 %v8927_v31  ;;  %5039 = vmatprep.subr.bf16.mxu0 %v8935_v32  ;;  %v9001_v31 = vld [vmem:[#allocation5 + $0x1564] ss:$16 sps:$4 sm:$0xff]   ;;  %v9002_v32 = vld [vmem:[#allocation5 + $0x1468] ss:$16 sps:$4 sm:$0xff]  }
 0x2cb   :  { %5384 = vmatprep.subr.bf16.mxu1 %v8938_v36  ;;  %v8999_v36 = vld [vmem:[#allocation5 + $0x1560] ss:$16 sps:$4 sm:$0xff]  }
 0x2cd   :  { %5015 = vmatmul.mubr.bf16.vlgmr.msra.gmra.mrb[36].mxu1 %v9529_v43  ;;  %5040 = vmatpush1.bf16.msra.mxu0 %v8933_v37  ;;  %v9010_v37 = vld [vmem:[#allocation5 + $0x148c] ss:$16 sps:$4 sm:$0xff]  }
 0x2ce   :  { %5385 = vmatpush1.bf16.msra.mxu1 %v8936_v38  ;;  %5041 = vmatprep.subr.bf16.mxu0 %v8941_v39  ;;  %v9007_v38 = vld [vmem:[#allocation5 + $0x1584] ss:$16 sps:$4 sm:$0xff]   ;;  %v9008_v39 = vld [vmem:[#allocation5 + $0x1488] ss:$16 sps:$4 sm:$0xff]  }
 0x2cf   :  { %5386 = vmatprep.subr.bf16.mxu1 %v8944_v40  ;;  %5416 = vmatprep.mubr.bf16.mxu1 %v9527_v41  ;;  %v9005_v40 = vld [vmem:[#allocation5 + $0x1580] ss:$16 sps:$4 sm:$0xff]  }
 0x2d1   :  { %5042 = vmatpush1.bf16.msra.mxu0 %v8939_v42  ;;  %v9016_v42 = vld [vmem:[#allocation5 + $0x14ac] ss:$16 sps:$4 sm:$0xff]  }
 0x2d2   :  { %5387 = vmatpush1.bf16.msra.mxu1 %v8942_v44  ;;  %5043 = vmatprep.subr.bf16.mxu0 %v8947_v45  ;;  %v9013_v44 = vld [vmem:[#allocation5 + $0x15a4] ss:$16 sps:$4 sm:$0xff]   ;;  %v9014_v45 = vld [vmem:[#allocation5 + $0x14a8] ss:$16 sps:$4 sm:$0xff]  }
 0x2d3   :  { %5388 = vmatprep.subr.bf16.mxu1 %v8950_v46 }
 0x2d5   :  { %5044 = vmatpush1.bf16.msra.mxu0 %v8945_v47  ;;  %v9011_v47 = vld [vmem:[#allocation5 + $0x15a0] ss:$16 sps:$4 sm:$0xff]  }
 0x2d6   :  { %5389 = vmatpush1.bf16.msra.mxu1 %v8948_v48  ;;  %5045 = vmatprep.subr.bf16.mxu0 %v8953_v49  ;;  %v9022_v48 = vld [vmem:[#allocation5 + $0x14cc] ss:$16 sps:$4 sm:$0xff]  }
 0x2d7   :  { %5390 = vmatprep.subr.bf16.mxu1 %v8956_v50 }
 0x2d9   :  { %5046 = vmatpush1.bf16.msra.mxu0 %v8951_v51  ;;  %v9019_v51 = vld [vmem:[#allocation5 + $0x15c4] ss:$16 sps:$4 sm:$0xff]  }
 0x2da   :  { %5391 = vmatpush1.bf16.msra.mxu1 %v8954_v52  ;;  %5047 = vmatprep.subr.bf16.mxu0 %v8959_v54 }
 0x2db   :  { %5392 = vmatprep.subr.bf16.mxu1 %v8962_v56 }
 0x2dd   :  { %5048 = vmatpush1.bf16.msra.mxu0 %v8957_v57 }
 0x2de   :  { %5393 = vmatpush1.bf16.msra.mxu1 %v8960_v58  ;;  %5049 = vmatprep.subr.bf16.mxu0 %v8965_v60  ;;  %v9020_v58 = vld [vmem:[#allocation5 + $0x14c8] ss:$16 sps:$4 sm:$0xff]  }
 0x2df   :  { %5394 = vmatprep.subr.bf16.mxu1 %v8968_v61 }
 0x2e0   :  { %v9646_v3 = vpop.f32.mrb[24].mxu1 }
 0x2e1   :  { %5050 = vmatpush1.bf16.msra.mxu0 %v8963_v62  ;;  %v9648_v5 = vpop.f32.mrb[25].mxu1  ;;  %v5880_v46 = vmul.f32 %v9646_v3, %v9646_v3  ;;  %v9017_v62 = vld [vmem:[#allocation5 + $0x15c0] ss:$16 sps:$4 sm:$0xff]   ;;  %v9026_v3 = vld [vmem:[#allocation5 + $0x14e8] ss:$16 sps:$4 sm:$0xff]  }
 0x2e2   :  { %5395 = vmatpush1.bf16.msra.mxu1 %v8966_v0  ;;  %5051 = vmatprep.subr.bf16.mxu0 %v8971_v1  ;;  %v3814_v8 = vpop.f32.mrb[26].mxu1  ;;  %v5881_v49 = vmul.f32 %v9648_v5, %v9648_v5  ;;  %v9028_v0 = vld [vmem:[#allocation5 + $0x14ec] ss:$16 sps:$4 sm:$0xff]  }
 0x2e3   :  { %5396 = vmatprep.subr.bf16.mxu1 %v8974_v2  ;;  %v3815_v12 = vpop.f32.mrb[27].mxu1  ;;  %v9025_v2 = vld [vmem:[#allocation5 + $0x15e4] ss:$16 sps:$4 sm:$0xff]   ;;  %v9031_v5 = vld [vmem:[#allocation5 + $0x150c] ss:$16 sps:$4 sm:$0xff]  }
 0x2e4   :  { %v9032_v8 = vld [vmem:[#allocation5 + $0x1600] ss:$16 sps:$4 sm:$0xff]   ;;  %v9040_v12 = vld [vmem:[#allocation5 + $0x1624] ss:$16 sps:$4 sm:$0xff]  }
 0x2e5   :  { %5052 = vmatpush1.bf16.msra.mxu0 %v8969_v4  ;;  %v9023_v4 = vld [vmem:[#allocation5 + $0x15e0] ss:$16 sps:$4 sm:$0xff]  }
 0x2e6   :  { %5397 = vmatpush1.bf16.msra.mxu1 %v8972_v6  ;;  %5053 = vmatprep.subr.bf16.mxu0 %v8977_v7  ;;  %v9034_v6 = vld [vmem:[#allocation5 + $0x1604] ss:$16 sps:$4 sm:$0xff]   ;;  %v9029_v7 = vld [vmem:[#allocation5 + $0x1508] ss:$16 sps:$4 sm:$0xff]  }
 0x2e7   :  { %5398 = vmatprep.subr.bf16.mxu1 %v8980_v10  ;;  %v9037_v10 = vld [vmem:[#allocation5 + $0x152c] ss:$16 sps:$4 sm:$0xff]  }
 0x2e9   :  { %5054 = vmatpush1.bf16.msra.mxu0 %v8975_v13  ;;  %v9035_v13 = vld [vmem:[#allocation5 + $0x1528] ss:$16 sps:$4 sm:$0xff]  }
 0x2ea   :  { %5399 = vmatpush1.bf16.msra.mxu1 %v8978_v14  ;;  %5425 = vmatprep.subr.bf16.mxu0 %v8986_v15  ;;  %v9038_v14 = vld [vmem:[#allocation5 + $0x1620] ss:$16 sps:$4 sm:$0xff]   ;;  %v9043_v15 = vld [vmem:[#allocation5 + $0x154c] ss:$16 sps:$4 sm:$0xff]  }
 0x2eb   :  { %5400 = vmatprep.subr.bf16.mxu1 %v8983_v16  ;;  %v9046_v16 = vld [vmem:[#allocation5 + $0x1644] ss:$16 sps:$4 sm:$0xff]  }
 0x2ec   :  { %5056 = vmatmul.mubr.bf16.vlgmr.msra.gmra.mrb[40].mxu0 %v9529_v43 }
 0x2ed   :  { %5426 = vmatpush1.bf16.msra.mxu0 %v8984_v17  ;;  %5457 = vmatprep.mubr.bf16.mxu0 %v9527_v41  ;;  %v9041_v17 = vld [vmem:[#allocation5 + $0x1548] ss:$16 sps:$4 sm:$0xff]  }
 0x2ee   :  { %5401 = vmatpush1.bf16.msra.mxu1 %v8981_v18  ;;  %5427 = vmatprep.subr.bf16.mxu0 %v8992_v19  ;;  %v9044_v18 = vld [vmem:[#allocation5 + $0x1640] ss:$16 sps:$4 sm:$0xff]   ;;  %v9049_v19 = vld [vmem:[#allocation5 + $0x156c] ss:$16 sps:$4 sm:$0xff]  }
 0x2ef   :  { %5402 = vmatprep.subr.bf16.mxu1 %v8989_v20  ;;  %v9052_v20 = vld [vmem:[#allocation5 + $0x1664] ss:$16 sps:$4 sm:$0xff]  }
 0x2f1   :  { %5428 = vmatpush1.bf16.msra.mxu0 %v8990_v21  ;;  %v9047_v21 = vld [vmem:[#allocation5 + $0x1568] ss:$16 sps:$4 sm:$0xff]  }
 0x2f2   :  { %5403 = vmatpush1.bf16.msra.mxu1 %v8987_v22  ;;  %5429 = vmatprep.subr.bf16.mxu0 %v8998_v24  ;;  %v9050_v22 = vld [vmem:[#allocation5 + $0x1660] ss:$16 sps:$4 sm:$0xff]   ;;  %v9055_v24 = vld [vmem:[#allocation5 + $0x158c] ss:$16 sps:$4 sm:$0xff]  }
 0x2f3   :  { %5404 = vmatprep.subr.bf16.mxu1 %v8995_v25  ;;  %v9058_v25 = vld [vmem:[#allocation5 + $0x1684] ss:$16 sps:$4 sm:$0xff]  }
 0x2f5   :  { %5430 = vmatpush1.bf16.msra.mxu0 %v8996_v26  ;;  %v9053_v26 = vld [vmem:[#allocation5 + $0x1588] ss:$16 sps:$4 sm:$0xff]  }
 0x2f6   :  { %5405 = vmatpush1.bf16.msra.mxu1 %v8993_v28  ;;  %5431 = vmatprep.subr.bf16.mxu0 %v9004_v30  ;;  %v9056_v28 = vld [vmem:[#allocation5 + $0x1680] ss:$16 sps:$4 sm:$0xff]   ;;  %v9061_v30 = vld [vmem:[#allocation5 + $0x15ac] ss:$16 sps:$4 sm:$0xff]  }
 0x2f7   :  { %5406 = vmatprep.subr.bf16.mxu1 %v9001_v31  ;;  %v9064_v31 = vld [vmem:[#allocation5 + $0x16a4] ss:$16 sps:$4 sm:$0xff]  }
 0x2f9   :  { %5432 = vmatpush1.bf16.msra.mxu0 %v9002_v32  ;;  %v9059_v32 = vld [vmem:[#allocation5 + $0x15a8] ss:$16 sps:$4 sm:$0xff]  }
 0x2fa   :  { %5407 = vmatpush1.bf16.msra.mxu1 %v8999_v36  ;;  %5433 = vmatprep.subr.bf16.mxu0 %v9010_v37  ;;  %v9062_v36 = vld [vmem:[#allocation5 + $0x16a0] ss:$16 sps:$4 sm:$0xff]   ;;  %v9067_v37 = vld [vmem:[#allocation5 + $0x15cc] ss:$16 sps:$4 sm:$0xff]  }
 0x2fb   :  { %5408 = vmatprep.subr.bf16.mxu1 %v9007_v38  ;;  %v9070_v38 = vld [vmem:[#allocation5 + $0x16c4] ss:$16 sps:$4 sm:$0xff]  }
 0x2fd   :  { %5434 = vmatpush1.bf16.msra.mxu0 %v9008_v39 }
 0x2fe   :  { %5409 = vmatpush1.bf16.msra.mxu1 %v9005_v40  ;;  %5435 = vmatprep.subr.bf16.mxu0 %v9016_v42  ;;  %v9065_v40 = vld [vmem:[#allocation5 + $0x15c8] ss:$16 sps:$4 sm:$0xff]  }
 0x2ff   :  { %v3851_v50 = vpop.f32.mrb[28].mxu0  ;;  %5410 = vmatprep.subr.bf16.mxu1 %v9013_v44  ;;  %v9068_v44 = vld [vmem:[#allocation5 + $0x16c0] ss:$16 sps:$4 sm:$0xff]  }
 0x300   :  { %v5904_v52 = vmul.f32 %v3851_v50, %v3851_v50  ;;  %v3853_v54 = vpop.f32.mrb[29].mxu0  ;;  %v9074_v50 = vld [vmem:[#allocation5 + $0x16e0] ss:$16 sps:$4 sm:$0xff]  }
 0x301   :  { %v5905_v56 = vmul.f32 %v3853_v54, %v3853_v54  ;;  %v3855_v57 = vpop.f32.mrb[30].mxu0  ;;  %5436 = vmatpush1.bf16.msra.mxu0 %v9014_v45  ;;  %v9073_v45 = vld [vmem:[#allocation5 + $0x15ec] ss:$16 sps:$4 sm:$0xff]   ;;  %v9080_v54 = vld [vmem:[#allocation5 + $0x1608] ss:$16 sps:$4 sm:$0xff]  }
 0x302   :  { %v9656_v60 = vadd.f32 %v5904_v52, %v5880_v46  ;;  %5411 = vmatpush1.bf16.msra.mxu1 %v9011_v47  ;;  %v3856_v61 = vpop.f32.mrb[31].mxu0  ;;  %5437 = vmatprep.subr.bf16.mxu0 %v9022_v48  ;;  %v9076_v47 = vld [vmem:[#allocation5 + $0x16e4] ss:$16 sps:$4 sm:$0xff]   ;;  %v9088_v57 = vld [vmem:[#allocation5 + $0x162c] ss:$16 sps:$4 sm:$0xff]  }
 0x303   :  { %v9658_v1 = vadd.f32 %v5905_v56, %v5881_v49  ;;  %5412 = vmatprep.subr.bf16.mxu1 %v9019_v51  ;;  %v9071_v49 = vld [vmem:[#allocation5 + $0x15e8] ss:$16 sps:$4 sm:$0xff]   ;;  %v9082_v51 = vld [vmem:[#allocation5 + $0x160c] ss:$16 sps:$4 sm:$0xff]   ;;  %v9079_v52 = vld [vmem:[#allocation5 + $0x1704] ss:$16 sps:$4 sm:$0xff]  }
 0x304   :  { %v9077_v56 = vld [vmem:[#allocation5 + $0x1700] ss:$16 sps:$4 sm:$0xff]   ;;  %v9086_v61 = vld [vmem:[#allocation5 + $0x1628] ss:$16 sps:$4 sm:$0xff]  }
 0x305   :  { %5438 = vmatpush1.bf16.msra.mxu0 %v9020_v58  ;;  %v9085_v58 = vld [vmem:[#allocation5 + $0x1724] ss:$16 sps:$4 sm:$0xff]   ;;  %9171 = vrsqrt.f32 %v9658_v1 }
 0x306   :  { %5413 = vmatpush1.bf16.msra.mxu1 %v9017_v62  ;;  %5439 = vmatprep.subr.bf16.mxu0 %v9028_v0  ;;  %v9083_v62 = vld [vmem:[#allocation5 + $0x1720] ss:$16 sps:$4 sm:$0xff]   ;;  %v9094_v0 = vld [vmem:[#allocation5 + $0x164c] ss:$16 sps:$4 sm:$0xff]   ;;  %9173 = vrsqrt.f32 %v9640_v23 }
 0x307   :  { %5414 = vmatprep.subr.bf16.mxu1 %v9025_v2  ;;  %v9091_v2 = vld [vmem:[#allocation5 + $0x1744] ss:$16 sps:$4 sm:$0xff]   ;;  %9175 = vrsqrt.f32 %v9656_v60 }
 0x309   :  { %5440 = vmatpush1.bf16.msra.mxu0 %v9026_v3  ;;  %v9092_v3 = vld [vmem:[#allocation5 + $0x1648] ss:$16 sps:$4 sm:$0xff]  }
 0x30a   :  { %5415 = vmatpush1.bf16.msra.mxu1 %v9023_v4  ;;  %5441 = vmatprep.subr.bf16.mxu0 %v9031_v5  ;;  %v9089_v4 = vld [vmem:[#allocation5 + $0x1740] ss:$16 sps:$4 sm:$0xff]   ;;  %v9100_v5 = vld [vmem:[#allocation5 + $0x166c] ss:$16 sps:$4 sm:$0xff]  }
 0x30b   :  { %5786 = vmatprep.subr.bf16.mxu1 %v9034_v6  ;;  %v9097_v6 = vld [vmem:[#allocation5 + $0x1764] ss:$16 sps:$4 sm:$0xff]  }
 0x30d   :  { %5417 = vmatmul.mubr.bf16.vlgmr.msra.gmra.mrb[40].mxu1 %v9529_v43  ;;  %5442 = vmatpush1.bf16.msra.mxu0 %v9029_v7  ;;  %v9098_v7 = vld [vmem:[#allocation5 + $0x1668] ss:$16 sps:$4 sm:$0xff]  }
 0x30e   :  { %5787 = vmatpush1.bf16.msra.mxu1 %v9032_v8  ;;  %5443 = vmatprep.subr.bf16.mxu0 %v9037_v10  ;;  %v9106_v8 = vld [vmem:[#allocation5 + $0x168c] ss:$16 sps:$4 sm:$0xff]   ;;  %v9103_v10 = vld [vmem:[#allocation5 + $0x1784] ss:$16 sps:$4 sm:$0xff]  }
 0x30f   :  { %5788 = vmatprep.subr.bf16.mxu1 %v9040_v12  ;;  %5818 = vmatprep.mubr.bf16.mxu1 %v9527_v41  ;;  %v9104_v12 = vld [vmem:[#allocation5 + $0x1688] ss:$16 sps:$4 sm:$0xff]  }
 0x311   :  { %5444 = vmatpush1.bf16.msra.mxu0 %v9035_v13  ;;  %v9101_v13 = vld [vmem:[#allocation5 + $0x1780] ss:$16 sps:$4 sm:$0xff]  }
 0x312   :  { %5789 = vmatpush1.bf16.msra.mxu1 %v9038_v14  ;;  %5445 = vmatprep.subr.bf16.mxu0 %v9043_v15  ;;  %v9112_v14 = vld [vmem:[#allocation5 + $0x16ac] ss:$16 sps:$4 sm:$0xff]   ;;  %v9109_v15 = vld [vmem:[#allocation5 + $0x17a4] ss:$16 sps:$4 sm:$0xff]  }
 0x313   :  { %5790 = vmatprep.subr.bf16.mxu1 %v9046_v16  ;;  %v9110_v16 = vld [vmem:[#allocation5 + $0x16a8] ss:$16 sps:$4 sm:$0xff]  }
 0x315   :  { %5446 = vmatpush1.bf16.msra.mxu0 %v9041_v17 }
 0x316   :  { %5791 = vmatpush1.bf16.msra.mxu1 %v9044_v18  ;;  %5447 = vmatprep.subr.bf16.mxu0 %v9049_v19  ;;  %v9107_v18 = vld [vmem:[#allocation5 + $0x17a0] ss:$16 sps:$4 sm:$0xff]   ;;  %v9118_v19 = vld [vmem:[#allocation5 + $0x16cc] ss:$16 sps:$4 sm:$0xff]  }
 0x317   :  { %5792 = vmatprep.subr.bf16.mxu1 %v9052_v20  ;;  %v9150_v20 = vpop.eup %9149 }
 0x319   :  { %5448 = vmatpush1.bf16.msra.mxu0 %v9047_v21 }
 0x31a   :  { %5793 = vmatpush1.bf16.msra.mxu1 %v9050_v22  ;;  %5449 = vmatprep.subr.bf16.mxu0 %v9055_v24  ;;  %v9115_v24 = vld [vmem:[#allocation5 + $0x17c4] ss:$16 sps:$4 sm:$0xff]  }
 0x31b   :  { %5794 = vmatprep.subr.bf16.mxu1 %v9058_v25 }
 0x31d   :  { %5450 = vmatpush1.bf16.msra.mxu0 %v9053_v26 }
 0x31e   :  { %5795 = vmatpush1.bf16.msra.mxu1 %v9056_v28  ;;  %5451 = vmatprep.subr.bf16.mxu0 %v9061_v30 }
 0x31f   :  { %5796 = vmatprep.subr.bf16.mxu1 %v9064_v31  ;;  %v9116_v31 = vld [vmem:[#allocation5 + $0x16c8] ss:$16 sps:$4 sm:$0xff]  }
 0x320   :  { %v9662_v39 = vpop.f32.mrb[28].mxu1 }
 0x321   :  { %5452 = vmatpush1.bf16.msra.mxu0 %v9059_v32  ;;  %v9664_v42 = vpop.f32.mrb[29].mxu1  ;;  %v5882_v17 = vmul.f32 %v9662_v39, %v9662_v39  ;;  %v5948_v39 = vmul.f32 %v9150_v20, %v9562_v35  ;;  %v9143_v20 = vld [vmem:[#allocation5 + $0x17c8] ss:$16 sps:$4 sm:$0xff]  }
 0x322   :  { %5797 = vmatpush1.bf16.msra.mxu1 %v9062_v36  ;;  %5453 = vmatprep.subr.bf16.mxu0 %v9067_v37  ;;  %v4216_v46 = vpop.f32.mrb[30].mxu1  ;;  %v5883_v21 = vmul.f32 %v9664_v42, %v9664_v42  ;;  %v9113_v37 = vld [vmem:[#allocation5 + $0x17c0] ss:$16 sps:$4 sm:$0xff]   ;;  %v9121_v42 = vld [vmem:[#allocation5 + $0x17e4] ss:$16 sps:$4 sm:$0xff]  }
 0x323   :  { %5798 = vmatprep.subr.bf16.mxu1 %v9070_v38  ;;  %v4217_v48 = vpop.f32.mrb[31].mxu1  ;;  %v9124_v38 = vld [vmem:[#allocation5 + $0x16ec] ss:$16 sps:$4 sm:$0xff]  }
 0x324   :  { %v9127_v46 = vld [vmem:[#allocation5 + $0x170c] ss:$16 sps:$4 sm:$0xff]   ;;  %v5952_v48 = vand.u32 2147483648, %v9562_v35 }
 0x325   :  { %5454 = vmatpush1.bf16.msra.mxu0 %v9065_v40 }
 0x326   :  { %5799 = vmatpush1.bf16.msra.mxu1 %v9068_v44  ;;  %5455 = vmatprep.subr.bf16.mxu0 %v9073_v45  ;;  %v9122_v44 = vld [vmem:[#allocation5 + $0x16e8] ss:$16 sps:$4 sm:$0xff]   ;;  %v9119_v45 = vld [vmem:[#allocation5 + $0x17e0] ss:$16 sps:$4 sm:$0xff]  }
 0x327   :  { %5800 = vmatprep.subr.bf16.mxu1 %v9076_v47  ;;  %v5950_v47 = vsel %vm5949_vm1, %v9562_v35, %v5948_v39  ;;  %v9692_v35 = vld [vmem:[%s10132_s2] sm:$0xff]   ;;  %v9777_v39 = vld [vmem:[%s10132_s2 + $0x30] sm:$0xff]   ;;  %vm6007_vm1 = vcmp.eq.f32.partialorder %v9626_v63, 0.0 }
 0x329   :  { %5456 = vmatpush1.bf16.msra.mxu0 %v9071_v49  ;;  %v9125_v49 = vld [vmem:[#allocation5 + $0x1708] ss:$16 sps:$4 sm:$0xff]  }
 0x32a   :  { %5801 = vmatpush1.bf16.msra.mxu1 %v9074_v50  ;;  %5827 = vmatprep.subr.bf16.mxu0 %v9082_v51  ;;  %v5953_v50 = vsel %vm5951_vm2, %v5952_v48, %v5950_v47  ;;  %v9685_v51 = vld [vmem:[%s10132_s2 + $0x40] sm:$0xff]   ;;  %vm5984_vm2 = vcmp.eq.f32.partialorder %v9608_v29, inf }
 0x32b   :  { %5802 = vmatprep.subr.bf16.mxu1 %v9079_v52  ;;  %v9130_v52 = vld [vmem:[#allocation5 + $0x172c] ss:$16 sps:$4 sm:$0xff]  }
 0x32c   :  { %5458 = vmatmul.mubr.bf16.vlgmr.msra.gmra.mrb[44].mxu0 %v9529_v43 }
 0x32d   :  { %5828 = vmatpush1.bf16.msra.mxu0 %v9080_v54  ;;  %5859 = vmatprep.mubr.bf16.mxu0 %v9527_v41  ;;  %v9095_v41 = vld [vmem:[#allocation5 + $0x1760] ss:$16 sps:$4 sm:$0xff]   ;;  %v6109_v54 = vpack.c.bf16 %v5953_v50, %v5953_v50 }
 0x32e   :  { %5803 = vmatpush1.bf16.msra.mxu1 %v9077_v56  ;;  %5829 = vmatprep.subr.bf16.mxu0 %v9088_v57  ;;  %v9128_v56 = vld [vmem:[#allocation5 + $0x1728] ss:$16 sps:$4 sm:$0xff]   ;;  %v9133_v57 = vld [vmem:[#allocation5 + $0x174c] ss:$16 sps:$4 sm:$0xff]  }
 0x32f   :  { %5804 = vmatprep.subr.bf16.mxu1 %v9085_v58  ;;  %v9698_v58 = vld [vmem:[%s10132_s2 + $0x48] sm:$0xff]  }
 0x331   :  { %5830 = vmatpush1.bf16.msra.mxu0 %v9086_v61  ;;  %v9131_v61 = vld [vmem:[#allocation5 + $0x1748] ss:$16 sps:$4 sm:$0xff]  }
 0x332   :  { %5805 = vmatpush1.bf16.msra.mxu1 %v9083_v62  ;;  %5831 = vmatprep.subr.bf16.mxu0 %v9094_v0  ;;  %v9704_v62 = vld [vmem:[%s10132_s2 + $0x8] sm:$0xff]  }
 0x333   :  { %5806 = vmatprep.subr.bf16.mxu1 %v9091_v2  ;;  %v9136_v0 = vld [vmem:[#allocation5 + $0x176c] ss:$16 sps:$4 sm:$0xff]  }
 0x334   :  { %v9710_v2 = vld [vmem:[%s10132_s2 + $0x50] sm:$0xff]  }
 0x335   :  { %5832 = vmatpush1.bf16.msra.mxu0 %v9092_v3  ;;  %v9134_v3 = vld [vmem:[#allocation5 + $0x1768] ss:$16 sps:$4 sm:$0xff]  }
 0x336   :  { %5807 = vmatpush1.bf16.msra.mxu1 %v9089_v4  ;;  %5833 = vmatprep.subr.bf16.mxu0 %v9100_v5  ;;  %v9719_v4 = vld [vmem:[%s10132_s2 + $0x10] sm:$0xff]  }
 0x337   :  { %5808 = vmatprep.subr.bf16.mxu1 %v9097_v6  ;;  %v9139_v5 = vld [vmem:[#allocation5 + $0x178c] ss:$16 sps:$4 sm:$0xff]  }
 0x338   :  { %v9725_v6 = vld [vmem:[%s10132_s2 + $0x58] sm:$0xff]  }
 0x339   :  { %5834 = vmatpush1.bf16.msra.mxu0 %v9098_v7  ;;  %v9137_v7 = vld [vmem:[#allocation5 + $0x1788] ss:$16 sps:$4 sm:$0xff]  }
 0x33a   :  { %5809 = vmatpush1.bf16.msra.mxu1 %v9095_v41  ;;  %5835 = vmatprep.subr.bf16.mxu0 %v9106_v8  ;;  %v9731_v41 = vld [vmem:[%s10132_s2 + $0x18] sm:$0xff]  }
 0x33b   :  { %5810 = vmatprep.subr.bf16.mxu1 %v9103_v10  ;;  %v9142_v8 = vld [vmem:[#allocation5 + $0x17ac] ss:$16 sps:$4 sm:$0xff]  }
 0x33c   :  { %v9737_v10 = vld [vmem:[%s10132_s2 + $0x60] sm:$0xff]  }
 0x33d   :  { %5836 = vmatpush1.bf16.msra.mxu0 %v9104_v12  ;;  %v9140_v12 = vld [vmem:[#allocation5 + $0x17a8] ss:$16 sps:$4 sm:$0xff]  }
 0x33e   :  { %5811 = vmatpush1.bf16.msra.mxu1 %v9101_v13  ;;  %5837 = vmatprep.subr.bf16.mxu0 %v9112_v14  ;;  %v9152_v13 = vpop.eup %9151  ;;  %v9743_v14 = vld [vmem:[%s10132_s2 + $0x20] sm:$0xff]  }
 0x33f   :  { %v4253_v22 = vpop.f32.mrb[32].mxu0  ;;  %5812 = vmatprep.subr.bf16.mxu1 %v9109_v15  ;;  %v9145_v15 = vld [vmem:[#allocation5 + $0x17cc] ss:$16 sps:$4 sm:$0xff]  }
 0x340   :  { %v5906_v25 = vmul.f32 %v4253_v22, %v4253_v22  ;;  %v4255_v26 = vpop.f32.mrb[33].mxu0 }
 0x341   :  { %v5907_v28 = vmul.f32 %v4255_v26, %v4255_v26  ;;  %v4257_v30 = vpop.f32.mrb[34].mxu0  ;;  %5838 = vmatpush1.bf16.msra.mxu0 %v9110_v16  ;;  %v9154_v16 = vpop.eup %9153 }
 0x342   :  { %v9673_v32 = vadd.f32 %v5906_v25, %v5882_v17  ;;  %5813 = vmatpush1.bf16.msra.mxu1 %v9107_v18  ;;  %v4258_v36 = vpop.f32.mrb[35].mxu0  ;;  %5839 = vmatprep.subr.bf16.mxu0 %v9118_v19  ;;  %v9749_v17 = vld [vmem:[%s10132_s2 + $0x68] sm:$0xff]   ;;  %v9156_v18 = vpop.eup %9155  ;;  %v5962_v26 = vmul.f32 %v9154_v16, %v9578_v55  ;;  %v9767_v30 = vld [vmem:[%s10132_s2 + $0x70] sm:$0xff]  }
 0x343   :  { %v9676_v40 = vadd.f32 %v5907_v28, %v5883_v21  ;;  %5814 = vmatprep.subr.bf16.mxu1 %v9115_v24  ;;  %v5941_v21 = vmul.f32 %v9152_v13, %v9560_v33  ;;  %v9760_v24 = vld [vmem:[%s10132_s2 + $0x28] sm:$0xff]  }
 0x344   :  { %v9148_v25 = vld [vmem:[#allocation5 + $0x17ec] ss:$16 sps:$4 sm:$0xff]  }
 0x345   :  { %5840 = vmatpush1.bf16.msra.mxu0 %v9116_v31  ;;  %v5976_v31 = vmul.f32 %v9156_v18, %v9594_v11  ;;  %9177 = vrsqrt.f32 %v9676_v40 }
 0x346   :  { %5815 = vmatpush1.bf16.msra.mxu1 %v9113_v37  ;;  %5841 = vmatprep.subr.bf16.mxu0 %v9124_v38  ;;  %v9146_v37 = vld [vmem:[#allocation5 + $0x17e8] ss:$16 sps:$4 sm:$0xff]   ;;  %v5943_v38 = vsel %vm5942_vm3, %v9560_v33, %v5941_v21  ;;  %vm5998_vm3 = vcmp.eq.f32.partialorder %v9624_v59, inf }
 0x347   :  { %5816 = vmatprep.subr.bf16.mxu1 %v9121_v42  ;;  %v5945_v42 = vand.u32 2147483648, %v9560_v33  ;;  %v5978_v47 = vsel %vm5977_vm5, %v9594_v11, %v5976_v31  ;;  %v5973_v31 = vand.u32 2147483648, %v9592_v9  ;;  %vm5986_vm5 = vcmp.eq.f32.partialorder %v9608_v29, 0.0 }
 0x349   :  { %5842 = vmatpush1.bf16.msra.mxu0 %v9122_v44  ;;  %v5964_v44 = vsel %vm5963_vm4, %v9578_v55, %v5962_v26  ;;  %v5946_v48 = vsel %vm5944_vm6, %v5945_v42, %v5943_v38  ;;  %v5959_v26 = vand.u32 2147483648, %v9576_v53  ;;  %v5994_v38 = vand.u32 2147483648, %v9610_v34 }
 0x34a   :  { %5817 = vmatpush1.bf16.msra.mxu1 %v9119_v45  ;;  %5843 = vmatprep.subr.bf16.mxu0 %v9127_v46  ;;  %v9786_v45 = vld [vmem:[%s10132_s2 + $0x78] sm:$0xff]   ;;  %v5966_v46 = vand.u32 2147483648, %v9578_v55  ;;  %vm6019_vm4 = vcmp.eq.f32.partialorder %v9642_v27, inf  ;;  %vm6033_vm6 = vcmp.eq.f32.partialorder %v9658_v1, inf }
 0x34b   :  { %7705 = vmatprep.subr.bf16.mxu1 %v9685_v51 }
 0x34c   :  { %v5967_v50 = vsel %vm5965_vm7, %v5966_v46, %v5964_v44  ;;  %vm6000_vm7 = vcmp.eq.f32.partialorder %v9624_v59, 0.0 }
 0x34d   :  { %5819 = vmatmul.mubr.bf16.vlgmr.msra.gmra.mrb[44].mxu1 %v9529_v43  ;;  %5844 = vmatpush1.bf16.msra.mxu0 %v9125_v49  ;;  %v5980_v49 = vand.u32 2147483648, %v9594_v11  ;;  %v6111_v55 = vpack.c.bf16 %v5967_v50, %v5967_v50 }
 0x34e   :  { %7706 = vmatpush3.bf16.msra.mxu1 %v9692_v35  ;;  %6164 = vmatprep.mubr.bf16.mxu1 %v6109_v54  ;;  %v6108_v54 = vpack.c.bf16 %v5946_v48, %v5946_v48 }
 0x34f   :  { %5845 = vmatprep.subr.bf16.mxu0 %v9130_v52  ;;  %7707 = vmatprep.subr.bf16.mxu1 %v9698_v58  ;;  %v9798_v52 = vld [vmem:[%s10132_s2 + $0x38] sm:$0xff]   ;;  %v5981_v33 = vsel %vm5979_vm8, %v5980_v49, %v5978_v47  ;;  %vm6021_vm8 = vcmp.eq.f32.partialorder %v9642_v27, 0.0  ;;  %s9387_s2 = smov [#allocation10]  }
 0x350   :  { %v6113_v11 = vpack.c.bf16 %v5981_v33, %v5981_v33  ;;  %s6846_s27 = sshll.u32 %s9387_s2, 4  ;;  %s6847_s27 = int_to_ptr.vmem [resolvable:$true] %s6846_s27 }
 0x351   :  { %5846 = vmatpush1.bf16.msra.mxu0 %v9128_v56  ;;  %s9325_s28 = scalar_lea.vmem %s6847_s27, 32  ;;  %p9330_p5 = scmp.lt.s32.totalorder %s6847_s27, %s6847_s27 }
 0x352   :  { %7708 = vmatpush3.bf16.msra.mxu1 %v9704_v62  ;;  %5847 = vmatprep.subr.bf16.mxu0 %v9133_v57  ;;  %p9326_p4 = scmp.ne.s32.totalorder %s6847_s27, %s9325_s28  ;;  %p9331_p6 = scmp.lt.s32.totalorder %s9325_s28, %s9325_s28 }
 0x353   :  { %7709 = vmatprep.subr.bf16.mxu1 %v9710_v2 }
 0x354   :  { %p9332_p7 = por %p9331_p6, %p9330_p5 }
 0x355   :  { %5848 = vmatpush1.bf16.msra.mxu0 %v9131_v61 }
 0x356   :  { %7710 = vmatpush3.bf16.msra.mxu1 %v9719_v4  ;;  %5849 = vmatprep.subr.bf16.mxu0 %v9136_v0  ;;  %p9333_p8 = pnand %p9332_p7, %p9326_p4 }
 0x357   :  { %7711 = vmatprep.subr.bf16.mxu1 %v9725_v6 }
 0x359   :  { %5850 = vmatpush1.bf16.msra.mxu0 %v9134_v3 }
 0x35a   :  { %7712 = vmatpush3.bf16.msra.mxu1 %v9731_v41  ;;  %5851 = vmatprep.subr.bf16.mxu0 %v9139_v5 }
 0x35b   :  { %7713 = vmatprep.subr.bf16.mxu1 %v9737_v10 }
 0x35d   :  { %5852 = vmatpush1.bf16.msra.mxu0 %v9137_v7 }
 0x35e   :  { %7714 = vmatpush3.bf16.msra.mxu1 %v9743_v14  ;;  %5853 = vmatprep.subr.bf16.mxu0 %v9142_v8 }
 0x35f   :  { %7715 = vmatprep.subr.bf16.mxu1 %v9749_v17 }
 0x360   :  { %v9752_v19 = vpop.f32.mrb[32].mxu1 }
 0x361   :  { %5854 = vmatpush1.bf16.msra.mxu0 %v9140_v12  ;;  %v9755_v22 = vpop.f32.mrb[33].mxu1  ;;  %v5884_v57 = vmul.f32 %v9752_v19, %v9752_v19 }
 0x362   :  { %7716 = vmatpush3.bf16.msra.mxu1 %v9760_v24  ;;  %5855 = vmatprep.subr.bf16.mxu0 %v9145_v15  ;;  %v4618_v28 = vpop.f32.mrb[34].mxu1  ;;  %v5885_v0 = vmul.f32 %v9755_v22, %v9755_v22 }
 0x363   :  { %7717 = vmatprep.subr.bf16.mxu1 %v9767_v30  ;;  %v4619_v36 = vpop.f32.mrb[35].mxu1 }
 0x365   :  { %5856 = vmatpush1.bf16.msra.mxu0 %v9143_v20 }
 0x366   :  { %7718 = vmatpush3.bf16.msra.mxu1 %v9777_v39  ;;  %5857 = vmatprep.subr.bf16.mxu0 %v9148_v25 }
 0x367   :  { %7719 = vmatprep.subr.bf16.mxu1 %v9786_v45 }
 0x369   :  { %5858 = vmatpush1.bf16.msra.mxu0 %v9146_v37 }
 0x36a   :  { %7720 = vmatpush3.bf16.msra.mxu1 %v9798_v52  ;;  %7727 = vmatprep.subr.bf16.mxu0 %v9685_v51 }
 0x36b   :  { %7749 = vmatprep.subr.bf16.mxu1 %v9685_v51 }
 0x36c   :  { %5860 = vmatmul.mubr.bf16.vlgmr.msra.gmra.mrb[48].mxu0 %v9529_v43  ;;  %v9158_v43 = vpop.eup %9157 }
 0x36d   :  { %6165 = vmatmul.mubr.bf16.vlgmr.msra.gmra.mrb[48].mxu1 %v6108_v54  ;;  %7728 = vmatpush3.bf16.msra.mxu0 %v9692_v35  ;;  %v9160_v56 = vpop.eup %9159  ;;  %v5955_v12 = vmul.f32 %v9158_v43, %v9576_v53 }
 0x36e   :  { %6204 = vmatprep.mubr.bf16.mxu0 %v6111_v55  ;;  %7750 = vmatpush3.bf16.msra.mxu1 %v9692_v35  ;;  %v9162_v61 = vpop.eup %9161  ;;  %v5969_v16 = vmul.f32 %v9160_v56, %v9592_v9 }
 0x36f   :  { %6244 = vmatprep.mubr.bf16.mxu1 %v6113_v11  ;;  %7729 = vmatprep.subr.bf16.mxu0 %v9698_v58  ;;  %v9164_v5 = vpop.eup %9163  ;;  %v5990_v20 = vmul.f32 %v9162_v61, %v9610_v34  ;;  %v5957_v25 = vsel %vm5956_vm9, %v9576_v53, %v5955_v12  ;;  %v6008_v53 = vand.u32 2147483648, %v9626_v63  ;;  %v6001_v12 = vand.u32 2147483648, %v9624_v59 }
 0x370   :  { %7751 = vmatprep.subr.bf16.mxu1 %v9698_v58  ;;  %v6004_v22 = vmul.f32 %v9164_v5, %v9626_v63  ;;  %v5971_v28 = vsel %vm5970_vm10, %v9592_v9, %v5969_v16  ;;  %v5960_v37 = vsel %vm5958_vm12, %v5959_v26, %v5957_v25  ;;  %v6022_v16 = vand.u32 2147483648, %v9642_v27 }
 0x371   :  { %7730 = vmatpush3.bf16.msra.mxu0 %v9704_v62  ;;  %v5992_v36 = vsel %vm5991_vm11, %v9610_v34, %v5990_v20  ;;  %v5974_v44 = vsel %vm5972_vm14, %v5973_v31, %v5971_v28  ;;  %v6110_v47 = vpack.c.bf16 %v5960_v37, %v5960_v37  ;;  %vm6035_vm9 = vcmp.eq.f32.partialorder %v9658_v1, 0.0 }
 0x372   :  { %7752 = vmatpush3.bf16.msra.mxu1 %v9704_v62  ;;  %7731 = vmatprep.subr.bf16.mxu0 %v9710_v2  ;;  %v6006_v42 = vsel %vm6005_vm13, %v9626_v63, %v6004_v22  ;;  %v5995_v46 = vsel %vm5993_vm15, %v5994_v38, %v5992_v36  ;;  %v6112_v48 = vpack.c.bf16 %v5974_v44, %v5974_v44  ;;  %v9166_v63 = vpop.eup %9165  ;;  %vm6012_vm10 = vcmp.eq.f32.partialorder %v9640_v23, inf }
 0x373   :  { %7753 = vmatprep.subr.bf16.mxu1 %v9710_v2  ;;  %v6009_v9 = vsel %vm6007_vm1, %v6008_v53, %v6006_v42  ;;  %v6115_v49 = vpack.c.bf16 %v5995_v46, %v5995_v46  ;;  %v9168_v50 = vpop.eup %9167  ;;  %v5983_v55 = vmul.f32 %v9166_v63, %v9608_v29  ;;  %vm6026_vm11 = vcmp.eq.f32.partialorder %v9656_v60, inf }
 0x374   :  { %v6117_v34 = vpack.c.bf16 %v6009_v9, %v6009_v9  ;;  %v9170_v33 = vpop.eup %9169  ;;  %v5997_v43 = vmul.f32 %v9168_v50, %v9624_v59  ;;  %vm6047_vm12 = vcmp.eq.f32.partialorder %v9676_v40, inf  ;;  %vm6014_vm13 = vcmp.eq.f32.partialorder %v9640_v23, 0.0 }
 0x375   :  { %7732 = vmatpush3.bf16.msra.mxu0 %v9719_v4  ;;  %v9172_v54 = vpop.eup %9171  ;;  %v5985_v5 = vsel %vm5984_vm2, %v9608_v29, %v5983_v55  ;;  %vm6028_vm15 = vcmp.eq.f32.partialorder %v9656_v60, 0.0  ;;  %vm6049_vm1 = vcmp.eq.f32.partialorder %v9676_v40, 0.0 }
 0x376   :  { %7754 = vmatpush3.bf16.msra.mxu1 %v9719_v4  ;;  %7733 = vmatprep.subr.bf16.mxu0 %v9725_v6 }
 0x377   :  { %7755 = vmatprep.subr.bf16.mxu1 %v9725_v6 }
 0x379   :  { %7734 = vmatpush3.bf16.msra.mxu0 %v9731_v41 }
 0x37a   :  { %7756 = vmatpush3.bf16.msra.mxu1 %v9731_v41  ;;  %7735 = vmatprep.subr.bf16.mxu0 %v9737_v10 }
 0x37b   :  { %7757 = vmatprep.subr.bf16.mxu1 %v9737_v10 }
 0x37d   :  { %7736 = vmatpush3.bf16.msra.mxu0 %v9743_v14 }
 0x37e   :  { %7758 = vmatpush3.bf16.msra.mxu1 %v9743_v14  ;;  %7737 = vmatprep.subr.bf16.mxu0 %v9749_v17 }
 0x37f   :  { %v4655_v3 = vpop.f32.mrb[36].mxu0  ;;  %7759 = vmatprep.subr.bf16.mxu1 %v9749_v17 }
 0x380   :  { %v5908_v7 = vmul.f32 %v4655_v3, %v4655_v3  ;;  %v4657_v8 = vpop.f32.mrb[37].mxu0 }
 0x381   :  { %v5909_v13 = vmul.f32 %v4657_v8, %v4657_v8  ;;  %v4659_v15 = vpop.f32.mrb[38].mxu0  ;;  %7738 = vmatpush3.bf16.msra.mxu0 %v9760_v24  ;;  %v5999_v8 = vsel %vm5998_vm3, %v9624_v59, %v5997_v43  ;;  %vm6040_vm3 = vcmp.eq.f32.partialorder %v9673_v32, inf }
 0x382   :  { %v9835_v18 = vadd.f32 %v5908_v7, %v5884_v57  ;;  %7760 = vmatpush3.bf16.msra.mxu1 %v9760_v24  ;;  %v4660_v19 = vpop.f32.mrb[39].mxu0  ;;  %7739 = vmatprep.subr.bf16.mxu0 %v9767_v30  ;;  %v6018_v57 = vmul.f32 %v9170_v33, %v9642_v27  ;;  %v5987_v7 = vand.u32 2147483648, %v9608_v29  ;;  %v6002_v20 = vsel %vm6000_vm7, %v6001_v12, %v5999_v8 }
 0x383   :  { %v9840_v21 = vadd.f32 %v5909_v13, %v5885_v0  ;;  %7761 = vmatprep.subr.bf16.mxu1 %v9767_v30  ;;  %v6032_v0 = vmul.f32 %v9172_v54, %v9658_v1  ;;  %v6036_v29 = vand.u32 2147483648, %v9658_v1  ;;  %v6116_v26 = vpack.c.bf16 %v6002_v20, %v6002_v20 }
 0x384   :  { %v6020_v13 = vsel %vm6019_vm4, %v9642_v27, %v6018_v57  ;;  %v5988_v15 = vsel %vm5986_vm5, %v5987_v7, %v5985_v5  ;;  %vm6054_vm4 = vcmp.eq.f32.partialorder %v9835_v18, inf  ;;  %vm6056_vm7 = vcmp.eq.f32.partialorder %v9835_v18, 0.0 }
 0x385   :  { %7740 = vmatpush3.bf16.msra.mxu0 %v9777_v39  ;;  %v6034_v19 = vsel %vm6033_vm6, %v9658_v1, %v6032_v0  ;;  %v6023_v22 = vsel %vm6021_vm8, %v6022_v16, %v6020_v13  ;;  %v6114_v25 = vpack.c.bf16 %v5988_v15, %v5988_v15  ;;  %9179 = vrsqrt.f32 %v9840_v21  ;;  %v9174_v1 = vpop.eup %9173 }
 0x386   :  { %7762 = vmatpush3.bf16.msra.mxu1 %v9777_v39  ;;  %7741 = vmatprep.subr.bf16.mxu0 %v9786_v45  ;;  %v6037_v59 = vsel %vm6035_vm9, %v6036_v29, %v6034_v19  ;;  %v6119_v28 = vpack.c.bf16 %v6023_v22, %v6023_v22  ;;  %v9176_v31 = vpop.eup %9175  ;;  %vm6061_vm14 = vcmp.eq.f32.partialorder %v9840_v21, inf  ;;  %v6050_v0 = vand.u32 2147483648, %v9676_v40 }
 0x387   :  { %7763 = vmatprep.subr.bf16.mxu1 %v9786_v45  ;;  %v6121_v27 = vpack.c.bf16 %v6037_v59, %v6037_v59  ;;  %v9178_v37 = vpop.eup %9177  ;;  %vm6063_vm2 = vcmp.eq.f32.partialorder %v9840_v21, 0.0  ;;  %9181 = vrsqrt.f32 %v9673_v32  ;;  %vm6042_vm6 = vcmp.eq.f32.partialorder %v9673_v32, 0.0 }
 0x388   :  { %v6046_v50 = vmul.f32 %v9178_v37, %v9676_v40  ;;  %9183 = vrsqrt.f32 %v9835_v18 }
 0x389   :  { %7742 = vmatpush3.bf16.msra.mxu0 %v9798_v52 }
 0x38a   :  { %7764 = vmatpush3.bf16.msra.mxu1 %v9798_v52  ;;  %7771 = vmatprep.subr.bf16.mxu0 %v9685_v51  ;;  %v6048_v57 = vsel %vm6047_vm12, %v9676_v40, %v6046_v50 }
 0x38b   :  { %7793 = vmatprep.subr.bf16.mxu1 %v9685_v51  ;;  %v6051_v7 = vsel %vm6049_vm1, %v6050_v0, %v6048_v57 }
 0x38c   :  { %6205 = vmatmul.mubr.bf16.vlgmr.msra.gmra.mrb[52].mxu0 %v6110_v47  ;;  %v6011_v47 = vmul.f32 %v9174_v1, %v9640_v23  ;;  %v6123_v13 = vpack.c.bf16 %v6051_v7, %v6051_v7 }
 0x38d   :  { %6245 = vmatmul.mubr.bf16.vlgmr.msra.gmra.mrb[52].mxu1 %v6112_v48  ;;  %7772 = vmatpush3.bf16.msra.mxu0 %v9692_v35 }
 0x38e   :  { %6284 = vmatprep.mubr.bf16.mxu0 %v6115_v49  ;;  %7794 = vmatpush3.bf16.msra.mxu1 %v9692_v35  ;;  %v6025_v49 = vmul.f32 %v9176_v31, %v9656_v60  ;;  %v6013_v55 = vsel %vm6012_vm10, %v9640_v23, %v6011_v47  ;;  %v6057_v31 = vand.u32 2147483648, %v9835_v18 }
 0x38f   :  { %6324 = vmatprep.mubr.bf16.mxu1 %v6117_v34  ;;  %7773 = vmatprep.subr.bf16.mxu0 %v9698_v58  ;;  %v9180_v44 = vpop.eup %9179 }
 0x390   :  { %7795 = vmatprep.subr.bf16.mxu1 %v9698_v58  ;;  %v6060_v54 = vmul.f32 %v9180_v44, %v9840_v21  ;;  %v6027_v43 = vsel %vm6026_vm11, %v9656_v60, %v6025_v49 }
 0x391   :  { %7774 = vmatpush3.bf16.msra.mxu0 %v9704_v62 }
 0x392   :  { %7796 = vmatpush3.bf16.msra.mxu1 %v9704_v62  ;;  %7775 = vmatprep.subr.bf16.mxu0 %v9710_v2 }
 0x393   :  { %7797 = vmatprep.subr.bf16.mxu1 %v9710_v2 }
 0x395   :  { %7776 = vmatpush3.bf16.msra.mxu0 %v9719_v4 }
 0x396   :  { %7798 = vmatpush3.bf16.msra.mxu1 %v9719_v4  ;;  %7777 = vmatprep.subr.bf16.mxu0 %v9725_v6 }
 0x397   :  { %7799 = vmatprep.subr.bf16.mxu1 %v9725_v6 }
 0x399   :  { %7778 = vmatpush3.bf16.msra.mxu0 %v9731_v41 }
 0x39a   :  { %7800 = vmatpush3.bf16.msra.mxu1 %v9731_v41  ;;  %7779 = vmatprep.subr.bf16.mxu0 %v9737_v10 }
 0x39b   :  { %7801 = vmatprep.subr.bf16.mxu1 %v9737_v10 }
 0x39d   :  { %7780 = vmatpush3.bf16.msra.mxu0 %v9743_v14 }
 0x39e   :  { %7802 = vmatpush3.bf16.msra.mxu1 %v9743_v14  ;;  %7781 = vmatprep.subr.bf16.mxu0 %v9749_v17 }
 0x39f   :  { %7803 = vmatprep.subr.bf16.mxu1 %v9749_v17 }
 0x3a0   :  { %v9893_v11 = vpop.f32.mrb[36].mxu1 }
 0x3a1   :  { %7782 = vmatpush3.bf16.msra.mxu0 %v9760_v24  ;;  %v9897_v56 = vpop.f32.mrb[37].mxu1  ;;  %v5886_v36 = vmul.f32 %v9893_v11, %v9893_v11  ;;  %v6015_v11 = vand.u32 2147483648, %v9640_v23  ;;  %v6064_v23 = vand.u32 2147483648, %v9840_v21 }
 0x3a2   :  { %7804 = vmatpush3.bf16.msra.mxu1 %v9760_v24  ;;  %7783 = vmatprep.subr.bf16.mxu0 %v9767_v30  ;;  %v5020_v61 = vpop.f32.mrb[38].mxu1  ;;  %v5887_v38 = vmul.f32 %v9897_v56, %v9897_v56  ;;  %v6029_v56 = vand.u32 2147483648, %v9656_v60 }
 0x3a3   :  { %7805 = vmatprep.subr.bf16.mxu1 %v9767_v30  ;;  %v5021_v3 = vpop.f32.mrb[39].mxu1  ;;  %v6016_v61 = vsel %vm6014_vm13, %v6015_v11, %v6013_v55 }
 0x3a4   :  { %v6062_v3 = vsel %vm6061_vm14, %v9840_v21, %v6060_v54  ;;  %v6030_v5 = vsel %vm6028_vm15, %v6029_v56, %v6027_v43  ;;  %v6118_v8 = vpack.c.bf16 %v6016_v61, %v6016_v61  ;;  %v9182_v21 = vpop.eup %9181 }
 0x3a5   :  { %7784 = vmatpush3.bf16.msra.mxu0 %v9777_v39  ;;  %v6065_v60 = vsel %vm6063_vm2, %v6064_v23, %v6062_v3  ;;  %v6120_v12 = vpack.c.bf16 %v6030_v5, %v6030_v5  ;;  %v9184_v15 = vpop.eup %9183  ;;  %v6039_v19 = vmul.f32 %v9182_v21, %v9673_v32 }
 0x3a6   :  { %7806 = vmatpush3.bf16.msra.mxu1 %v9777_v39  ;;  %7785 = vmatprep.subr.bf16.mxu0 %v9786_v45  ;;  %v6125_v40 = vpack.c.bf16 %v6065_v60, %v6065_v60  ;;  %v6053_v29 = vmul.f32 %v9184_v15, %v9835_v18 }
 0x3a7   :  { %7807 = vmatprep.subr.bf16.mxu1 %v9786_v45 }
 0x3a8   :  { %v6055_v1 = vsel %vm6054_vm4, %v9835_v18, %v6053_v29 }
 0x3a9   :  { %7786 = vmatpush3.bf16.msra.mxu0 %v9798_v52 }
 0x3aa   :  { %7808 = vmatpush3.bf16.msra.mxu1 %v9798_v52  ;;  %7815 = vmatprep.subr.bf16.mxu0 %v9685_v51 }
 0x3ab   :  { %7837 = vmatprep.subr.bf16.mxu1 %v9685_v51 }
 0x3ac   :  { %6285 = vmatmul.mubr.bf16.vlgmr.msra.gmra.mrb[56].mxu0 %v6114_v25 }
 0x3ad   :  { %6325 = vmatmul.mubr.bf16.vlgmr.msra.gmra.mrb[56].mxu1 %v6116_v26  ;;  %7816 = vmatpush3.bf16.msra.mxu0 %v9692_v35 }
 0x3ae   :  { %6364 = vmatprep.mubr.bf16.mxu0 %v6119_v28  ;;  %7838 = vmatpush3.bf16.msra.mxu1 %v9692_v35  ;;  %v6041_v28 = vsel %vm6040_vm3, %v9673_v32, %v6039_v19 }
 0x3af   :  { %6404 = vmatprep.mubr.bf16.mxu1 %v6121_v27  ;;  %7817 = vmatprep.subr.bf16.mxu0 %v9698_v58  ;;  %v6043_v27 = vand.u32 2147483648, %v9673_v32 }
 0x3b0   :  { %7839 = vmatprep.subr.bf16.mxu1 %v9698_v58 }
 0x3b1   :  { %7818 = vmatpush3.bf16.msra.mxu0 %v9704_v62  ;;  %v6044_v37 = vsel %vm6042_vm6, %v6043_v27, %v6041_v28  ;;  %v7659_v28 = vld [vmem:[#allocation7] ss:$0 sm:$0xff] }
 0x3b2   :  { %7840 = vmatpush3.bf16.msra.mxu1 %v9704_v62  ;;  %7819 = vmatprep.subr.bf16.mxu0 %v9710_v2  ;;  %v6122_v32 = vpack.c.bf16 %v6044_v37, %v6044_v37 }
 0x3b3   :  { %7841 = vmatprep.subr.bf16.mxu1 %v9710_v2 }
 0x3b5   :  { %7820 = vmatpush3.bf16.msra.mxu0 %v9719_v4 }
 0x3b6   :  { %7842 = vmatpush3.bf16.msra.mxu1 %v9719_v4  ;;  %7821 = vmatprep.subr.bf16.mxu0 %v9725_v6 }
 0x3b7   :  { %7843 = vmatprep.subr.bf16.mxu1 %v9725_v6 }
 0x3b9   :  { %7822 = vmatpush3.bf16.msra.mxu0 %v9731_v41 }
 0x3ba   :  { %7844 = vmatpush3.bf16.msra.mxu1 %v9731_v41  ;;  %7823 = vmatprep.subr.bf16.mxu0 %v9737_v10 }
 0x3bb   :  { %7845 = vmatprep.subr.bf16.mxu1 %v9737_v10 }
 0x3bd   :  { %7824 = vmatpush3.bf16.msra.mxu0 %v9743_v14 }
 0x3be   :  { %7846 = vmatpush3.bf16.msra.mxu1 %v9743_v14  ;;  %7825 = vmatprep.subr.bf16.mxu0 %v9749_v17 }
 0x3bf   :  { %v5057_v42 = vpop.f32.mrb[40].mxu0  ;;  %7847 = vmatprep.subr.bf16.mxu1 %v9749_v17 }
 0x3c0   :  { %v5910_v53 = vmul.f32 %v5057_v42, %v5057_v42  ;;  %v5059_v46 = vpop.f32.mrb[41].mxu0  ;;  %v6058_v42 = vsel %vm6056_vm7, %v6057_v31, %v6055_v1 }
 0x3c1   :  { %v5911_v9 = vmul.f32 %v5059_v46, %v5059_v46  ;;  %v5061_v48 = vpop.f32.mrb[42].mxu0  ;;  %7826 = vmatpush3.bf16.msra.mxu0 %v9760_v24 }
 0x3c2   :  { %v9959_v34 = vadd.f32 %v5910_v53, %v5886_v36  ;;  %7848 = vmatpush3.bf16.msra.mxu1 %v9760_v24  ;;  %v5062_v63 = vpop.f32.mrb[43].mxu0  ;;  %7827 = vmatprep.subr.bf16.mxu0 %v9767_v30  ;;  %v6124_v53 = vpack.c.bf16 %v6058_v42, %v6058_v42 }
 0x3c3   :  { %v9964_v33 = vadd.f32 %v5911_v9, %v5887_v38  ;;  %7849 = vmatprep.subr.bf16.mxu1 %v9767_v30 }
 0x3c4   :  { %vm6068_vm9 = vcmp.eq.f32.partialorder %v9959_v34, inf  ;;  %v6071_v57 = vand.u32 2147483648, %v9959_v34  ;;  %vm6070_vm10 = vcmp.eq.f32.partialorder %v9959_v34, 0.0 }
 0x3c5   :  { %7828 = vmatpush3.bf16.msra.mxu0 %v9777_v39  ;;  %9185 = vrsqrt.f32 %v9964_v33  ;;  %vm6075_vm5 = vcmp.eq.f32.partialorder %v9964_v33, inf  ;;  %v6078_v38 = vand.u32 2147483648, %v9964_v33  ;;  %vm6077_vm8 = vcmp.eq.f32.partialorder %v9964_v33, 0.0 }
 0x3c6   :  { %7850 = vmatpush3.bf16.msra.mxu1 %v9777_v39  ;;  %7829 = vmatprep.subr.bf16.mxu0 %v9786_v45  ;;  %9187 = vrsqrt.f32 %v9959_v34 }
 0x3c7   :  { %7851 = vmatprep.subr.bf16.mxu1 %v9786_v45 }
 0x3c9   :  { %7830 = vmatpush3.bf16.msra.mxu0 %v9798_v52 }
 0x3ca   :  { %7852 = vmatpush3.bf16.msra.mxu1 %v9798_v52  ;;  %7859 = vmatprep.subr.bf16.mxu0 %v9685_v51 }
 0x3cb   :  { %7881 = vmatprep.subr.bf16.mxu1 %v9685_v51 }
 0x3cc   :  { %6365 = vmatmul.mubr.bf16.vlgmr.msra.gmra.mrb[60].mxu0 %v6118_v8 }
 0x3cd   :  { %6405 = vmatmul.mubr.bf16.vlgmr.msra.gmra.mrb[60].mxu1 %v6120_v12  ;;  %7860 = vmatpush3.bf16.msra.mxu0 %v9692_v35 }
 0x3ce   :  { %6444 = vmatprep.mubr.bf16.mxu0 %v6123_v13  ;;  %7882 = vmatpush3.bf16.msra.mxu1 %v9692_v35 }
 0x3cf   :  { %6484 = vmatprep.mubr.bf16.mxu1 %v6125_v40  ;;  %7861 = vmatprep.subr.bf16.mxu0 %v9698_v58  ;;  %v9186_v16 = vpop.eup %9185 }
 0x3d0   :  { %7883 = vmatprep.subr.bf16.mxu1 %v9698_v58  ;;  %v6074_v25 = vmul.f32 %v9186_v16, %v9964_v33  ;;  %v9188_v18 = vpop.eup %9187 }
 0x3d1   :  { %7862 = vmatpush3.bf16.msra.mxu0 %v9704_v62  ;;  %v6067_v50 = vmul.f32 %v9188_v18, %v9959_v34 }
 0x3d2   :  { %7884 = vmatpush3.bf16.msra.mxu1 %v9704_v62  ;;  %7863 = vmatprep.subr.bf16.mxu0 %v9710_v2  ;;  %v6076_v36 = vsel %vm6075_vm5, %v9964_v33, %v6074_v25 }
 0x3d3   :  { %7885 = vmatprep.subr.bf16.mxu1 %v9710_v2  ;;  %v6079_v44 = vsel %vm6077_vm8, %v6078_v38, %v6076_v36  ;;  %v6069_v56 = vsel %vm6068_vm9, %v9959_v34, %v6067_v50  ;;  %v7671_v38 = vld [vmem:[#allocation8] ss:$0 sm:$0xff] }
 0x3d4   :  { %v6127_v46 = vpack.c.bf16 %v6079_v44, %v6079_v44  ;;  %v6072_v61 = vsel %vm6070_vm10, %v6071_v57, %v6069_v56 }
 0x3d5   :  { %7864 = vmatpush3.bf16.msra.mxu0 %v9719_v4  ;;  %v6126_v0 = vpack.c.bf16 %v6072_v61, %v6072_v61 }
 0x3d6   :  { %7886 = vmatpush3.bf16.msra.mxu1 %v9719_v4  ;;  %7865 = vmatprep.subr.bf16.mxu0 %v9725_v6 }
 0x3d7   :  { %7887 = vmatprep.subr.bf16.mxu1 %v9725_v6 }
 0x3d9   :  { %7866 = vmatpush3.bf16.msra.mxu0 %v9731_v41 }
 0x3da   :  { %7888 = vmatpush3.bf16.msra.mxu1 %v9731_v41  ;;  %7867 = vmatprep.subr.bf16.mxu0 %v9737_v10 }
 0x3db   :  { %7889 = vmatprep.subr.bf16.mxu1 %v9737_v10 }
 0x3dd   :  { %7868 = vmatpush3.bf16.msra.mxu0 %v9743_v14 }
 0x3de   :  { %7890 = vmatpush3.bf16.msra.mxu1 %v9743_v14  ;;  %7869 = vmatprep.subr.bf16.mxu0 %v9749_v17 }
 0x3df   :  { %7891 = vmatprep.subr.bf16.mxu1 %v9749_v17 }
 0x3e0   :  { %v5418_v20 = vpop.f32.mrb[40].mxu1 }
 0x3e1   :  { %7870 = vmatpush3.bf16.msra.mxu0 %v9760_v24  ;;  %v5420_v22 = vpop.f32.mrb[41].mxu1  ;;  %v5888_v47 = vmul.f32 %v5418_v20, %v5418_v20 }
 0x3e2   :  { %7892 = vmatpush3.bf16.msra.mxu1 %v9760_v24  ;;  %7871 = vmatprep.subr.bf16.mxu0 %v9767_v30  ;;  %v5422_v59 = vpop.f32.mrb[42].mxu1  ;;  %v5889_v9 = vmul.f32 %v5420_v22, %v5420_v22 }
 0x3e3   :  { %7893 = vmatprep.subr.bf16.mxu1 %v9767_v30  ;;  %v5423_v26 = vpop.f32.mrb[43].mxu1 }
 0x3e5   :  { %7872 = vmatpush3.bf16.msra.mxu0 %v9777_v39 }
 0x3e6   :  { %7894 = vmatpush3.bf16.msra.mxu1 %v9777_v39  ;;  %7873 = vmatprep.subr.bf16.mxu0 %v9786_v45 }
 0x3e7   :  { %7895 = vmatprep.subr.bf16.mxu1 %v9786_v45 }
 0x3e9   :  { %7874 = vmatpush3.bf16.msra.mxu0 %v9798_v52 }
 0x3ea   :  { %7896 = vmatpush3.bf16.msra.mxu1 %v9798_v52  ;;  %7903 = vmatprep.subr.bf16.mxu0 %v9685_v51 }
 0x3eb   :  { %7925 = vmatprep.subr.bf16.mxu1 %v9685_v51 }
 0x3ec   :  { %6445 = vmatmul.mubr.bf16.vlgmr.msra.gmra.mrb[64].mxu0 %v6122_v32 }
 0x3ed   :  { %6485 = vmatmul.mubr.bf16.vlgmr.msra.gmra.mrb[64].mxu1 %v6124_v53  ;;  %7904 = vmatpush3.bf16.msra.mxu0 %v9692_v35 }
 0x3ee   :  { %6524 = vmatprep.mubr.bf16.mxu0 %v6127_v46  ;;  %7905 = vmatprep.subr.bf16.mxu0 %v9698_v58 }
 0x3ef   :  { %7926 = vmatpush3.bf16.msra.mxu1 %v9692_v35 }
 0x3f0   :  { %7927 = vmatprep.subr.bf16.mxu1 %v9698_v58 }
 0x3f1   :  { %7906 = vmatpush3.bf16.msra.mxu0 %v9704_v62 }
 0x3f2   :  { %7907 = vmatprep.subr.bf16.mxu0 %v9710_v2 }
 0x3f3   :  { %7928 = vmatpush3.bf16.msra.mxu1 %v9704_v62 }
 0x3f4   :  { %7929 = vmatprep.subr.bf16.mxu1 %v9710_v2 }
 0x3f5   :  { %7908 = vmatpush3.bf16.msra.mxu0 %v9719_v4 }
 0x3f6   :  { %7909 = vmatprep.subr.bf16.mxu0 %v9725_v6 }
 0x3f7   :  { %7930 = vmatpush3.bf16.msra.mxu1 %v9719_v4 }
 0x3f8   :  { %7931 = vmatprep.subr.bf16.mxu1 %v9725_v6 }
 0x3f9   :  { %7910 = vmatpush3.bf16.msra.mxu0 %v9731_v41 }
 0x3fa   :  { %7911 = vmatprep.subr.bf16.mxu0 %v9737_v10 }
 0x3fb   :  { %7932 = vmatpush3.bf16.msra.mxu1 %v9731_v41 }
 0x3fc   :  { %7933 = vmatprep.subr.bf16.mxu1 %v9737_v10 }
 0x3fd   :  { %7912 = vmatpush3.bf16.msra.mxu0 %v9743_v14 }
 0x3fe   :  { %7913 = vmatprep.subr.bf16.mxu0 %v9749_v17 }
 0x3ff   :  { %v5459_v48 = vpop.f32.mrb[44].mxu0  ;;  %7934 = vmatpush3.bf16.msra.mxu1 %v9743_v14 }
 0x400   :  { %v5912_v49 = vmul.f32 %v5459_v48, %v5459_v48  ;;  %v5461_v63 = vpop.f32.mrb[45].mxu0  ;;  %7935 = vmatprep.subr.bf16.mxu1 %v9749_v17 }
 0x401   :  { %v5913_v33 = vmul.f32 %v5461_v63, %v5461_v63  ;;  %v5463_v54 = vpop.f32.mrb[46].mxu0  ;;  %7914 = vmatpush3.bf16.msra.mxu0 %v9760_v24 }
 0x402   :  { %v5936_v55 = vadd.f32 %v5912_v49, %v5888_v47  ;;  %v5464_v11 = vpop.f32.mrb[47].mxu0  ;;  %7915 = vmatprep.subr.bf16.mxu0 %v9767_v30 }
 0x403   :  { %v5937_v43 = vadd.f32 %v5913_v33, %v5889_v9  ;;  %7936 = vmatpush3.bf16.msra.mxu1 %v9760_v24 }
 0x404   :  { %9189 = vrsqrt.f32 %v5936_v55  ;;  %7937 = vmatprep.subr.bf16.mxu1 %v9767_v30  ;;  %vm6082_vm11 = vcmp.eq.f32.partialorder %v5936_v55, inf  ;;  %v6085_v7 = vand.u32 2147483648, %v5936_v55  ;;  %vm6084_vm13 = vcmp.eq.f32.partialorder %v5936_v55, 0.0 }
 0x405   :  { %9191 = vrsqrt.f32 %v5937_v43  ;;  %7916 = vmatpush3.bf16.msra.mxu0 %v9777_v39  ;;  %vm6089_vm12 = vcmp.eq.f32.partialorder %v5937_v43, inf  ;;  %v6092_v8 = vand.u32 2147483648, %v5937_v43  ;;  %vm6091_vm14 = vcmp.eq.f32.partialorder %v5937_v43, 0.0 }
 0x406   :  { %7917 = vmatprep.subr.bf16.mxu0 %v9786_v45 }
 0x407   :  { %7938 = vmatpush3.bf16.msra.mxu1 %v9777_v39 }
 0x408   :  { %7939 = vmatprep.subr.bf16.mxu1 %v9786_v45 }
 0x409   :  { %7918 = vmatpush3.bf16.msra.mxu0 %v9798_v52 }
 0x40a   :  { %7947 = vmatprep.subr.bf16.mxu0 %v9685_v51 }
 0x40b   :  { %7940 = vmatpush3.bf16.msra.mxu1 %v9798_v52 }
 0x40c   :  { %6525 = vmatmul.mubr.bf16.vlgmr.msra.gmra.mrb[68].mxu0 %v6126_v0  ;;  %v7660_v0 = vld [vmem:[#allocation7 + $0x1] ss:$0 sm:$0xff] }
 0x40d   :  { %7948 = vmatpush3.bf16.msra.mxu0 %v9692_v35 }
 0x40e   :  { %v9190_v3 = vpop.eup %9189  ;;  %7949 = vmatprep.subr.bf16.mxu0 %v9698_v58 }
 0x40f   :  { %v9192_v5 = vpop.eup %9191  ;;  %v6081_v34 = vmul.f32 %v9190_v3, %v5936_v55 }
 0x410   :  { %v6088_v23 = vmul.f32 %v9192_v5, %v5937_v43 }
 0x411   :  { %v6083_v60 = vsel %vm6082_vm11, %v5936_v55, %v6081_v34  ;;  %7950 = vmatpush3.bf16.msra.mxu0 %v9704_v62  ;;  %v7661_v34 = vld [vmem:[#allocation7 + $0x2] ss:$0 sm:$0xff] }
 0x412   :  { %v6090_v51 = vsel %vm6089_vm12, %v5937_v43, %v6088_v23  ;;  %v6086_v12 = vsel %vm6084_vm13, %v6085_v7, %v6083_v60  ;;  %7951 = vmatprep.subr.bf16.mxu0 %v9710_v2  ;;  %v7672_v23 = vld [vmem:[#allocation8 + $0x1] ss:$0 sm:$0xff]  ;;  %v7673_v60 = vld [vmem:[#allocation8 + $0x2] ss:$0 sm:$0xff] }
 0x413   :  { %v6093_v35 = vsel %vm6091_vm14, %v6092_v8, %v6090_v51  ;;  %v6128_v40 = vpack.c.bf16 %v6086_v12, %v6086_v12 }
 0x414   :  { %v6129_v13 = vpack.c.bf16 %v6093_v35, %v6093_v35 }
 0x415   :  { %7952 = vmatpush3.bf16.msra.mxu0 %v9719_v4 }
 0x416   :  { %6564 = vmatprep.mubr.bf16.mxu1 %v6129_v13  ;;  %7953 = vmatprep.subr.bf16.mxu0 %v9725_v6 }
 0x417   :  { %6565 = vmatmul.mubr.bf16.vlgmr.msra.gmra.mrb[68].mxu1 %v6128_v40 }
 0x419   :  { %7954 = vmatpush3.bf16.msra.mxu0 %v9731_v41 }
 0x41a   :  { %7955 = vmatprep.subr.bf16.mxu0 %v9737_v10 }
 0x41d   :  { %7956 = vmatpush3.bf16.msra.mxu0 %v9743_v14 }
 0x41e   :  { %7957 = vmatprep.subr.bf16.mxu0 %v9749_v17 }
 0x420   :  { %v5820_v58 = vpop.f32.mrb[44].mxu1 }
 0x421   :  { %v5822_v62 = vpop.f32.mrb[45].mxu1  ;;  %7958 = vmatpush3.bf16.msra.mxu0 %v9760_v24  ;;  %v5890_v6 = vmul.f32 %v5820_v58, %v5820_v58 }
 0x422   :  { %v5824_v2 = vpop.f32.mrb[46].mxu1  ;;  %7959 = vmatprep.subr.bf16.mxu0 %v9767_v30  ;;  %v5891_v41 = vmul.f32 %v5822_v62, %v5822_v62 }
 0x423   :  { %v5825_v4 = vpop.f32.mrb[47].mxu1 }
 0x425   :  { %7960 = vmatpush3.bf16.msra.mxu0 %v9777_v39 }
 0x426   :  { %7961 = vmatprep.subr.bf16.mxu0 %v9786_v45 }
 0x429   :  { %7962 = vmatpush3.bf16.msra.mxu0 %v9798_v52 }
 0x43f   :  { %v5861_v10 = vpop.f32.mrb[48].mxu0 }
 0x440   :  { %v5914_v14 = vmul.f32 %v5861_v10, %v5861_v10  ;;  %v7721_v21 = vpop.f32.mrb[48].mxu1  ;;  %v5863_v17 = vpop.f32.mrb[49].mxu0 }
 0x441   :  { %v5915_v15 = vmul.f32 %v5863_v17, %v5863_v17  ;;  %v7722_v16 = vpop.f32.mrb[49].mxu1  ;;  %v5865_v19 = vpop.f32.mrb[50].mxu0 }
 0x442   :  { %v5938_v24 = vadd.f32 %v5914_v14, %v5890_v6  ;;  %v7723_v20 = vadd.f32 %v7722_v16, %v7721_v21  ;;  %v7724_v29 = vpop.f32.mrb[50].mxu1  ;;  %v5866_v30 = vpop.f32.mrb[51].mxu0  ;;  %v7662_v16 = vld [vmem:[#allocation7 + $0x3] ss:$0 sm:$0xff] }
 0x443   :  { %v5939_v22 = vadd.f32 %v5915_v15, %v5891_v41  ;;  %v7725_v25 = vpop.f32.mrb[51].mxu1  ;;  %v7674_v29 = vld [vmem:[#allocation8 + $0x3] ss:$0 sm:$0xff] }
 0x444   :  { %9193 = vrsqrt.f32 %v5938_v24  ;;  %v6167_v39 = vadd.f32 0.0001, %v7723_v20  ;;  %vm6096_vm15 = vcmp.eq.f32.partialorder %v5938_v24, inf  ;;  %vm6098_vm1 = vcmp.eq.f32.partialorder %v5938_v24, 0.0  ;;  %v7663_v20 = vld [vmem:[#allocation7 + $0x4] ss:$0 sm:$0xff] }
 0x445   :  { %9195 = vrsqrt.f32 %v5939_v22  ;;  %v6099_v1 = vand.u32 2147483648, %v5938_v24  ;;  %vm6103_vm2 = vcmp.eq.f32.partialorder %v5939_v22, inf  ;;  %v6106_v36 = vand.u32 2147483648, %v5939_v22  ;;  %v7675_v25 = vld [vmem:[#allocation8 + $0x4] ss:$0 sm:$0xff] }
 0x446   :  { %9197 = vlog2.f32 %v6167_v39  ;;  %vm6105_vm3 = vcmp.eq.f32.partialorder %v5939_v22, 0.0 }
 0x44e   :  { %v9194_v45 = vpop.eup %9193 }
 0x44f   :  { %v9196_v52 = vpop.eup %9195  ;;  %v6095_v59 = vmul.f32 %v9194_v45, %v5938_v24 }
 0x450   :  { %v9198_v26 = vpop.eup %9197  ;;  %v6102_v27 = vmul.f32 %v9196_v52, %v5939_v22 }
 0x451   :  { %v6613_v31 = vmul.f32 0.6931472, %v9198_v26  ;;  %v6097_v37 = vsel %vm6096_vm15, %v5938_v24, %v6095_v59 }
 0x452   :  { %v6104_v42 = vsel %vm6103_vm2, %v5939_v22, %v6102_v27  ;;  %v6100_v44 = vsel %vm6098_vm1, %v6099_v1, %v6097_v37 }
 0x453   :  { %v6720_v32 = vsub.f32 %v6613_v31, %v7659_v28  ;;  %v6107_v53 = vsel %vm6105_vm3, %v6106_v36, %v6104_v42  ;;  %v6130_v47 = vpack.c.bf16 %v6100_v44, %v6100_v44 }
 0x454   :  { %v6131_v46 = vpack.c.bf16 %v6107_v53, %v6107_v53 }
 0x455   :  { %v6816_v18 = vmul.f32 %v7671_v38, %v6720_v32 }
 0x456   :  { %6604 = vmatprep.mubr.bf16.mxu0 %v6131_v46  ;;  %v7664_v46 = vld [vmem:[#allocation7 + $0x5] ss:$0 sm:$0xff] }
 0x457   :  { %6828 = vst.msk [vmem:[#allocation11] sm:$0x3] %vm274_vm0, %v6816_v18  ;;  %6605 = vmatmul.mubr.bf16.vlgmr.msra.gmra.mrb[72].mxu0 %v6130_v47 }
 0x45f   :  { %v7743_v9 = vpop.f32.mrb[52].mxu0 }
 0x460   :  { %v7765_v48 = vpop.f32.mrb[52].mxu1  ;;  %v7744_v49 = vpop.f32.mrb[53].mxu0 }
 0x461   :  { %v7745_v63 = vadd.f32 %v7744_v49, %v7743_v9  ;;  %v7766_v50 = vpop.f32.mrb[53].mxu1  ;;  %v7746_v33 = vpop.f32.mrb[54].mxu0  ;;  %v7665_v9 = vld [vmem:[#allocation7 + $0x6] ss:$0 sm:$0xff] }
 0x462   :  { %v7767_v54 = vadd.f32 %v7766_v50, %v7765_v48  ;;  %v7768_v55 = vpop.f32.mrb[54].mxu1  ;;  %v7747_v11 = vpop.f32.mrb[55].mxu0  ;;  %v7676_v48 = vld [vmem:[#allocation8 + $0x5] ss:$0 sm:$0xff]  ;;  %v7677_v50 = vld [vmem:[#allocation8 + $0x6] ss:$0 sm:$0xff] }
 0x463   :  { %v6207_v43 = vadd.f32 0.0001, %v7745_v63  ;;  %v7769_v56 = vpop.f32.mrb[55].mxu1 }
 0x464   :  { %v6247_v57 = vadd.f32 0.0001, %v7767_v54 }
 0x465   :  { %9199 = vlog2.f32 %v6207_v43 }
 0x466   :  { %9201 = vlog2.f32 %v6247_v57 }
 0x46f   :  { %v9200_v61 = vpop.eup %9199 }
 0x470   :  { %v9202_v3 = vpop.eup %9201  ;;  %v6615_v5 = vmul.f32 0.6931472, %v9200_v61 }
 0x471   :  { %v6617_v7 = vmul.f32 0.6931472, %v9202_v3 }
 0x472   :  { %v6721_v8 = vsub.f32 %v6615_v5, %v7660_v0 }
 0x473   :  { %v6722_v51 = vsub.f32 %v6617_v7, %v7661_v34 }
 0x474   :  { %v6817_v12 = vmul.f32 %v7672_v23, %v6721_v8 }
 0x475   :  { %v6818_v35 = vmul.f32 %v7673_v60, %v6722_v51 }
 0x476   :  { %6829 = vst.msk [vmem:[#allocation11 + $0x2] sm:$0x3] %vm274_vm0, %v6817_v12 }
 0x477   :  { %6830 = vst.msk [vmem:[#allocation11 + $0x4] sm:$0x3] %vm274_vm0, %v6818_v35 }
 0x47f   :  { %v7787_v13 = vpop.f32.mrb[56].mxu0 }
 0x480   :  { %v7809_v40 = vpop.f32.mrb[56].mxu1  ;;  %v7788_v58 = vpop.f32.mrb[57].mxu0 }
 0x481   :  { %v7789_v62 = vadd.f32 %v7788_v58, %v7787_v13  ;;  %v7810_v2 = vpop.f32.mrb[57].mxu1  ;;  %v7790_v4 = vpop.f32.mrb[58].mxu0 }
 0x482   :  { %v7811_v6 = vadd.f32 %v7810_v2, %v7809_v40  ;;  %v7812_v41 = vpop.f32.mrb[58].mxu1  ;;  %v7791_v10 = vpop.f32.mrb[59].mxu0 }
 0x483   :  { %v6287_v14 = vadd.f32 0.0001, %v7789_v62  ;;  %v7813_v21 = vpop.f32.mrb[59].mxu1 }
 0x484   :  { %v6327_v17 = vadd.f32 0.0001, %v7811_v6 }
 0x485   :  { %9203 = vlog2.f32 %v6287_v14 }
 0x486   :  { %9205 = vlog2.f32 %v6327_v17 }
 0x48f   :  { %v9204_v15 = vpop.eup %9203 }
 0x490   :  { %v9206_v19 = vpop.eup %9205  ;;  %v6619_v24 = vmul.f32 0.6931472, %v9204_v15 }
 0x491   :  { %v6621_v30 = vmul.f32 0.6931472, %v9206_v19 }
 0x492   :  { %v6723_v22 = vsub.f32 %v6619_v24, %v7662_v16 }
 0x493   :  { %v6724_v39 = vsub.f32 %v6621_v30, %v7663_v20 }
 0x494   :  { %v6819_v45 = vmul.f32 %v7674_v29, %v6723_v22 }
 0x495   :  { %v6820_v52 = vmul.f32 %v7675_v25, %v6724_v39 }
 0x496   :  { %6831 = vst.msk [vmem:[#allocation11 + $0x6] sm:$0x3] %vm274_vm0, %v6819_v45 }
 0x497   :  { %6832 = vst.msk [vmem:[#allocation11 + $0x8] sm:$0x3] %vm274_vm0, %v6820_v52 }
 0x49f   :  { %v7831_v59 = vpop.f32.mrb[60].mxu0 }
 0x4a0   :  { %v7853_v26 = vpop.f32.mrb[60].mxu1  ;;  %v7832_v28 = vpop.f32.mrb[61].mxu0 }
 0x4a1   :  { %v7833_v27 = vadd.f32 %v7832_v28, %v7831_v59  ;;  %v7854_v1 = vpop.f32.mrb[61].mxu1  ;;  %v7834_v31 = vpop.f32.mrb[62].mxu0 }
 0x4a2   :  { %v7855_v36 = vadd.f32 %v7854_v1, %v7853_v26  ;;  %v7856_v37 = vpop.f32.mrb[62].mxu1  ;;  %v7835_v38 = vpop.f32.mrb[63].mxu0 }
 0x4a3   :  { %v6367_v42 = vadd.f32 0.0001, %v7833_v27  ;;  %v7857_v44 = vpop.f32.mrb[63].mxu1 }
 0x4a4   :  { %v6407_v32 = vadd.f32 0.0001, %v7855_v36 }
 0x4a5   :  { %9207 = vlog2.f32 %v6367_v42 }
 0x4a6   :  { %9209 = vlog2.f32 %v6407_v32 }
 0x4af   :  { %v9208_v53 = vpop.eup %9207 }
 0x4b0   :  { %v9210_v18 = vpop.eup %9209  ;;  %v6623_v47 = vmul.f32 0.6931472, %v9208_v53 }
 0x4b1   :  { %v6625_v49 = vmul.f32 0.6931472, %v9210_v18 }
 0x4b2   :  { %v6725_v63 = vsub.f32 %v6623_v47, %v7664_v46 }
 0x4b3   :  { %v6726_v33 = vsub.f32 %v6625_v49, %v7665_v9 }
 0x4b4   :  { %v6821_v54 = vmul.f32 %v7676_v48, %v6725_v63 }
 0x4b5   :  { %v6822_v55 = vmul.f32 %v7677_v50, %v6726_v33 }
 0x4b6   :  { %6833 = vst.msk [vmem:[#allocation11 + $0xa] sm:$0x3] %vm274_vm0, %v6821_v54 }
 0x4b7   :  { %6834 = vst.msk [vmem:[#allocation11 + $0xc] sm:$0x3] %vm274_vm0, %v6822_v55 }
 0x4bf   :  { %v7875_v11 = vpop.f32.mrb[64].mxu0 }
 0x4c0   :  { %v7897_v43 = vpop.f32.mrb[64].mxu1  ;;  %v7876_v56 = vpop.f32.mrb[65].mxu0 }
 0x4c1   :  { %v7877_v57 = vadd.f32 %v7876_v56, %v7875_v11  ;;  %v7898_v61 = vpop.f32.mrb[65].mxu1  ;;  %v7878_v0 = vpop.f32.mrb[66].mxu0 }
 0x4c2   :  { %v7899_v3 = vadd.f32 %v7898_v61, %v7897_v43  ;;  %v7900_v5 = vpop.f32.mrb[66].mxu1  ;;  %v7879_v34 = vpop.f32.mrb[67].mxu0 }
 0x4c3   :  { %v6447_v23 = vadd.f32 0.0001, %v7877_v57  ;;  %v7901_v7 = vpop.f32.mrb[67].mxu1 }
 0x4c4   :  { %v6487_v8 = vadd.f32 0.0001, %v7899_v3 }
 0x4c5   :  { %9336 = shalt.err (!%p9333_p8)
}
 0x4c6   :  { %s9337_s7 = scalar_lea.hbm %s10135_s5, 32 }
 0x4c7   :  { %p9338_p9 = scmp.ne.s32.totalorder %s10135_s5, %s9337_s7  ;;  %p9341_p10 = scmp.lt.u32.totalorder %s9337_s7, %s10135_s5 }
 0x4c9   :  { %p9343_p11 = pnand %p9341_p10, %p9338_p9 }
 0x4cb   :  { %9346 = shalt.err (!%p9343_p11)
}
 0x4cc   :  { %6849 = dma.vmem_to_hbm [thread:$0]  %s6847_s27, 32, %s10135_s5, [#allocation4]   ;;  %9211 = vlog2.f32 %v6447_v23  ;;  %v7666_v51 = vld [vmem:[#allocation7 + $0x7] ss:$0 sm:$0xff]  ;;  %v7667_v13 = vld [vmem:[#allocation7 + $0x8] ss:$0 sm:$0xff] }
 0x4cd   :  { %9213 = vlog2.f32 %v6487_v8  ;;  %v7678_v40 = vld [vmem:[#allocation8 + $0x7] ss:$0 sm:$0xff]  ;;  %v7679_v2 = vld [vmem:[#allocation8 + $0x8] ss:$0 sm:$0xff]  ;;  %v7668_v39 = vld [vmem:[#allocation7 + $0x9] ss:$0 sm:$0xff] }
 0x4ce   :  { %v7680_v52 = vld [vmem:[#allocation8 + $0x9] ss:$0 sm:$0xff]  ;;  %v7669_v27 = vld [vmem:[#allocation7 + $0xa] ss:$0 sm:$0xff]  ;;  %v7681_v31 = vld [vmem:[#allocation8 + $0xa] ss:$0 sm:$0xff] }
 0x4cf   :  { %v7670_v47 = vld [vmem:[#allocation7 + $0xb] ss:$0 sm:$0xff]  ;;  %s9388_s5 = smov [#allocation11]   ;;  %v7682_v48 = vld [vmem:[#allocation8 + $0xb] ss:$0 sm:$0xff] }
 0x4d0   :  { %s6855_s15 = sshll.u32 %s9388_s5, 4  ;;  %s6856_s15 = int_to_ptr.vmem [resolvable:$true] %s6855_s15 }
 0x4d1   :  { %s9347_s16 = scalar_lea.vmem %s6856_s15, 384  ;;  %p9352_p13 = scmp.lt.s32.totalorder %s6856_s15, %s6856_s15 }
 0x4d2   :  { %p9348_p12 = scmp.ne.s32.totalorder %s6856_s15, %s9347_s16  ;;  %p9353_p0 = scmp.lt.s32.totalorder %s9347_s16, %s9347_s16 }
 0x4d4   :  { %p9354_p1 = por %p9353_p0, %p9352_p13 }
 0x4d6   :  { %v9212_v60 = vpop.eup %9211  ;;  %p9355_p2 = pnand %p9354_p1, %p9348_p12 }
 0x4d7   :  { %v9214_v12 = vpop.eup %9213  ;;  %v6627_v35 = vmul.f32 0.6931472, %v9212_v60 }
 0x4d8   :  { %v6629_v58 = vmul.f32 0.6931472, %v9214_v12 }
 0x4d9   :  { %v6727_v62 = vsub.f32 %v6627_v35, %v7666_v51 }
 0x4da   :  { %v6728_v4 = vsub.f32 %v6629_v58, %v7667_v13 }
 0x4db   :  { %v6823_v6 = vmul.f32 %v7678_v40, %v6727_v62 }
 0x4dc   :  { %v6824_v41 = vmul.f32 %v7679_v2, %v6728_v4 }
 0x4dd   :  { %6835 = vst.msk [vmem:[#allocation11 + $0xe] sm:$0x3] %vm274_vm0, %v6823_v6 }
 0x4de   :  { %6836 = vst.msk [vmem:[#allocation11 + $0x10] sm:$0x3] %vm274_vm0, %v6824_v41 }
 0x4df   :  { %v7919_v10 = vpop.f32.mrb[68].mxu0 }
 0x4e0   :  { %v7920_v14 = vpop.f32.mrb[69].mxu0 }
 0x4e1   :  { %v7921_v21 = vadd.f32 %v7920_v14, %v7919_v10  ;;  %v7922_v17 = vpop.f32.mrb[70].mxu0 }
 0x4e2   :  { %v7923_v15 = vpop.f32.mrb[71].mxu0 }
 0x4e3   :  { %v6527_v16 = vadd.f32 0.0001, %v7921_v21 }
 0x4e5   :  { %9215 = vlog2.f32 %v6527_v16 }
 0x4ea   :  { %v7941_v19 = vpop.f32.mrb[68].mxu1 }
 0x4eb   :  { %v7942_v24 = vpop.f32.mrb[69].mxu1 }
 0x4ec   :  { %v7943_v20 = vadd.f32 %v7942_v24, %v7941_v19  ;;  %v7944_v29 = vpop.f32.mrb[70].mxu1 }
 0x4ed   :  { %v7945_v30 = vpop.f32.mrb[71].mxu1 }
 0x4ee   :  { %v6567_v22 = vadd.f32 0.0001, %v7943_v20 }
 0x4ef   :  { %v9216_v25 = vpop.eup %9215 }
 0x4f0   :  { %v6631_v45 = vmul.f32 0.6931472, %v9216_v25  ;;  %9217 = vlog2.f32 %v6567_v22 }
 0x4f2   :  { %v6729_v59 = vsub.f32 %v6631_v45, %v7668_v39 }
 0x4f4   :  { %v6825_v26 = vmul.f32 %v7680_v52, %v6729_v59 }
 0x4f6   :  { %6837 = vst.msk [vmem:[#allocation11 + $0x12] sm:$0x3] %vm274_vm0, %v6825_v26 }
 0x4fa   :  { %v9218_v28 = vpop.eup %9217 }
 0x4fb   :  { %v6633_v1 = vmul.f32 0.6931472, %v9218_v28 }
 0x4fd   :  { %v6730_v36 = vsub.f32 %v6633_v1, %v7669_v27 }
 0x4ff   :  { %v6826_v37 = vmul.f32 %v7681_v31, %v6730_v36 }
 0x501   :  { %6838 = vst.msk [vmem:[#allocation11 + $0x14] sm:$0x3] %vm274_vm0, %v6826_v37 }
 0x52a   :  { %v7963_v38 = vpop.f32.mrb[72].mxu0 }
 0x52b   :  { %v7964_v42 = vpop.f32.mrb[73].mxu0 }
 0x52c   :  { %v7965_v44 = vadd.f32 %v7964_v42, %v7963_v38  ;;  %v7966_v32 = vpop.f32.mrb[74].mxu0 }
 0x52d   :  { %v7967_v53 = vpop.f32.mrb[75].mxu0 }
 0x52e   :  { %v6607_v46 = vadd.f32 0.0001, %v7965_v44 }
 0x530   :  { %9219 = vlog2.f32 %v6607_v46 }
 0x53a   :  { %v9220_v18 = vpop.eup %9219 }
 0x53b   :  { %v6635_v9 = vmul.f32 0.6931472, %v9220_v18 }
 0x53d   :  { %v6731_v49 = vsub.f32 %v6635_v9, %v7670_v47 }
 0x53f   :  { %v6827_v63 = vmul.f32 %v7682_v48, %v6731_v49 }
 0x541   :  { %6839 = vst.msk [vmem:[#allocation11 + $0x16] sm:$0x3] %vm274_vm0, %v6827_v63 }
 0x542   :  { %9358 = shalt.err (!%p9355_p2)
}
 0x543   :  { %s9359_s19 = scalar_lea.hbm %s10136_s6, 384 }
 0x544   :  { %p9360_p3 = scmp.ne.s32.totalorder %s10136_s6, %s9359_s19  ;;  %p9363_p4 = scmp.lt.u32.totalorder %s9359_s19, %s10136_s6 }
 0x546   :  { %p9365_p5 = pnand %p9363_p4, %p9360_p3 }
 0x548   :  { %9368 = shalt.err (!%p9365_p5)
}
 0x549   :  { %s9389_s1 = smov 32   ;;  %s9390_s22 = smov 2  }
 0x54a   :  { %6861 = dma.vmem_to_hbm [thread:$0]  %s6856_s15, 384, %s10136_s6, [#allocation12], %s9389_s1, %s9389_s1, %s9390_s22  }
 0x54b   :  { %9375 = dma.done.wait [#allocation4], 32  }
 0x54c   :  { %9376 = vsyncadd [#allocation4], 4294967264 }
 0x54d   :  { %9377 = dma.done.wait [#allocation12], 384  }
 0x54e   :  { %9378 = vsyncadd [#allocation12], 4294966912 }
 0x54f   :  { %6868 = vsyncpa [#allocation3], 1 }
 0x550   :  { %6869 = vsyncpa [#allocation6], 1 }
 0x551   :  { %6870 = vsyncpa [#allocation9], 1 }
 0x552   :  { %6871 = vsyncpa [#allocation4], 1 }
 0x553   :  { %6872 = vsyncpa [#allocation12], 1 }

</bundles_post_ra>
